<compile_context>
chip_gen: v7x
topology: tpu7x:2x2x1
jax: 0.10.0
libtpu: 0.0.40
codegen_flags: <defaults>
</compile_context>

<pallas_src>
import jax
import jax.numpy as jnp
from jax.experimental import pallas as pl
from jax.experimental.pallas import tpu as pltpu


def relu_conv1x1_kernel(x_ref, w_ref, o_ref):
    # x_ref: (C_in, ts), w_ref: (C_out, C_in), o_ref: (C_out, ts)
    a = jnp.maximum(x_ref[...], 0.0)  # fused ReLU on the RHS tile
    o_ref[...] = jnp.dot(
        w_ref[...], a, preferred_element_type=jnp.float32
    ).astype(o_ref.dtype)


def _pick_spatial_tile(S, n_batch, *, min_steps=4, max_tile=2048):
    """Spatial (lane) tile size.

    Largest 128-aligned tile (<= max_tile) that still yields >= min_steps
    grid steps, so the BlockSpec pipeline has DMA/compute overlap and both
    v7x TensorCores get work.  Ragged S is handled by ceil-div grid with a
    masked last tile instead of one huge full-extent block (keeps the
    double-buffered working set VMEM-safe on v7x).
    """
    if S <= 128:
        return S  # tiny spatial: block dim == full array dim is legal
    for cand in (4096, 2048, 1024, 512, 256, 128):
        if cand > max_tile:
            continue
        steps = n_batch * ((S + cand - 1) // cand)
        if steps >= min_steps:
            return cand
    return 128


def relu_conv1x1(x_nchw, weight_oihw, *, max_tile=2048, min_steps=4):
    """x_nchw: (N, C_in, H, W); weight_oihw: (C_out, C_in, 1, 1). Returns NCHW."""
    N, C_in, H, W = x_nchw.shape
    C_out = weight_oihw.shape[0]
    S = H * W

    x3d = x_nchw.reshape(N, C_in, S)          # free reshape of contiguous NCHW
    w2d = weight_oihw.reshape(C_out, C_in)    # no transpose needed

    ts = _pick_spatial_tile(S, N, min_steps=min_steps, max_tile=max_tile)
    n_s = (S + ts - 1) // ts
    grid = (N, n_s)

    itemsize = jnp.dtype(x_nchw.dtype).itemsize
    cost = pl.CostEstimate(
        flops=2 * N * C_out * C_in * S,
        transcendentals=0,
        bytes_accessed=itemsize * (N * C_in * S + C_out * C_in + N * C_out * S),
    )

    def build(single_buffer_weight):
        w_kwargs = {}
        if single_buffer_weight:
            # Constant index_map -> never re-fetched; one buffer is enough.
            w_kwargs["pipeline_mode"] = pl.Buffered(1)
        return pl.pallas_call(
            relu_conv1x1_kernel,
            out_shape=jax.ShapeDtypeStruct((N, C_out, S), x_nchw.dtype),
            grid_spec=pltpu.PrefetchScalarGridSpec(
                num_scalar_prefetch=0,
                grid=grid,
                in_specs=[
                    # batch dim squeezed out of the kernel view
                    pl.BlockSpec((None, C_in, ts), lambda n, s: (n, 0, s)),
                    # full weight, constant index -> resident in VMEM
                    pl.BlockSpec((C_out, C_in), lambda n, s: (0, 0), **w_kwargs),
                ],
                out_specs=pl.BlockSpec((None, C_out, ts), lambda n, s: (n, 0, s)),
            ),
            compiler_params=pltpu.CompilerParams(
                dimension_semantics=("parallel", "parallel"),
            ),
            cost_estimate=cost,
        )

    try:
        out3d = build(True)(x3d, w2d)
    except Exception:
        # Fallback if this jax build rejects pipeline_mode=pl.Buffered(1);
        # the weight block is only C_out*C_in*4 B, so default double
        # buffering costs negligible VMEM.
        out3d = build(False)(x3d, w2d)

    return out3d.reshape(N, C_out, H, W)


if __name__ == "__main__":
    key = jax.random.PRNGKey(0)
    kx, kw = jax.random.split(key)

    # Module semantics fix C_in=512, C_out=128; use the spec's spatial extent.
    N, C_in, H, W = 1, 512, 28, 28
    C_out = 128

    x = jax.random.normal(kx, (N, C_in, H, W), dtype=jnp.float32)
    # Deterministic weight init (kaiming-uniform-like scale for a 1x1 conv).
    bound = 1.0 / (C_in ** 0.5)
    weight = jax.random.uniform(
        kw, (C_out, C_in, 1, 1), dtype=jnp.float32, minval=-bound, maxval=bound
    )

    out = relu_conv1x1(x, weight)
    out = jax.block_until_ready(out)

    # Sanity check against plain JAX reference.
    ref = jnp.einsum(
        "nchw,oc->nohw", jnp.maximum(x, 0.0), weight.reshape(C_out, C_in)
    )
    assert out.shape == (N, C_out, H, W), out.shape
    assert jnp.allclose(out, ref, atol=1e-4, rtol=1e-4)

    print("KERNEL_OK")
</pallas_src>

<mosaic_0001>
module attributes {stable_mosaic.version = 11 : i64} {
  func.func @relu_conv1x1_kernel(%arg0: i32, %arg1: i32, %arg2: memref<1x512x256xf32, #tpu.memory_space<vmem>>, %arg3: memref<128x512xf32, #tpu.memory_space<vmem>>, %arg4: memref<1x128x256xf32, #tpu.memory_space<vmem>>) attributes {dimension_semantics = [#tpu.dimension_semantics<parallel>, #tpu.dimension_semantics<parallel>], iteration_bounds = array<i64: 1, 4>, scalar_prefetch = 0 : i64, scratch_operands = 0 : i64, tpu.core_type = #tpu.core_type<tc>, window_params = [{transform_indices = @transform_0, window_bounds = array<i64: 1, 512, 256>}, {pipeline_mode = #tpu.pipeline_mode<synchronous>, transform_indices = @transform_1, window_bounds = array<i64: 128, 512>}, {transform_indices = @transform_2, window_bounds = array<i64: 1, 128, 256>}]} {
    %c0 = arith.constant 0 : index
    %c0_0 = arith.constant 0 : index
    %c0_1 = arith.constant 0 : index
    %0 = vector.load %arg2[%c0, %c0_0, %c0_1] : memref<1x512x256xf32, #tpu.memory_space<vmem>>, vector<1x512x256xf32>
    %1 = vector.shape_cast %0 : vector<1x512x256xf32> to vector<512x256xf32>
    %cst = arith.constant 0.000000e+00 : f32
    %2 = vector.broadcast %cst : f32 to vector<512x256xf32>
    %3 = arith.maximumf %1, %2 : vector<512x256xf32>
    %c0_2 = arith.constant 0 : index
    %c0_3 = arith.constant 0 : index
    %4 = vector.load %arg3[%c0_2, %c0_3] : memref<128x512xf32, #tpu.memory_space<vmem>>, vector<128x512xf32>
    %cst_4 = arith.constant dense<0.000000e+00> : vector<128x256xf32>
    %5 = tpu.matmul %4, %3, %cst_4 {dimension_numbers = #tpu.dot_dimension_numbers<[1], [0], [0], [1], [0, 0, 1, 1], [], []>} : vector<128x512xf32>, vector<512x256xf32>, vector<128x256xf32> -> vector<128x256xf32>
    %c0_5 = arith.constant 0 : index
    %c0_6 = arith.constant 0 : index
    %c0_7 = arith.constant 0 : index
    %6 = vector.load %arg4[%c0_5, %c0_6, %c0_7] : memref<1x128x256xf32, #tpu.memory_space<vmem>>, vector<1x128x256xf32>
    %7 = vector.shape_cast %6 : vector<1x128x256xf32> to vector<128x256xf32>
    %8 = vector.shape_cast %5 : vector<128x256xf32> to vector<1x128x256xf32>
    tpu.vector_store %arg4[%c0_5, %c0_6, %c0_7], %8 {strides = array<i32>} : memref<1x128x256xf32, #tpu.memory_space<vmem>>, vector<1x128x256xf32>,
    return
  }
  func.func @transform_0(%arg0: i32, %arg1: i32) -> (i32, i32, i32) {
    %c0_i32 = arith.constant 0 : i32
    %c0_i32_0 = arith.constant 0 : i32
    return %arg0, %c0_i32, %arg1 : i32, i32, i32
  }
  func.func @transform_1(%arg0: i32, %arg1: i32) -> (i32, i32) {
    %c0_i32 = arith.constant 0 : i32
    %c0_i32_0 = arith.constant 0 : i32
    %c0_i32_1 = arith.constant 0 : i32
    return %c0_i32, %c0_i32_0 : i32, i32
  }
  func.func @transform_2(%arg0: i32, %arg1: i32) -> (i32, i32, i32) {
    %c0_i32 = arith.constant 0 : i32
    %c0_i32_0 = arith.constant 0 : i32
    return %arg0, %c0_i32, %arg1 : i32, i32, i32
  }
}

module attributes {stable_mosaic.version = 11 : i64} {
  func.func @relu_conv1x1_kernel(%arg0: i32, %arg1: i32, %arg2: memref<1x512x256xf32, #tpu.memory_space<vmem>>, %arg3: memref<128x512xf32, #tpu.memory_space<vmem>>, %arg4: memref<1x128x256xf32, #tpu.memory_space<vmem>>) attributes {dimension_semantics = [#tpu.dimension_semantics<parallel>, #tpu.dimension_semantics<parallel>], iteration_bounds = array<i64: 1, 4>, scalar_prefetch = 0 : i64, scratch_operands = 0 : i64, tpu.core_type = #tpu.core_type<tc>, window_params = [{transform_indices = @transform_0, window_bounds = array<i64: 1, 512, 256>}, {pipeline_mode = #tpu.pipeline_mode<synchronous>, transform_indices = @transform_1, window_bounds = array<i64: 128, 512>}, {transform_indices = @transform_2, window_bounds = array<i64: 1, 128, 256>}]} {
    %c0 = arith.constant 0 : index
    %c0_0 = arith.constant 0 : index
    %c0_1 = arith.constant 0 : index
    %0 = vector.load %arg2[%c0, %c0_0, %c0_1] : memref<1x512x256xf32, #tpu.memory_space<vmem>>, vector<1x512x256xf32>
    %1 = vector.shape_cast %0 : vector<1x512x256xf32> to vector<512x256xf32>
    %cst = arith.constant 0.000000e+00 : f32
    %2 = vector.broadcast %cst : f32 to vector<512x256xf32>
    %3 = arith.maximumf %1, %2 : vector<512x256xf32>
    %c0_2 = arith.constant 0 : index
    %c0_3 = arith.constant 0 : index
    %4 = vector.load %arg3[%c0_2, %c0_3] : memref<128x512xf32, #tpu.memory_space<vmem>>, vector<128x512xf32>
    %cst_4 = arith.constant dense<0.000000e+00> : vector<128x256xf32>
    %5 = tpu.matmul %4, %3, %cst_4 {dimension_numbers = #tpu.dot_dimension_numbers<[1], [0], [0], [1], [0, 0, 1, 1], [], []>} : vector<128x512xf32>, vector<512x256xf32>, vector<128x256xf32> -> vector<128x256xf32>
    %c0_5 = arith.constant 0 : index
    %c0_6 = arith.constant 0 : index
    %c0_7 = arith.constant 0 : index
    %6 = vector.load %arg4[%c0_5, %c0_6, %c0_7] : memref<1x128x256xf32, #tpu.memory_space<vmem>>, vector<1x128x256xf32>
    %7 = vector.shape_cast %6 : vector<1x128x256xf32> to vector<128x256xf32>
    %8 = vector.shape_cast %5 : vector<128x256xf32> to vector<1x128x256xf32>
    tpu.vector_store %arg4[%c0_5, %c0_6, %c0_7], %8 {strides = array<i32>} : memref<1x128x256xf32, #tpu.memory_space<vmem>>, vector<1x128x256xf32>,
    return
  }
  func.func @transform_0(%arg0: i32, %arg1: i32) -> (i32, i32, i32) {
    %c0_i32 = arith.constant 0 : i32
    %c0_i32_0 = arith.constant 0 : i32
    return %arg0, %c0_i32, %arg1 : i32, i32, i32
  }
  func.func @transform_1(%arg0: i32, %arg1: i32) -> (i32, i32) {
    %c0_i32 = arith.constant 0 : i32
    %c0_i32_0 = arith.constant 0 : i32
    %c0_i32_1 = arith.constant 0 : i32
    return %c0_i32, %c0_i32_0 : i32, i32
  }
  func.func @transform_2(%arg0: i32, %arg1: i32) -> (i32, i32, i32) {
    %c0_i32 = arith.constant 0 : i32
    %c0_i32_0 = arith.constant 0 : i32
    return %arg0, %c0_i32, %arg1 : i32, i32, i32
  }
}

</mosaic_0001>

<bundles_post_ra>
// kernel: tpu_custom_call.1
= control target key start
LH: loop header
LB: loop body
LE: loop exit
PB: predicated region body
PF: predicated region fallthrough
CT: control target
= control target key end

     0   :  { %s2880_s9 = smov 0   ;;  %s2882_s10 = smov 0   ;;  %s4824_s0 = inlined_call_operand.vmem [shape: f32[1,512,784], index: 0, kind: input, shape index: {}]   ;;  %s4825_s1 = inlined_call_operand.vmem [shape: f32[128,512], index: 1, kind: input, shape index: {}]   ;;  %s4826_s2 = inlined_call_operand.vmem [shape: f32[1,128,784], index: 2, kind: output, shape index: {}]  }
   0x1   :  { %s2884_s11 = smov 0   ;;  %s2886_s12 = smov 0  }
   0x2   :  { %s2888_s13 = smov 0  }
   0x3 LB: > { %s21_s14 = sadd.s32 1, %s2759_s12  ;;  %s2174_s15 = sadd.s32 4294967295, %s2763_s13   ;;  %s2763_s13 = sphi %s2888_s13, %s12_s13   ;;  %s2759_s12 = sphi %s2886_s12, %s4859_s12   ;;  %s2755_s11 = sphi %s2884_s11, %s4858_s11   ;;  %s2751_s10 = sphi %s2882_s10, %s4857_s10   ;;  %s2747_s9 = sphi %s2880_s9, %s4856_s9  }
   0x4   : > { %p22_p0 = scmp.ge.s32.totalorder %s21_s14, 4  ;;  %p40_p1 = scmp.ne.s32.totalorder %s2751_s10, %s2747_s9 }
   0x5   : > { %p41_p2 = scmp.eq.s32.totalorder %s2763_s13, 0  ;;  %p93_p4 = scmp.eq.s32.totalorder %s2174_s15, 3 }
   0x6   : > { %s4861_s14 = smov (%p22_p0, %s21_s14), 0  ;;  %s33_s17 = sadd.s32 1, %s2751_s10 }
   0x7   : > { %p42_p3 = por %p41_p2, %p40_p1  ;;  %s29_s16 = ssub.s32 %s2759_s12, %s4861_s14 }
   0x8   : > { %p31_p5 = scmp.eq.s32.totalorder %s29_s16, 0  ;;  %p2915_p6 = por %p93_p4, %p40_p1 }
   0x9   : > { %p2177_p7 = scmp.ge.s32.totalorder %s2763_s13, 4 }
   0xa   : > { %s2920_s19 = scalar_select %p31_p5, %s2751_s10, %s33_s17  }
   0xb   : > { %118 = sbr.rel (%p2177_p7) target bundleno = 254 (0xfe), region = 20 }
  0x12   : > { %121 = sbr.rel (!%p42_p3) target bundleno = 254 (0xfe), region = 24  ;;  %s123_s20 = sand.u32 (%p42_p3), 1, %s2751_s10  }
  0x13   : > { %s2179_s21 = sshll.u32 (%p42_p3), %s2759_s12, 1  ;;  %s2178_s22 = sshll.u32 (%p42_p3), %s123_s20, 10 }
  0x14   : > { %s127_s23 = ssub.s32 (%p42_p3), 7, %s2179_s21  ;;  %s2225_s24 = sshll.u32 (%p42_p3), %s2759_s12, 4 }
  0x15   : > { %p128_p8 = scmp.lt.s32.totalorder (%p42_p3), %s127_s23, 2  ;;  %s2929_s27 = scalar_lea.vmem (%p42_p3), %s4824_s0, %s2225_s24  }
  0x16   : > { %s2933_s30 = scalar_lea.vmem (%p42_p3), [#allocation2], %s2178_s22  }
  0x19   : > { %s4863_s23 = smov (!%p128_p8, %s127_s23), 2 }
  0x1a   : > { %s2180_s28 = sshll.u32 %s4863_s23, 13  ;;  %s2931_s29 = sshll.u32 %s4863_s23, 3 }
  0x1b   : > { %p2184_p9 = scmp.eq.s32.totalorder %s2180_s28, 0 }
  0x1c   : > { %p140_p10 = scmp.lt.u32.totalorder (!%p2184_p9), %s2931_s29, 8 }
  0x1d   : > { %139 = sbr.rel (%p2184_p9) target bundleno = 254 (0xfe), region = 28 }
  0x24   : > { %143 = sbr.rel (%p140_p10) target bundleno = 187 (0xbb), region = 32  ;;  %s2937_s3 = sand.u32 (!%p140_p10), 7, %s2931_s29  }
  0x25   : > { %p285_p11 = scmp.eq.s32.totalorder (!%p140_p10), %s2937_s3, 0  ;;  %p2185_p12 = scmp.ne.s32.totalorder (!%p140_p10), %s2937_s3, 0 }
  0x2b   : > { %288 = sbr.rel (%p2185_p12) target bundleno = 83 (0x53), region = 47  ;;  %s289_s4 = sshrl.u32 (!%p2185_p12), %s2931_s29, 3 }
  0x2c   : > { %s4828_s5 = smov (!%p2185_p12), %s2933_s30  ;;  %s4829_s6 = smov (!%p2185_p12), %s2929_s27 }
  0x2d   : > { %s2948_s7 = smov (!%p2185_p12), 0   ;;  %s2950_s8 = smov (!%p2185_p12), 0  }
  0x32 LB: >> { %v301_v0 = vld [vmem:[%s2771_s6] sm:$0xff]  ;;  %v303_v1 = vld [vmem:[%s2771_s6 + $0x38] sm:$0xff]  ;;  %v305_v2 = vld [vmem:[%s2771_s6 + $0x70] sm:$0xff]  ;;  %s429_s15 = sadd.s32 1, %s2775_s7  ;;  %s295_s8 = sadd.s32 1, %s2779_s8   ;;  %s2779_s8 = sphi %s2950_s8, %s295_s8   ;;  %s2775_s7 = sphi %s2948_s7, %s4832_s7   ;;  %s2771_s6 = sphi %s4829_s6, %s4831_s6   ;;  %s2767_s5 = sphi %s4828_s5, %s4830_s5  }
  0x33   : >> { %302 = vst [vmem:[%s2767_s5] sm:$0xff] %v301_v0  ;;  %304 = vst [vmem:[%s2767_s5 + $0x10] sm:$0xff] %v303_v1  ;;  %v307_v3 = vld [vmem:[%s2771_s6 + $0xa8] sm:$0xff]  ;;  %v309_v4 = vld [vmem:[%s2771_s6 + $0xe0] sm:$0xff]  ;;  %p430_p13 = scmp.ge.s32.totalorder %s429_s15, %s289_s4  ;;  %p294_p0 = scmp.ge.s32.totalorder %s295_s8, %s289_s4 }
  0x34   : >> { %306 = vst [vmem:[%s2767_s5 + $0x20] sm:$0xff] %v305_v2  ;;  %v311_v5 = vld [vmem:[%s2771_s6 + $0x118] sm:$0xff]  ;;  %308 = vst [vmem:[%s2767_s5 + $0x30] sm:$0xff] %v307_v3  ;;  %v313_v6 = vld [vmem:[%s2771_s6 + $0x150] sm:$0xff] }
  0x35   : >> { %310 = vst [vmem:[%s2767_s5 + $0x40] sm:$0xff] %v309_v4  ;;  %312 = vst [vmem:[%s2767_s5 + $0x50] sm:$0xff] %v311_v5  ;;  %v315_v7 = vld [vmem:[%s2771_s6 + $0x188] sm:$0xff]  ;;  %v317_v8 = vld [vmem:[%s2771_s6 + $0x1c0] sm:$0xff]  ;;  %s4865_s15 = smov (%p430_p13, %s429_s15), 0 }
  0x36   : >> { %314 = vst [vmem:[%s2767_s5 + $0x60] sm:$0xff] %v313_v6  ;;  %316 = vst [vmem:[%s2767_s5 + $0x70] sm:$0xff] %v315_v7  ;;  %v319_v9 = vld [vmem:[%s2771_s6 + $0x1f8] sm:$0xff]  ;;  %v321_v10 = vld [vmem:[%s2771_s6 + $0x230] sm:$0xff]  ;;  %s2187_s16 = sshll.u32 %s4865_s15, 3  ;;  %s4832_s7 = smov %s4865_s15 }
  0x37   : >> { %318 = vst [vmem:[%s2767_s5 + $0x80] sm:$0xff] %v317_v8  ;;  %v323_v11 = vld [vmem:[%s2771_s6 + $0x268] sm:$0xff]  ;;  %320 = vst [vmem:[%s2767_s5 + $0x90] sm:$0xff] %v319_v9  ;;  %v325_v12 = vld [vmem:[%s2771_s6 + $0x2a0] sm:$0xff]  ;;  %s3007_s17 = scalar_lea.vmem %s2929_s27, %s2187_s16   ;;  %s3010_s20 = scalar_lea.vmem %s2933_s30, %s2187_s16 [#allocation2]  }
  0x38   : >> { %322 = vst [vmem:[%s2767_s5 + $0xa0] sm:$0xff] %v321_v10  ;;  %324 = vst [vmem:[%s2767_s5 + $0xb0] sm:$0xff] %v323_v11  ;;  %v327_v13 = vld [vmem:[%s2771_s6 + $0x2d8] sm:$0xff]  ;;  %v329_v14 = vld [vmem:[%s2771_s6 + $0x310] sm:$0xff] }
  0x39   : >> { %326 = vst [vmem:[%s2767_s5 + $0xc0] sm:$0xff] %v325_v12  ;;  %328 = vst [vmem:[%s2767_s5 + $0xd0] sm:$0xff] %v327_v13  ;;  %v331_v15 = vld [vmem:[%s2771_s6 + $0x348] sm:$0xff]  ;;  %v333_v16 = vld [vmem:[%s2771_s6 + $0x380] sm:$0xff] }
  0x3a   : >> { %330 = vst [vmem:[%s2767_s5 + $0xe0] sm:$0xff] %v329_v14  ;;  %v335_v17 = vld [vmem:[%s2771_s6 + $0x3b8] sm:$0xff]  ;;  %332 = vst [vmem:[%s2767_s5 + $0xf0] sm:$0xff] %v331_v15  ;;  %v337_v18 = vld [vmem:[%s2771_s6 + $0x3f0] sm:$0xff] }
  0x3b   : >> { %334 = vst [vmem:[%s2767_s5 + $0x100] sm:$0xff] %v333_v16  ;;  %336 = vst [vmem:[%s2767_s5 + $0x110] sm:$0xff] %v335_v17  ;;  %v339_v19 = vld [vmem:[%s2771_s6 + $0x428] sm:$0xff]  ;;  %v341_v20 = vld [vmem:[%s2771_s6 + $0x460] sm:$0xff] }
  0x3c   : >> { %338 = vst [vmem:[%s2767_s5 + $0x120] sm:$0xff] %v337_v18  ;;  %340 = vst [vmem:[%s2767_s5 + $0x130] sm:$0xff] %v339_v19  ;;  %v343_v21 = vld [vmem:[%s2771_s6 + $0x498] sm:$0xff]  ;;  %v345_v22 = vld [vmem:[%s2771_s6 + $0x4d0] sm:$0xff] }
  0x3d   : >> { %342 = vst [vmem:[%s2767_s5 + $0x140] sm:$0xff] %v341_v20  ;;  %v347_v23 = vld [vmem:[%s2771_s6 + $0x508] sm:$0xff]  ;;  %344 = vst [vmem:[%s2767_s5 + $0x150] sm:$0xff] %v343_v21  ;;  %v349_v24 = vld [vmem:[%s2771_s6 + $0x540] sm:$0xff] }
  0x3e   : >> { %346 = vst [vmem:[%s2767_s5 + $0x160] sm:$0xff] %v345_v22  ;;  %348 = vst [vmem:[%s2767_s5 + $0x170] sm:$0xff] %v347_v23  ;;  %v351_v25 = vld [vmem:[%s2771_s6 + $0x578] sm:$0xff]  ;;  %v353_v26 = vld [vmem:[%s2771_s6 + $0x5b0] sm:$0xff] }
  0x3f   : >> { %350 = vst [vmem:[%s2767_s5 + $0x180] sm:$0xff] %v349_v24  ;;  %352 = vst [vmem:[%s2767_s5 + $0x190] sm:$0xff] %v351_v25  ;;  %v355_v27 = vld [vmem:[%s2771_s6 + $0x5e8] sm:$0xff]  ;;  %v357_v28 = vld [vmem:[%s2771_s6 + $0x620] sm:$0xff] }
  0x40   : >> { %354 = vst [vmem:[%s2767_s5 + $0x1a0] sm:$0xff] %v353_v26  ;;  %v359_v29 = vld [vmem:[%s2771_s6 + $0x658] sm:$0xff]  ;;  %356 = vst [vmem:[%s2767_s5 + $0x1b0] sm:$0xff] %v355_v27  ;;  %v361_v30 = vld [vmem:[%s2771_s6 + $0x690] sm:$0xff] }
  0x41   : >> { %358 = vst [vmem:[%s2767_s5 + $0x1c0] sm:$0xff] %v357_v28  ;;  %360 = vst [vmem:[%s2767_s5 + $0x1d0] sm:$0xff] %v359_v29  ;;  %v363_v31 = vld [vmem:[%s2771_s6 + $0x6c8] sm:$0xff]  ;;  %v365_v32 = vld [vmem:[%s2771_s6 + $0x700] sm:$0xff] }
  0x42   : >> { %362 = vst [vmem:[%s2767_s5 + $0x1e0] sm:$0xff] %v361_v30  ;;  %364 = vst [vmem:[%s2767_s5 + $0x1f0] sm:$0xff] %v363_v31  ;;  %v367_v33 = vld [vmem:[%s2771_s6 + $0x738] sm:$0xff]  ;;  %v369_v34 = vld [vmem:[%s2771_s6 + $0x770] sm:$0xff] }
  0x43   : >> { %366 = vst [vmem:[%s2767_s5 + $0x200] sm:$0xff] %v365_v32  ;;  %v371_v35 = vld [vmem:[%s2771_s6 + $0x7a8] sm:$0xff]  ;;  %368 = vst [vmem:[%s2767_s5 + $0x210] sm:$0xff] %v367_v33  ;;  %v373_v36 = vld [vmem:[%s2771_s6 + $0x7e0] sm:$0xff] }
  0x44   : >> { %370 = vst [vmem:[%s2767_s5 + $0x220] sm:$0xff] %v369_v34  ;;  %372 = vst [vmem:[%s2767_s5 + $0x230] sm:$0xff] %v371_v35  ;;  %v375_v37 = vld [vmem:[%s2771_s6 + $0x818] sm:$0xff]  ;;  %v377_v38 = vld [vmem:[%s2771_s6 + $0x850] sm:$0xff] }
  0x45   : >> { %374 = vst [vmem:[%s2767_s5 + $0x240] sm:$0xff] %v373_v36  ;;  %376 = vst [vmem:[%s2767_s5 + $0x250] sm:$0xff] %v375_v37  ;;  %v379_v39 = vld [vmem:[%s2771_s6 + $0x888] sm:$0xff]  ;;  %v381_v40 = vld [vmem:[%s2771_s6 + $0x8c0] sm:$0xff] }
  0x46   : >> { %378 = vst [vmem:[%s2767_s5 + $0x260] sm:$0xff] %v377_v38  ;;  %v383_v41 = vld [vmem:[%s2771_s6 + $0x8f8] sm:$0xff]  ;;  %380 = vst [vmem:[%s2767_s5 + $0x270] sm:$0xff] %v379_v39  ;;  %v385_v42 = vld [vmem:[%s2771_s6 + $0x930] sm:$0xff] }
  0x47   : >> { %382 = vst [vmem:[%s2767_s5 + $0x280] sm:$0xff] %v381_v40  ;;  %384 = vst [vmem:[%s2767_s5 + $0x290] sm:$0xff] %v383_v41  ;;  %v387_v43 = vld [vmem:[%s2771_s6 + $0x968] sm:$0xff]  ;;  %v389_v44 = vld [vmem:[%s2771_s6 + $0x9a0] sm:$0xff] }
  0x48   : >> { %386 = vst [vmem:[%s2767_s5 + $0x2a0] sm:$0xff] %v385_v42  ;;  %388 = vst [vmem:[%s2767_s5 + $0x2b0] sm:$0xff] %v387_v43  ;;  %v391_v45 = vld [vmem:[%s2771_s6 + $0x9d8] sm:$0xff]  ;;  %v393_v46 = vld [vmem:[%s2771_s6 + $0xa10] sm:$0xff] }
  0x49   : >> { %390 = vst [vmem:[%s2767_s5 + $0x2c0] sm:$0xff] %v389_v44  ;;  %v395_v47 = vld [vmem:[%s2771_s6 + $0xa48] sm:$0xff]  ;;  %392 = vst [vmem:[%s2767_s5 + $0x2d0] sm:$0xff] %v391_v45  ;;  %v397_v48 = vld [vmem:[%s2771_s6 + $0xa80] sm:$0xff] }
  0x4a   : >> { %394 = vst [vmem:[%s2767_s5 + $0x2e0] sm:$0xff] %v393_v46  ;;  %396 = vst [vmem:[%s2767_s5 + $0x2f0] sm:$0xff] %v395_v47  ;;  %v399_v49 = vld [vmem:[%s2771_s6 + $0xab8] sm:$0xff]  ;;  %v401_v50 = vld [vmem:[%s2771_s6 + $0xaf0] sm:$0xff] }
  0x4b   : >> { %398 = vst [vmem:[%s2767_s5 + $0x300] sm:$0xff] %v397_v48  ;;  %400 = vst [vmem:[%s2767_s5 + $0x310] sm:$0xff] %v399_v49  ;;  %v403_v51 = vld [vmem:[%s2771_s6 + $0xb28] sm:$0xff]  ;;  %v405_v52 = vld [vmem:[%s2771_s6 + $0xb60] sm:$0xff] }
  0x4c   : >> { %402 = vst [vmem:[%s2767_s5 + $0x320] sm:$0xff] %v401_v50  ;;  %v407_v53 = vld [vmem:[%s2771_s6 + $0xb98] sm:$0xff]  ;;  %404 = vst [vmem:[%s2767_s5 + $0x330] sm:$0xff] %v403_v51  ;;  %v409_v54 = vld [vmem:[%s2771_s6 + $0xbd0] sm:$0xff]  ;;  %297 = sbr.rel (!%p294_p0) target bundleno = 50 (0x32), region = 209 }
  0x4d   : >> { %406 = vst [vmem:[%s2767_s5 + $0x340] sm:$0xff] %v405_v52  ;;  %408 = vst [vmem:[%s2767_s5 + $0x350] sm:$0xff] %v407_v53  ;;  %v411_v55 = vld [vmem:[%s2771_s6 + $0xc08] sm:$0xff]  ;;  %v413_v56 = vld [vmem:[%s2771_s6 + $0xc40] sm:$0xff] }
  0x4e   : >> { %410 = vst [vmem:[%s2767_s5 + $0x360] sm:$0xff] %v409_v54  ;;  %412 = vst [vmem:[%s2767_s5 + $0x370] sm:$0xff] %v411_v55  ;;  %v415_v57 = vld [vmem:[%s2771_s6 + $0xc78] sm:$0xff]  ;;  %v417_v58 = vld [vmem:[%s2771_s6 + $0xcb0] sm:$0xff] }
  0x4f   : >> { %414 = vst [vmem:[%s2767_s5 + $0x380] sm:$0xff] %v413_v56  ;;  %v419_v59 = vld [vmem:[%s2771_s6 + $0xce8] sm:$0xff]  ;;  %416 = vst [vmem:[%s2767_s5 + $0x390] sm:$0xff] %v415_v57  ;;  %v421_v60 = vld [vmem:[%s2771_s6 + $0xd20] sm:$0xff] }
  0x50   : >> { %418 = vst [vmem:[%s2767_s5 + $0x3a0] sm:$0xff] %v417_v58  ;;  %420 = vst [vmem:[%s2767_s5 + $0x3b0] sm:$0xff] %v419_v59  ;;  %v423_v61 = vld [vmem:[%s2771_s6 + $0xd58] sm:$0xff]  ;;  %v425_v62 = vld [vmem:[%s2771_s6 + $0xd90] sm:$0xff] }
  0x51   : >> { %422 = vst [vmem:[%s2767_s5 + $0x3c0] sm:$0xff] %v421_v60  ;;  %424 = vst [vmem:[%s2767_s5 + $0x3d0] sm:$0xff] %v423_v61  ;;  %v427_v63 = vld [vmem:[%s2771_s6 + $0xdc8] sm:$0xff]  ;;  %s4831_s6 = smov %s3007_s17 }
  0x52   : >> { %426 = vst [vmem:[%s2767_s5 + $0x3e0] sm:$0xff] %v425_v62  ;;  %428 = vst [vmem:[%s2767_s5 + $0x3f0] sm:$0xff] %v427_v63  ;;  %s4830_s5 = smov %s3010_s20 }
  0x53 PF: > { %438 = sbr.rel (%p285_p11) target bundleno = 187 (0xbb), region = 58  ;;  %s440_s21 = ssub.s32 (!%p285_p11), %s2931_s29, %s2937_s3 }
  0x54   : > { %s444_s22 = sshrl.u32 (!%p285_p11), %s2931_s29, 3  ;;  %s3121_s23 = scalar_lea.vmem (!%p285_p11), %s2929_s27, %s440_s21 }
  0x55   : > { %s3124_s24 = scalar_lea.vmem (!%p285_p11), %s2933_s30, %s440_s21 [#allocation2]  ;;  %s4833_s25 = smov (!%p285_p11), %s2933_s30 }
  0x56   : > { %s4834_s26 = smov (!%p285_p11), %s2929_s27  ;;  %s3132_s28 = smov (!%p285_p11), 0  }
  0x57   : > { %s3134_s4 = smov (!%p285_p11), 0  }
  0x5a LB: >> { %v456_v0 = vld [vmem:[%s2787_s26] sm:$0xff]  ;;  %v458_v1 = vld [vmem:[%s2787_s26 + $0x38] sm:$0xff]  ;;  %v460_v2 = vld [vmem:[%s2787_s26 + $0x70] sm:$0xff]  ;;  %s584_s5 = sadd.s32 1, %s2791_s28  ;;  %s450_s4 = sadd.s32 1, %s2795_s4   ;;  %s2795_s4 = sphi %s3134_s4, %s450_s4   ;;  %s2791_s28 = sphi %s3132_s28, %s4837_s28   ;;  %s2787_s26 = sphi %s4834_s26, %s4836_s26   ;;  %s2783_s25 = sphi %s4833_s25, %s4835_s25  }
  0x5b   : >> { %457 = vst [vmem:[%s2783_s25] sm:$0xff] %v456_v0  ;;  %459 = vst [vmem:[%s2783_s25 + $0x10] sm:$0xff] %v458_v1  ;;  %v462_v3 = vld [vmem:[%s2787_s26 + $0xa8] sm:$0xff]  ;;  %v464_v4 = vld [vmem:[%s2787_s26 + $0xe0] sm:$0xff]  ;;  %p585_p1 = scmp.ge.s32.totalorder %s584_s5, %s444_s22  ;;  %p449_p2 = scmp.ge.s32.totalorder %s450_s4, %s444_s22 }
  0x5c   : >> { %461 = vst [vmem:[%s2783_s25 + $0x20] sm:$0xff] %v460_v2  ;;  %v466_v5 = vld [vmem:[%s2787_s26 + $0x118] sm:$0xff]  ;;  %463 = vst [vmem:[%s2783_s25 + $0x30] sm:$0xff] %v462_v3  ;;  %v468_v6 = vld [vmem:[%s2787_s26 + $0x150] sm:$0xff]  ;;  %s2861_s15 = smov (%p449_p2), 0  }
  0x5d   : >> { %465 = vst [vmem:[%s2783_s25 + $0x40] sm:$0xff] %v464_v4  ;;  %467 = vst [vmem:[%s2783_s25 + $0x50] sm:$0xff] %v466_v5  ;;  %v470_v7 = vld [vmem:[%s2787_s26 + $0x188] sm:$0xff]  ;;  %v472_v8 = vld [vmem:[%s2787_s26 + $0x1c0] sm:$0xff]  ;;  %s4867_s5 = smov (%p585_p1, %s584_s5), 0  ;;  %s3300_s16 = sshllo.u32 (%p449_p2), %s2861_s15, %s2937_s3 }
  0x5e   : >> { %469 = vst [vmem:[%s2783_s25 + $0x60] sm:$0xff] %v468_v6  ;;  %471 = vst [vmem:[%s2783_s25 + $0x70] sm:$0xff] %v470_v7  ;;  %v474_v9 = vld [vmem:[%s2787_s26 + $0x1f8] sm:$0xff]  ;;  %v476_v10 = vld [vmem:[%s2787_s26 + $0x230] sm:$0xff]  ;;  %s2190_s6 = sshll.u32 %s4867_s5, 3  ;;  %s4837_s28 = smov %s4867_s5 }
  0x5f   : >> { %473 = vst [vmem:[%s2783_s25 + $0x80] sm:$0xff] %v472_v8  ;;  %v478_v11 = vld [vmem:[%s2787_s26 + $0x268] sm:$0xff]  ;;  %475 = vst [vmem:[%s2783_s25 + $0x90] sm:$0xff] %v474_v9  ;;  %v480_v12 = vld [vmem:[%s2787_s26 + $0x2a0] sm:$0xff]  ;;  %s3191_s7 = scalar_lea.vmem %s2929_s27, %s2190_s6   ;;  %s3194_s8 = scalar_lea.vmem %s2933_s30, %s2190_s6 [#allocation2]  }
  0x60   : >> { %477 = vst [vmem:[%s2783_s25 + $0xa0] sm:$0xff] %v476_v10  ;;  %479 = vst [vmem:[%s2783_s25 + $0xb0] sm:$0xff] %v478_v11  ;;  %v482_v13 = vld [vmem:[%s2787_s26 + $0x2d8] sm:$0xff]  ;;  %v484_v14 = vld [vmem:[%s2787_s26 + $0x310] sm:$0xff] }
  0x61   : >> { %481 = vst [vmem:[%s2783_s25 + $0xc0] sm:$0xff] %v480_v12  ;;  %483 = vst [vmem:[%s2783_s25 + $0xd0] sm:$0xff] %v482_v13  ;;  %v486_v15 = vld [vmem:[%s2787_s26 + $0x348] sm:$0xff]  ;;  %v488_v16 = vld [vmem:[%s2787_s26 + $0x380] sm:$0xff] }
  0x62   : >> { %485 = vst [vmem:[%s2783_s25 + $0xe0] sm:$0xff] %v484_v14  ;;  %v490_v17 = vld [vmem:[%s2787_s26 + $0x3b8] sm:$0xff]  ;;  %487 = vst [vmem:[%s2783_s25 + $0xf0] sm:$0xff] %v486_v15  ;;  %v492_v18 = vld [vmem:[%s2787_s26 + $0x3f0] sm:$0xff] }
  0x63   : >> { %489 = vst [vmem:[%s2783_s25 + $0x100] sm:$0xff] %v488_v16  ;;  %491 = vst [vmem:[%s2783_s25 + $0x110] sm:$0xff] %v490_v17  ;;  %v494_v19 = vld [vmem:[%s2787_s26 + $0x428] sm:$0xff]  ;;  %v496_v20 = vld [vmem:[%s2787_s26 + $0x460] sm:$0xff] }
  0x64   : >> { %493 = vst [vmem:[%s2783_s25 + $0x120] sm:$0xff] %v492_v18  ;;  %495 = vst [vmem:[%s2783_s25 + $0x130] sm:$0xff] %v494_v19  ;;  %v498_v21 = vld [vmem:[%s2787_s26 + $0x498] sm:$0xff]  ;;  %v500_v22 = vld [vmem:[%s2787_s26 + $0x4d0] sm:$0xff] }
  0x65   : >> { %497 = vst [vmem:[%s2783_s25 + $0x140] sm:$0xff] %v496_v20  ;;  %v502_v23 = vld [vmem:[%s2787_s26 + $0x508] sm:$0xff]  ;;  %499 = vst [vmem:[%s2783_s25 + $0x150] sm:$0xff] %v498_v21  ;;  %v504_v24 = vld [vmem:[%s2787_s26 + $0x540] sm:$0xff] }
  0x66   : >> { %501 = vst [vmem:[%s2783_s25 + $0x160] sm:$0xff] %v500_v22  ;;  %503 = vst [vmem:[%s2783_s25 + $0x170] sm:$0xff] %v502_v23  ;;  %v506_v25 = vld [vmem:[%s2787_s26 + $0x578] sm:$0xff]  ;;  %v508_v26 = vld [vmem:[%s2787_s26 + $0x5b0] sm:$0xff] }
  0x67   : >> { %505 = vst [vmem:[%s2783_s25 + $0x180] sm:$0xff] %v504_v24  ;;  %507 = vst [vmem:[%s2783_s25 + $0x190] sm:$0xff] %v506_v25  ;;  %v510_v27 = vld [vmem:[%s2787_s26 + $0x5e8] sm:$0xff]  ;;  %v512_v28 = vld [vmem:[%s2787_s26 + $0x620] sm:$0xff] }
  0x68   : >> { %509 = vst [vmem:[%s2783_s25 + $0x1a0] sm:$0xff] %v508_v26  ;;  %v514_v29 = vld [vmem:[%s2787_s26 + $0x658] sm:$0xff]  ;;  %511 = vst [vmem:[%s2783_s25 + $0x1b0] sm:$0xff] %v510_v27  ;;  %v516_v30 = vld [vmem:[%s2787_s26 + $0x690] sm:$0xff] }
  0x69   : >> { %513 = vst [vmem:[%s2783_s25 + $0x1c0] sm:$0xff] %v512_v28  ;;  %515 = vst [vmem:[%s2783_s25 + $0x1d0] sm:$0xff] %v514_v29  ;;  %v518_v31 = vld [vmem:[%s2787_s26 + $0x6c8] sm:$0xff]  ;;  %v520_v32 = vld [vmem:[%s2787_s26 + $0x700] sm:$0xff] }
  0x6a   : >> { %517 = vst [vmem:[%s2783_s25 + $0x1e0] sm:$0xff] %v516_v30  ;;  %519 = vst [vmem:[%s2783_s25 + $0x1f0] sm:$0xff] %v518_v31  ;;  %v522_v33 = vld [vmem:[%s2787_s26 + $0x738] sm:$0xff]  ;;  %v524_v34 = vld [vmem:[%s2787_s26 + $0x770] sm:$0xff] }
  0x6b   : >> { %521 = vst [vmem:[%s2783_s25 + $0x200] sm:$0xff] %v520_v32  ;;  %v526_v35 = vld [vmem:[%s2787_s26 + $0x7a8] sm:$0xff]  ;;  %523 = vst [vmem:[%s2783_s25 + $0x210] sm:$0xff] %v522_v33  ;;  %v528_v36 = vld [vmem:[%s2787_s26 + $0x7e0] sm:$0xff] }
  0x6c   : >> { %525 = vst [vmem:[%s2783_s25 + $0x220] sm:$0xff] %v524_v34  ;;  %527 = vst [vmem:[%s2783_s25 + $0x230] sm:$0xff] %v526_v35  ;;  %v530_v37 = vld [vmem:[%s2787_s26 + $0x818] sm:$0xff]  ;;  %v532_v38 = vld [vmem:[%s2787_s26 + $0x850] sm:$0xff] }
  0x6d   : >> { %529 = vst [vmem:[%s2783_s25 + $0x240] sm:$0xff] %v528_v36  ;;  %531 = vst [vmem:[%s2783_s25 + $0x250] sm:$0xff] %v530_v37  ;;  %v534_v39 = vld [vmem:[%s2787_s26 + $0x888] sm:$0xff]  ;;  %v536_v40 = vld [vmem:[%s2787_s26 + $0x8c0] sm:$0xff] }
  0x6e   : >> { %533 = vst [vmem:[%s2783_s25 + $0x260] sm:$0xff] %v532_v38  ;;  %v538_v41 = vld [vmem:[%s2787_s26 + $0x8f8] sm:$0xff]  ;;  %535 = vst [vmem:[%s2783_s25 + $0x270] sm:$0xff] %v534_v39  ;;  %v540_v42 = vld [vmem:[%s2787_s26 + $0x930] sm:$0xff] }
  0x6f   : >> { %537 = vst [vmem:[%s2783_s25 + $0x280] sm:$0xff] %v536_v40  ;;  %539 = vst [vmem:[%s2783_s25 + $0x290] sm:$0xff] %v538_v41  ;;  %v542_v43 = vld [vmem:[%s2787_s26 + $0x968] sm:$0xff]  ;;  %v544_v44 = vld [vmem:[%s2787_s26 + $0x9a0] sm:$0xff] }
  0x70   : >> { %541 = vst [vmem:[%s2783_s25 + $0x2a0] sm:$0xff] %v540_v42  ;;  %543 = vst [vmem:[%s2783_s25 + $0x2b0] sm:$0xff] %v542_v43  ;;  %v546_v45 = vld [vmem:[%s2787_s26 + $0x9d8] sm:$0xff]  ;;  %v548_v46 = vld [vmem:[%s2787_s26 + $0xa10] sm:$0xff] }
  0x71   : >> { %545 = vst [vmem:[%s2783_s25 + $0x2c0] sm:$0xff] %v544_v44  ;;  %v550_v47 = vld [vmem:[%s2787_s26 + $0xa48] sm:$0xff]  ;;  %547 = vst [vmem:[%s2783_s25 + $0x2d0] sm:$0xff] %v546_v45  ;;  %v552_v48 = vld [vmem:[%s2787_s26 + $0xa80] sm:$0xff] }
  0x72   : >> { %549 = vst [vmem:[%s2783_s25 + $0x2e0] sm:$0xff] %v548_v46  ;;  %551 = vst [vmem:[%s2783_s25 + $0x2f0] sm:$0xff] %v550_v47  ;;  %v554_v49 = vld [vmem:[%s2787_s26 + $0xab8] sm:$0xff]  ;;  %v556_v50 = vld [vmem:[%s2787_s26 + $0xaf0] sm:$0xff] }
  0x73   : >> { %553 = vst [vmem:[%s2783_s25 + $0x300] sm:$0xff] %v552_v48  ;;  %555 = vst [vmem:[%s2783_s25 + $0x310] sm:$0xff] %v554_v49  ;;  %v558_v51 = vld [vmem:[%s2787_s26 + $0xb28] sm:$0xff]  ;;  %v560_v52 = vld [vmem:[%s2787_s26 + $0xb60] sm:$0xff] }
  0x74   : >> { %557 = vst [vmem:[%s2783_s25 + $0x320] sm:$0xff] %v556_v50  ;;  %v562_v53 = vld [vmem:[%s2787_s26 + $0xb98] sm:$0xff]  ;;  %559 = vst [vmem:[%s2783_s25 + $0x330] sm:$0xff] %v558_v51  ;;  %v564_v54 = vld [vmem:[%s2787_s26 + $0xbd0] sm:$0xff]  ;;  %452 = sbr.rel (!%p449_p2) target bundleno = 90 (0x5a), region = 220 }
  0x75   : >> { %561 = vst [vmem:[%s2783_s25 + $0x340] sm:$0xff] %v560_v52  ;;  %563 = vst [vmem:[%s2783_s25 + $0x350] sm:$0xff] %v562_v53  ;;  %v566_v55 = vld [vmem:[%s2787_s26 + $0xc08] sm:$0xff]  ;;  %v568_v56 = vld [vmem:[%s2787_s26 + $0xc40] sm:$0xff] }
  0x76   : >> { %565 = vst [vmem:[%s2783_s25 + $0x360] sm:$0xff] %v564_v54  ;;  %567 = vst [vmem:[%s2783_s25 + $0x370] sm:$0xff] %v566_v55  ;;  %v570_v57 = vld [vmem:[%s2787_s26 + $0xc78] sm:$0xff]  ;;  %v572_v58 = vld [vmem:[%s2787_s26 + $0xcb0] sm:$0xff] }
  0x77   : >> { %569 = vst [vmem:[%s2783_s25 + $0x380] sm:$0xff] %v568_v56  ;;  %v574_v59 = vld [vmem:[%s2787_s26 + $0xce8] sm:$0xff]  ;;  %571 = vst [vmem:[%s2783_s25 + $0x390] sm:$0xff] %v570_v57  ;;  %v576_v60 = vld [vmem:[%s2787_s26 + $0xd20] sm:$0xff] }
  0x78   : >> { %573 = vst [vmem:[%s2783_s25 + $0x3a0] sm:$0xff] %v572_v58  ;;  %575 = vst [vmem:[%s2783_s25 + $0x3b0] sm:$0xff] %v574_v59  ;;  %v578_v61 = vld [vmem:[%s2787_s26 + $0xd58] sm:$0xff]  ;;  %v580_v62 = vld [vmem:[%s2787_s26 + $0xd90] sm:$0xff] }
  0x79   : >> { %577 = vst [vmem:[%s2783_s25 + $0x3c0] sm:$0xff] %v576_v60  ;;  %579 = vst [vmem:[%s2783_s25 + $0x3d0] sm:$0xff] %v578_v61  ;;  %v582_v63 = vld [vmem:[%s2787_s26 + $0xdc8] sm:$0xff]  ;;  %s4836_s26 = smov %s3191_s7 }
  0x7a   : >> { %581 = vst [vmem:[%s2783_s25 + $0x3e0] sm:$0xff] %v580_v62  ;;  %583 = vst [vmem:[%s2783_s25 + $0x3f0] sm:$0xff] %v582_v63  ;;  %s4835_s25 = smov %s3194_s8  ;;  %v600_v0 = vld [vmem:[%s3121_s23] sm:%s3300_s16] (%p449_p2) }
  0x7b   : > { %v602_v1 = vld [vmem:[%s3121_s23 + $0x38] sm:%s3300_s16]  ;;  %601 = vst [vmem:[%s3124_s24] sm:%s3300_s16] %v600_v0 }
  0x7c   : > { %603 = vst [vmem:[%s3124_s24 + $0x10] sm:%s3300_s16] %v602_v1  ;;  %v604_v2 = vld [vmem:[%s3121_s23 + $0x70] sm:%s3300_s16] }
  0x7d   : > { %v606_v3 = vld [vmem:[%s3121_s23 + $0xa8] sm:%s3300_s16]  ;;  %605 = vst [vmem:[%s3124_s24 + $0x20] sm:%s3300_s16] %v604_v2 }
  0x7e   : > { %607 = vst [vmem:[%s3124_s24 + $0x30] sm:%s3300_s16] %v606_v3  ;;  %v608_v4 = vld [vmem:[%s3121_s23 + $0xe0] sm:%s3300_s16] }
  0x7f   : > { %v610_v5 = vld [vmem:[%s3121_s23 + $0x118] sm:%s3300_s16]  ;;  %609 = vst [vmem:[%s3124_s24 + $0x40] sm:%s3300_s16] %v608_v4 }
  0x80   : > { %611 = vst [vmem:[%s3124_s24 + $0x50] sm:%s3300_s16] %v610_v5  ;;  %v612_v6 = vld [vmem:[%s3121_s23 + $0x150] sm:%s3300_s16] }
  0x81   : > { %v614_v7 = vld [vmem:[%s3121_s23 + $0x188] sm:%s3300_s16]  ;;  %613 = vst [vmem:[%s3124_s24 + $0x60] sm:%s3300_s16] %v612_v6 }
  0x82   : > { %615 = vst [vmem:[%s3124_s24 + $0x70] sm:%s3300_s16] %v614_v7  ;;  %v616_v8 = vld [vmem:[%s3121_s23 + $0x1c0] sm:%s3300_s16] }
  0x83   : > { %v618_v9 = vld [vmem:[%s3121_s23 + $0x1f8] sm:%s3300_s16]  ;;  %617 = vst [vmem:[%s3124_s24 + $0x80] sm:%s3300_s16] %v616_v8 }
  0x84   : > { %619 = vst [vmem:[%s3124_s24 + $0x90] sm:%s3300_s16] %v618_v9  ;;  %v620_v10 = vld [vmem:[%s3121_s23 + $0x230] sm:%s3300_s16] }
  0x85   : > { %v622_v11 = vld [vmem:[%s3121_s23 + $0x268] sm:%s3300_s16]  ;;  %621 = vst [vmem:[%s3124_s24 + $0xa0] sm:%s3300_s16] %v620_v10 }
  0x86   : > { %623 = vst [vmem:[%s3124_s24 + $0xb0] sm:%s3300_s16] %v622_v11  ;;  %v624_v12 = vld [vmem:[%s3121_s23 + $0x2a0] sm:%s3300_s16] }
  0x87   : > { %v626_v13 = vld [vmem:[%s3121_s23 + $0x2d8] sm:%s3300_s16]  ;;  %625 = vst [vmem:[%s3124_s24 + $0xc0] sm:%s3300_s16] %v624_v12 }
  0x88   : > { %627 = vst [vmem:[%s3124_s24 + $0xd0] sm:%s3300_s16] %v626_v13  ;;  %v628_v14 = vld [vmem:[%s3121_s23 + $0x310] sm:%s3300_s16] }
  0x89   : > { %v630_v15 = vld [vmem:[%s3121_s23 + $0x348] sm:%s3300_s16]  ;;  %629 = vst [vmem:[%s3124_s24 + $0xe0] sm:%s3300_s16] %v628_v14 }
  0x8a   : > { %631 = vst [vmem:[%s3124_s24 + $0xf0] sm:%s3300_s16] %v630_v15  ;;  %v632_v16 = vld [vmem:[%s3121_s23 + $0x380] sm:%s3300_s16] }
  0x8b   : > { %v634_v17 = vld [vmem:[%s3121_s23 + $0x3b8] sm:%s3300_s16]  ;;  %633 = vst [vmem:[%s3124_s24 + $0x100] sm:%s3300_s16] %v632_v16 }
  0x8c   : > { %635 = vst [vmem:[%s3124_s24 + $0x110] sm:%s3300_s16] %v634_v17  ;;  %v636_v18 = vld [vmem:[%s3121_s23 + $0x3f0] sm:%s3300_s16] }
  0x8d   : > { %v638_v19 = vld [vmem:[%s3121_s23 + $0x428] sm:%s3300_s16]  ;;  %637 = vst [vmem:[%s3124_s24 + $0x120] sm:%s3300_s16] %v636_v18 }
  0x8e   : > { %639 = vst [vmem:[%s3124_s24 + $0x130] sm:%s3300_s16] %v638_v19  ;;  %v640_v20 = vld [vmem:[%s3121_s23 + $0x460] sm:%s3300_s16] }
  0x8f   : > { %v642_v21 = vld [vmem:[%s3121_s23 + $0x498] sm:%s3300_s16]  ;;  %641 = vst [vmem:[%s3124_s24 + $0x140] sm:%s3300_s16] %v640_v20 }
  0x90   : > { %643 = vst [vmem:[%s3124_s24 + $0x150] sm:%s3300_s16] %v642_v21  ;;  %v644_v22 = vld [vmem:[%s3121_s23 + $0x4d0] sm:%s3300_s16] }
  0x91   : > { %v646_v23 = vld [vmem:[%s3121_s23 + $0x508] sm:%s3300_s16]  ;;  %645 = vst [vmem:[%s3124_s24 + $0x160] sm:%s3300_s16] %v644_v22 }
  0x92   : > { %647 = vst [vmem:[%s3124_s24 + $0x170] sm:%s3300_s16] %v646_v23  ;;  %v648_v24 = vld [vmem:[%s3121_s23 + $0x540] sm:%s3300_s16] }
  0x93   : > { %v650_v25 = vld [vmem:[%s3121_s23 + $0x578] sm:%s3300_s16]  ;;  %649 = vst [vmem:[%s3124_s24 + $0x180] sm:%s3300_s16] %v648_v24 }
  0x94   : > { %651 = vst [vmem:[%s3124_s24 + $0x190] sm:%s3300_s16] %v650_v25  ;;  %v652_v26 = vld [vmem:[%s3121_s23 + $0x5b0] sm:%s3300_s16] }
  0x95   : > { %v654_v27 = vld [vmem:[%s3121_s23 + $0x5e8] sm:%s3300_s16]  ;;  %653 = vst [vmem:[%s3124_s24 + $0x1a0] sm:%s3300_s16] %v652_v26 }
  0x96   : > { %655 = vst [vmem:[%s3124_s24 + $0x1b0] sm:%s3300_s16] %v654_v27  ;;  %v656_v28 = vld [vmem:[%s3121_s23 + $0x620] sm:%s3300_s16] }
  0x97   : > { %v658_v29 = vld [vmem:[%s3121_s23 + $0x658] sm:%s3300_s16]  ;;  %657 = vst [vmem:[%s3124_s24 + $0x1c0] sm:%s3300_s16] %v656_v28 }
  0x98   : > { %659 = vst [vmem:[%s3124_s24 + $0x1d0] sm:%s3300_s16] %v658_v29  ;;  %v660_v30 = vld [vmem:[%s3121_s23 + $0x690] sm:%s3300_s16] }
  0x99   : > { %v662_v31 = vld [vmem:[%s3121_s23 + $0x6c8] sm:%s3300_s16]  ;;  %661 = vst [vmem:[%s3124_s24 + $0x1e0] sm:%s3300_s16] %v660_v30 }
  0x9a   : > { %663 = vst [vmem:[%s3124_s24 + $0x1f0] sm:%s3300_s16] %v662_v31  ;;  %v664_v32 = vld [vmem:[%s3121_s23 + $0x700] sm:%s3300_s16] }
  0x9b   : > { %v666_v33 = vld [vmem:[%s3121_s23 + $0x738] sm:%s3300_s16]  ;;  %665 = vst [vmem:[%s3124_s24 + $0x200] sm:%s3300_s16] %v664_v32 }
  0x9c   : > { %667 = vst [vmem:[%s3124_s24 + $0x210] sm:%s3300_s16] %v666_v33  ;;  %v668_v34 = vld [vmem:[%s3121_s23 + $0x770] sm:%s3300_s16] }
  0x9d   : > { %v670_v35 = vld [vmem:[%s3121_s23 + $0x7a8] sm:%s3300_s16]  ;;  %669 = vst [vmem:[%s3124_s24 + $0x220] sm:%s3300_s16] %v668_v34 }
  0x9e   : > { %671 = vst [vmem:[%s3124_s24 + $0x230] sm:%s3300_s16] %v670_v35  ;;  %v672_v36 = vld [vmem:[%s3121_s23 + $0x7e0] sm:%s3300_s16] }
  0x9f   : > { %v674_v37 = vld [vmem:[%s3121_s23 + $0x818] sm:%s3300_s16]  ;;  %673 = vst [vmem:[%s3124_s24 + $0x240] sm:%s3300_s16] %v672_v36 }
  0xa0   : > { %675 = vst [vmem:[%s3124_s24 + $0x250] sm:%s3300_s16] %v674_v37  ;;  %v676_v38 = vld [vmem:[%s3121_s23 + $0x850] sm:%s3300_s16] }
  0xa1   : > { %v678_v39 = vld [vmem:[%s3121_s23 + $0x888] sm:%s3300_s16]  ;;  %677 = vst [vmem:[%s3124_s24 + $0x260] sm:%s3300_s16] %v676_v38 }
  0xa2   : > { %679 = vst [vmem:[%s3124_s24 + $0x270] sm:%s3300_s16] %v678_v39  ;;  %v680_v40 = vld [vmem:[%s3121_s23 + $0x8c0] sm:%s3300_s16] }
  0xa3   : > { %v682_v41 = vld [vmem:[%s3121_s23 + $0x8f8] sm:%s3300_s16]  ;;  %681 = vst [vmem:[%s3124_s24 + $0x280] sm:%s3300_s16] %v680_v40 }
  0xa4   : > { %683 = vst [vmem:[%s3124_s24 + $0x290] sm:%s3300_s16] %v682_v41  ;;  %v684_v42 = vld [vmem:[%s3121_s23 + $0x930] sm:%s3300_s16] }
  0xa5   : > { %v686_v43 = vld [vmem:[%s3121_s23 + $0x968] sm:%s3300_s16]  ;;  %685 = vst [vmem:[%s3124_s24 + $0x2a0] sm:%s3300_s16] %v684_v42 }
  0xa6   : > { %687 = vst [vmem:[%s3124_s24 + $0x2b0] sm:%s3300_s16] %v686_v43  ;;  %v688_v44 = vld [vmem:[%s3121_s23 + $0x9a0] sm:%s3300_s16] }
  0xa7   : > { %v690_v45 = vld [vmem:[%s3121_s23 + $0x9d8] sm:%s3300_s16]  ;;  %689 = vst [vmem:[%s3124_s24 + $0x2c0] sm:%s3300_s16] %v688_v44 }
  0xa8   : > { %691 = vst [vmem:[%s3124_s24 + $0x2d0] sm:%s3300_s16] %v690_v45  ;;  %v692_v46 = vld [vmem:[%s3121_s23 + $0xa10] sm:%s3300_s16] }
  0xa9   : > { %v694_v47 = vld [vmem:[%s3121_s23 + $0xa48] sm:%s3300_s16]  ;;  %693 = vst [vmem:[%s3124_s24 + $0x2e0] sm:%s3300_s16] %v692_v46 }
  0xaa   : > { %695 = vst [vmem:[%s3124_s24 + $0x2f0] sm:%s3300_s16] %v694_v47  ;;  %v696_v48 = vld [vmem:[%s3121_s23 + $0xa80] sm:%s3300_s16] }
  0xab   : > { %v698_v49 = vld [vmem:[%s3121_s23 + $0xab8] sm:%s3300_s16]  ;;  %697 = vst [vmem:[%s3124_s24 + $0x300] sm:%s3300_s16] %v696_v48 }
  0xac   : > { %699 = vst [vmem:[%s3124_s24 + $0x310] sm:%s3300_s16] %v698_v49  ;;  %v700_v50 = vld [vmem:[%s3121_s23 + $0xaf0] sm:%s3300_s16] }
  0xad   : > { %v702_v51 = vld [vmem:[%s3121_s23 + $0xb28] sm:%s3300_s16]  ;;  %701 = vst [vmem:[%s3124_s24 + $0x320] sm:%s3300_s16] %v700_v50 }
  0xae   : > { %703 = vst [vmem:[%s3124_s24 + $0x330] sm:%s3300_s16] %v702_v51  ;;  %v704_v52 = vld [vmem:[%s3121_s23 + $0xb60] sm:%s3300_s16] }
  0xaf   : > { %v706_v53 = vld [vmem:[%s3121_s23 + $0xb98] sm:%s3300_s16]  ;;  %705 = vst [vmem:[%s3124_s24 + $0x340] sm:%s3300_s16] %v704_v52 }
  0xb0   : > { %707 = vst [vmem:[%s3124_s24 + $0x350] sm:%s3300_s16] %v706_v53  ;;  %v708_v54 = vld [vmem:[%s3121_s23 + $0xbd0] sm:%s3300_s16] }
  0xb1   : > { %v710_v55 = vld [vmem:[%s3121_s23 + $0xc08] sm:%s3300_s16]  ;;  %709 = vst [vmem:[%s3124_s24 + $0x360] sm:%s3300_s16] %v708_v54 }
  0xb2   : > { %711 = vst [vmem:[%s3124_s24 + $0x370] sm:%s3300_s16] %v710_v55  ;;  %v712_v56 = vld [vmem:[%s3121_s23 + $0xc40] sm:%s3300_s16] }
  0xb3   : > { %v714_v57 = vld [vmem:[%s3121_s23 + $0xc78] sm:%s3300_s16]  ;;  %713 = vst [vmem:[%s3124_s24 + $0x380] sm:%s3300_s16] %v712_v56 }
  0xb4   : > { %715 = vst [vmem:[%s3124_s24 + $0x390] sm:%s3300_s16] %v714_v57  ;;  %v716_v58 = vld [vmem:[%s3121_s23 + $0xcb0] sm:%s3300_s16] }
  0xb5   : > { %v718_v59 = vld [vmem:[%s3121_s23 + $0xce8] sm:%s3300_s16]  ;;  %717 = vst [vmem:[%s3124_s24 + $0x3a0] sm:%s3300_s16] %v716_v58 }
  0xb6   : > { %719 = vst [vmem:[%s3124_s24 + $0x3b0] sm:%s3300_s16] %v718_v59  ;;  %v720_v60 = vld [vmem:[%s3121_s23 + $0xd20] sm:%s3300_s16] }
  0xb7   : > { %v722_v61 = vld [vmem:[%s3121_s23 + $0xd58] sm:%s3300_s16]  ;;  %721 = vst [vmem:[%s3124_s24 + $0x3c0] sm:%s3300_s16] %v720_v60 }
  0xb8   : > { %723 = vst [vmem:[%s3124_s24 + $0x3d0] sm:%s3300_s16] %v722_v61  ;;  %v724_v62 = vld [vmem:[%s3121_s23 + $0xd90] sm:%s3300_s16] }
  0xb9   : > { %v726_v63 = vld [vmem:[%s3121_s23 + $0xdc8] sm:%s3300_s16]  ;;  %725 = vst [vmem:[%s3124_s24 + $0x3e0] sm:%s3300_s16] %v724_v62 }
  0xba   : > { %727 = vst [vmem:[%s3124_s24 + $0x3f0] sm:%s3300_s16] %v726_v63 }
  0xbb PF: > { %p2192_p3 = scmp.ge.u32.totalorder %s2931_s29, 8 }
  0xbc   : > { %s2862_s3 = smov (!%p2192_p3), 0  }
  0xbd   : > { %146 = sbr.rel (%p2192_p3) target bundleno = 254 (0xfe), region = 36  ;;  %s3560_s17 = sshllo.u32 (!%p2192_p3), %s2862_s3, %s2931_s29 }
  0xbe   : > { %v156_v0 = vld [vmem:[%s2929_s27] sm:%s3560_s17] (!%p2192_p3)  ;;  %v158_v1 = vld [vmem:[%s2929_s27 + $0x38] sm:%s3560_s17] (!%p2192_p3) }
  0xbf   : > { %157 = vst [vmem:[%s2933_s30] sm:%s3560_s17] (!%p2192_p3), %v156_v0  ;;  %159 = vst [vmem:[%s2933_s30 + $0x10] sm:%s3560_s17] (!%p2192_p3), %v158_v1 }
  0xc0   : > { %v160_v2 = vld [vmem:[%s2929_s27 + $0x70] sm:%s3560_s17] (!%p2192_p3)  ;;  %v162_v3 = vld [vmem:[%s2929_s27 + $0xa8] sm:%s3560_s17] (!%p2192_p3) }
  0xc1   : > { %161 = vst [vmem:[%s2933_s30 + $0x20] sm:%s3560_s17] (!%p2192_p3), %v160_v2  ;;  %163 = vst [vmem:[%s2933_s30 + $0x30] sm:%s3560_s17] (!%p2192_p3), %v162_v3 }
  0xc2   : > { %v164_v4 = vld [vmem:[%s2929_s27 + $0xe0] sm:%s3560_s17] (!%p2192_p3)  ;;  %v166_v5 = vld [vmem:[%s2929_s27 + $0x118] sm:%s3560_s17] (!%p2192_p3) }
  0xc3   : > { %165 = vst [vmem:[%s2933_s30 + $0x40] sm:%s3560_s17] (!%p2192_p3), %v164_v4  ;;  %167 = vst [vmem:[%s2933_s30 + $0x50] sm:%s3560_s17] (!%p2192_p3), %v166_v5 }
  0xc4   : > { %v168_v6 = vld [vmem:[%s2929_s27 + $0x150] sm:%s3560_s17]  ;;  %v170_v7 = vld [vmem:[%s2929_s27 + $0x188] sm:%s3560_s17] }
  0xc5   : > { %169 = vst [vmem:[%s2933_s30 + $0x60] sm:%s3560_s17] %v168_v6  ;;  %171 = vst [vmem:[%s2933_s30 + $0x70] sm:%s3560_s17] %v170_v7 }
  0xc6   : > { %v172_v8 = vld [vmem:[%s2929_s27 + $0x1c0] sm:%s3560_s17]  ;;  %v174_v9 = vld [vmem:[%s2929_s27 + $0x1f8] sm:%s3560_s17] }
  0xc7   : > { %173 = vst [vmem:[%s2933_s30 + $0x80] sm:%s3560_s17] %v172_v8  ;;  %175 = vst [vmem:[%s2933_s30 + $0x90] sm:%s3560_s17] %v174_v9 }
  0xc8   : > { %v176_v10 = vld [vmem:[%s2929_s27 + $0x230] sm:%s3560_s17]  ;;  %v178_v11 = vld [vmem:[%s2929_s27 + $0x268] sm:%s3560_s17] }
  0xc9   : > { %177 = vst [vmem:[%s2933_s30 + $0xa0] sm:%s3560_s17] %v176_v10  ;;  %179 = vst [vmem:[%s2933_s30 + $0xb0] sm:%s3560_s17] %v178_v11 }
  0xca   : > { %v180_v12 = vld [vmem:[%s2929_s27 + $0x2a0] sm:%s3560_s17]  ;;  %v182_v13 = vld [vmem:[%s2929_s27 + $0x2d8] sm:%s3560_s17] }
  0xcb   : > { %181 = vst [vmem:[%s2933_s30 + $0xc0] sm:%s3560_s17] %v180_v12  ;;  %183 = vst [vmem:[%s2933_s30 + $0xd0] sm:%s3560_s17] %v182_v13 }
  0xcc   : > { %v184_v14 = vld [vmem:[%s2929_s27 + $0x310] sm:%s3560_s17]  ;;  %v186_v15 = vld [vmem:[%s2929_s27 + $0x348] sm:%s3560_s17] }
  0xcd   : > { %185 = vst [vmem:[%s2933_s30 + $0xe0] sm:%s3560_s17] %v184_v14  ;;  %187 = vst [vmem:[%s2933_s30 + $0xf0] sm:%s3560_s17] %v186_v15 }
  0xce   : > { %v188_v16 = vld [vmem:[%s2929_s27 + $0x380] sm:%s3560_s17]  ;;  %v190_v17 = vld [vmem:[%s2929_s27 + $0x3b8] sm:%s3560_s17] }
  0xcf   : > { %189 = vst [vmem:[%s2933_s30 + $0x100] sm:%s3560_s17] %v188_v16  ;;  %191 = vst [vmem:[%s2933_s30 + $0x110] sm:%s3560_s17] %v190_v17 }
  0xd0   : > { %v192_v18 = vld [vmem:[%s2929_s27 + $0x3f0] sm:%s3560_s17]  ;;  %v194_v19 = vld [vmem:[%s2929_s27 + $0x428] sm:%s3560_s17] }
  0xd1   : > { %193 = vst [vmem:[%s2933_s30 + $0x120] sm:%s3560_s17] %v192_v18  ;;  %195 = vst [vmem:[%s2933_s30 + $0x130] sm:%s3560_s17] %v194_v19 }
  0xd2   : > { %v196_v20 = vld [vmem:[%s2929_s27 + $0x460] sm:%s3560_s17]  ;;  %v198_v21 = vld [vmem:[%s2929_s27 + $0x498] sm:%s3560_s17] }
  0xd3   : > { %197 = vst [vmem:[%s2933_s30 + $0x140] sm:%s3560_s17] %v196_v20  ;;  %199 = vst [vmem:[%s2933_s30 + $0x150] sm:%s3560_s17] %v198_v21 }
  0xd4   : > { %v200_v22 = vld [vmem:[%s2929_s27 + $0x4d0] sm:%s3560_s17]  ;;  %v202_v23 = vld [vmem:[%s2929_s27 + $0x508] sm:%s3560_s17] }
  0xd5   : > { %201 = vst [vmem:[%s2933_s30 + $0x160] sm:%s3560_s17] %v200_v22  ;;  %203 = vst [vmem:[%s2933_s30 + $0x170] sm:%s3560_s17] %v202_v23 }
  0xd6   : > { %v204_v24 = vld [vmem:[%s2929_s27 + $0x540] sm:%s3560_s17]  ;;  %v206_v25 = vld [vmem:[%s2929_s27 + $0x578] sm:%s3560_s17] }
  0xd7   : > { %205 = vst [vmem:[%s2933_s30 + $0x180] sm:%s3560_s17] %v204_v24  ;;  %207 = vst [vmem:[%s2933_s30 + $0x190] sm:%s3560_s17] %v206_v25 }
  0xd8   : > { %v208_v26 = vld [vmem:[%s2929_s27 + $0x5b0] sm:%s3560_s17]  ;;  %v210_v27 = vld [vmem:[%s2929_s27 + $0x5e8] sm:%s3560_s17] }
  0xd9   : > { %209 = vst [vmem:[%s2933_s30 + $0x1a0] sm:%s3560_s17] %v208_v26  ;;  %211 = vst [vmem:[%s2933_s30 + $0x1b0] sm:%s3560_s17] %v210_v27 }
  0xda   : > { %v212_v28 = vld [vmem:[%s2929_s27 + $0x620] sm:%s3560_s17]  ;;  %v214_v29 = vld [vmem:[%s2929_s27 + $0x658] sm:%s3560_s17] }
  0xdb   : > { %213 = vst [vmem:[%s2933_s30 + $0x1c0] sm:%s3560_s17] %v212_v28  ;;  %215 = vst [vmem:[%s2933_s30 + $0x1d0] sm:%s3560_s17] %v214_v29 }
  0xdc   : > { %v216_v30 = vld [vmem:[%s2929_s27 + $0x690] sm:%s3560_s17]  ;;  %v218_v31 = vld [vmem:[%s2929_s27 + $0x6c8] sm:%s3560_s17] }
  0xdd   : > { %217 = vst [vmem:[%s2933_s30 + $0x1e0] sm:%s3560_s17] %v216_v30  ;;  %219 = vst [vmem:[%s2933_s30 + $0x1f0] sm:%s3560_s17] %v218_v31 }
  0xde   : > { %v220_v32 = vld [vmem:[%s2929_s27 + $0x700] sm:%s3560_s17]  ;;  %v222_v33 = vld [vmem:[%s2929_s27 + $0x738] sm:%s3560_s17] }
  0xdf   : > { %221 = vst [vmem:[%s2933_s30 + $0x200] sm:%s3560_s17] %v220_v32  ;;  %223 = vst [vmem:[%s2933_s30 + $0x210] sm:%s3560_s17] %v222_v33 }
  0xe0   : > { %v224_v34 = vld [vmem:[%s2929_s27 + $0x770] sm:%s3560_s17]  ;;  %v226_v35 = vld [vmem:[%s2929_s27 + $0x7a8] sm:%s3560_s17] }
  0xe1   : > { %225 = vst [vmem:[%s2933_s30 + $0x220] sm:%s3560_s17] %v224_v34  ;;  %227 = vst [vmem:[%s2933_s30 + $0x230] sm:%s3560_s17] %v226_v35 }
  0xe2   : > { %v228_v36 = vld [vmem:[%s2929_s27 + $0x7e0] sm:%s3560_s17]  ;;  %v230_v37 = vld [vmem:[%s2929_s27 + $0x818] sm:%s3560_s17] }
  0xe3   : > { %229 = vst [vmem:[%s2933_s30 + $0x240] sm:%s3560_s17] %v228_v36  ;;  %231 = vst [vmem:[%s2933_s30 + $0x250] sm:%s3560_s17] %v230_v37 }
  0xe4   : > { %v232_v38 = vld [vmem:[%s2929_s27 + $0x850] sm:%s3560_s17]  ;;  %v234_v39 = vld [vmem:[%s2929_s27 + $0x888] sm:%s3560_s17] }
  0xe5   : > { %233 = vst [vmem:[%s2933_s30 + $0x260] sm:%s3560_s17] %v232_v38  ;;  %235 = vst [vmem:[%s2933_s30 + $0x270] sm:%s3560_s17] %v234_v39 }
  0xe6   : > { %v236_v40 = vld [vmem:[%s2929_s27 + $0x8c0] sm:%s3560_s17]  ;;  %v238_v41 = vld [vmem:[%s2929_s27 + $0x8f8] sm:%s3560_s17] }
  0xe7   : > { %237 = vst [vmem:[%s2933_s30 + $0x280] sm:%s3560_s17] %v236_v40  ;;  %239 = vst [vmem:[%s2933_s30 + $0x290] sm:%s3560_s17] %v238_v41 }
  0xe8   : > { %v240_v42 = vld [vmem:[%s2929_s27 + $0x930] sm:%s3560_s17]  ;;  %v242_v43 = vld [vmem:[%s2929_s27 + $0x968] sm:%s3560_s17] }
  0xe9   : > { %241 = vst [vmem:[%s2933_s30 + $0x2a0] sm:%s3560_s17] %v240_v42  ;;  %243 = vst [vmem:[%s2933_s30 + $0x2b0] sm:%s3560_s17] %v242_v43 }
  0xea   : > { %v244_v44 = vld [vmem:[%s2929_s27 + $0x9a0] sm:%s3560_s17]  ;;  %v246_v45 = vld [vmem:[%s2929_s27 + $0x9d8] sm:%s3560_s17] }
  0xeb   : > { %245 = vst [vmem:[%s2933_s30 + $0x2c0] sm:%s3560_s17] %v244_v44  ;;  %247 = vst [vmem:[%s2933_s30 + $0x2d0] sm:%s3560_s17] %v246_v45 }
  0xec   : > { %v248_v46 = vld [vmem:[%s2929_s27 + $0xa10] sm:%s3560_s17]  ;;  %v250_v47 = vld [vmem:[%s2929_s27 + $0xa48] sm:%s3560_s17] }
  0xed   : > { %249 = vst [vmem:[%s2933_s30 + $0x2e0] sm:%s3560_s17] %v248_v46  ;;  %251 = vst [vmem:[%s2933_s30 + $0x2f0] sm:%s3560_s17] %v250_v47 }
  0xee   : > { %v252_v48 = vld [vmem:[%s2929_s27 + $0xa80] sm:%s3560_s17]  ;;  %v254_v49 = vld [vmem:[%s2929_s27 + $0xab8] sm:%s3560_s17] }
  0xef   : > { %253 = vst [vmem:[%s2933_s30 + $0x300] sm:%s3560_s17] %v252_v48  ;;  %255 = vst [vmem:[%s2933_s30 + $0x310] sm:%s3560_s17] %v254_v49 }
  0xf0   : > { %v256_v50 = vld [vmem:[%s2929_s27 + $0xaf0] sm:%s3560_s17]  ;;  %v258_v51 = vld [vmem:[%s2929_s27 + $0xb28] sm:%s3560_s17] }
  0xf1   : > { %257 = vst [vmem:[%s2933_s30 + $0x320] sm:%s3560_s17] %v256_v50  ;;  %259 = vst [vmem:[%s2933_s30 + $0x330] sm:%s3560_s17] %v258_v51 }
  0xf2   : > { %v260_v52 = vld [vmem:[%s2929_s27 + $0xb60] sm:%s3560_s17]  ;;  %v262_v53 = vld [vmem:[%s2929_s27 + $0xb98] sm:%s3560_s17] }
  0xf3   : > { %261 = vst [vmem:[%s2933_s30 + $0x340] sm:%s3560_s17] %v260_v52  ;;  %263 = vst [vmem:[%s2933_s30 + $0x350] sm:%s3560_s17] %v262_v53 }
  0xf4   : > { %v264_v54 = vld [vmem:[%s2929_s27 + $0xbd0] sm:%s3560_s17]  ;;  %v266_v55 = vld [vmem:[%s2929_s27 + $0xc08] sm:%s3560_s17] }
  0xf5   : > { %265 = vst [vmem:[%s2933_s30 + $0x360] sm:%s3560_s17] %v264_v54  ;;  %267 = vst [vmem:[%s2933_s30 + $0x370] sm:%s3560_s17] %v266_v55 }
  0xf6   : > { %v268_v56 = vld [vmem:[%s2929_s27 + $0xc40] sm:%s3560_s17]  ;;  %v270_v57 = vld [vmem:[%s2929_s27 + $0xc78] sm:%s3560_s17] }
  0xf7   : > { %269 = vst [vmem:[%s2933_s30 + $0x380] sm:%s3560_s17] %v268_v56  ;;  %271 = vst [vmem:[%s2933_s30 + $0x390] sm:%s3560_s17] %v270_v57 }
  0xf8   : > { %v272_v58 = vld [vmem:[%s2929_s27 + $0xcb0] sm:%s3560_s17]  ;;  %v274_v59 = vld [vmem:[%s2929_s27 + $0xce8] sm:%s3560_s17] }
  0xf9   : > { %273 = vst [vmem:[%s2933_s30 + $0x3a0] sm:%s3560_s17] %v272_v58  ;;  %275 = vst [vmem:[%s2933_s30 + $0x3b0] sm:%s3560_s17] %v274_v59 }
  0xfa   : > { %v276_v60 = vld [vmem:[%s2929_s27 + $0xd20] sm:%s3560_s17]  ;;  %v278_v61 = vld [vmem:[%s2929_s27 + $0xd58] sm:%s3560_s17] }
  0xfb   : > { %277 = vst [vmem:[%s2933_s30 + $0x3c0] sm:%s3560_s17] %v276_v60  ;;  %279 = vst [vmem:[%s2933_s30 + $0x3d0] sm:%s3560_s17] %v278_v61 }
  0xfc   : > { %v280_v62 = vld [vmem:[%s2929_s27 + $0xd90] sm:%s3560_s17]  ;;  %v282_v63 = vld [vmem:[%s2929_s27 + $0xdc8] sm:%s3560_s17] }
  0xfd   : > { %281 = vst [vmem:[%s2933_s30 + $0x3e0] sm:%s3560_s17] %v280_v62  ;;  %283 = vst [vmem:[%s2933_s30 + $0x3f0] sm:%s3560_s17] %v282_v63 }
  0xfe PF: > { %p2193_p4 = scmp.ge.s32.totalorder %s2763_s13, 1  ;;  %p730_p5 = scmp.lt.s32.totalorder %s2763_s13, 5 }
 0x100   : > { %p731_p7 = pnand %p2193_p4, %p730_p5 }
 0x101   : > { %s737_s29 = sand.u32 (!%p731_p7), 1, %s2747_s9   ;;  %v1024_v0 = vld [vmem:[%s4825_s1 + $0x8] sm:$0xff] (!%p731_p7)  ;;  %v1026_v1 = vld [vmem:[%s4825_s1 + $0x18] sm:$0xff] (!%p731_p7) }
 0x102   : > { %734 = sbr.rel (%p731_p7) target bundleno = 795 (0x31b), region = 76  ;;  %s2194_s30 = sshll.u32 (!%p731_p7), %s737_s29, 10  ;;  %1151 = vmatprep.mubr.f32.mxu1 (!%p731_p7), %v1024_v0  ;;  %1312 = vmatprep.mubr.f32.mxu0 (!%p731_p7), %v1026_v1 }
 0x103   : > { %s3829_s23 = scalar_lea.vmem (!%p731_p7), [#allocation2], %s2194_s30  ;;  %s2195_s16 = sshll.u32 (!%p731_p7), %s737_s29, 8 }
 0x104   : > { %v768_v2 = vld [vmem:[%s3829_s23 + $0x8] sm:$0xff] (!%p731_p7)  ;;  %v770_v3 = vld [vmem:[%s3829_s23 + $0x18] sm:$0xff] (!%p731_p7)  ;;  %v767_v9 = vld [vmem:[%s3829_s23] sm:$0xff] (!%p731_p7)  ;;  %s4147_s3 = scalar_lea.vmem (!%p731_p7), [#allocation3], %s2195_s16  }
 0x105   : > { %v832_v4 = vld [vmem:[%s3829_s23 + $0x208] sm:$0xff] (!%p731_p7)  ;;  %v896_v5 = vmax.f32 (!%p731_p7), %v768_v2, 0.0  ;;  %v898_v6 = vmax.f32 (!%p731_p7), %v770_v3, 0.0  ;;  %v834_v7 = vld [vmem:[%s3829_s23 + $0x218] sm:$0xff] (!%p731_p7)  ;;  %v769_v10 = vld [vmem:[%s3829_s23 + $0x10] sm:$0xff] (!%p731_p7)  ;;  %v895_v12 = vmax.f32 (!%p731_p7), %v767_v9, 0.0 }
 0x106   : > { %v960_v8 = vmax.f32 (!%p731_p7), %v832_v4, 0.0  ;;  %v962_v11 = vmax.f32 (!%p731_p7), %v834_v7, 0.0  ;;  %v897_v13 = vmax.f32 (!%p731_p7), %v769_v10, 0.0  ;;  %v831_v14 = vld [vmem:[%s3829_s23 + $0x200] sm:$0xff] (!%p731_p7)  ;;  %v833_v15 = vld [vmem:[%s3829_s23 + $0x210] sm:$0xff] (!%p731_p7)  ;;  %v772_v16 = vld [vmem:[%s3829_s23 + $0x28] sm:$0xff] (!%p731_p7) }
 0x107   : > { %v2231_v17 = vpack.c.bf16 (!%p731_p7), %v898_v6, %v896_v5  ;;  %v959_v18 = vmax.f32 (!%p731_p7), %v831_v14, 0.0  ;;  %v961_v19 = vmax.f32 (!%p731_p7), %v833_v15, 0.0  ;;  %v774_v20 = vld [vmem:[%s3829_s23 + $0x38] sm:$0xff] (!%p731_p7)  ;;  %v900_v21 = vmax.f32 (!%p731_p7), %v772_v16, 0.0  ;;  %v836_v22 = vld [vmem:[%s3829_s23 + $0x228] sm:$0xff] (!%p731_p7)  ;;  %v771_v28 = vld [vmem:[%s3829_s23 + $0x20] sm:$0xff] (!%p731_p7) }
 0x108   : > { %v838_v23 = vld [vmem:[%s3829_s23 + $0x238] sm:$0xff] (!%p731_p7)  ;;  %v2295_v24 = vpack.c.bf16 (!%p731_p7), %v962_v11, %v960_v8  ;;  %v2233_v25 = vpack.c.bf16 (!%p731_p7), %v897_v13, %v895_v12  ;;  %v902_v26 = vmax.f32 (!%p731_p7), %v774_v20, 0.0  ;;  %v964_v27 = vmax.f32 (!%p731_p7), %v836_v22, 0.0  ;;  %v773_v29 = vld [vmem:[%s3829_s23 + $0x30] sm:$0xff] (!%p731_p7)  ;;  %v835_v30 = vld [vmem:[%s3829_s23 + $0x220] sm:$0xff] (!%p731_p7) }
 0x109   : > { %2232 = vmatprep.subr.bf16.mxu1 %v2231_v17  ;;  %v2297_v31 = vpack.c.bf16 %v961_v19, %v959_v18  ;;  %v966_v32 = vmax.f32 %v838_v23, 0.0  ;;  %v899_v33 = vmax.f32 %v771_v28, 0.0  ;;  %v901_v34 = vmax.f32 %v773_v29, 0.0  ;;  %v837_v35 = vld [vmem:[%s3829_s23 + $0x230] sm:$0xff]  ;;  %v776_v36 = vld [vmem:[%s3829_s23 + $0x48] sm:$0xff]  ;;  %v778_v37 = vld [vmem:[%s3829_s23 + $0x58] sm:$0xff] }
 0x10a   : > { %2296 = vmatprep.subr.bf16.mxu0 %v2295_v24  ;;  %2234 = vmatpush1.bf16.msra.mxu1 %v2233_v25  ;;  %v2235_v38 = vpack.c.bf16 %v902_v26, %v900_v21  ;;  %v963_v39 = vmax.f32 %v835_v30, 0.0  ;;  %v965_v40 = vmax.f32 %v837_v35, 0.0  ;;  %v904_v41 = vmax.f32 %v776_v36, 0.0  ;;  %v840_v42 = vld [vmem:[%s3829_s23 + $0x248] sm:$0xff]  ;;  %v842_v43 = vld [vmem:[%s3829_s23 + $0x258] sm:$0xff]  ;;  %v775_v44 = vld [vmem:[%s3829_s23 + $0x40] sm:$0xff] }
 0x10b   : > { %2298 = vmatpush1.bf16.msra.mxu0 %v2297_v31  ;;  %v2299_v45 = vpack.c.bf16 %v966_v32, %v964_v27  ;;  %v2237_v46 = vpack.c.bf16 %v901_v34, %v899_v33  ;;  %v906_v47 = vmax.f32 %v778_v37, 0.0  ;;  %v968_v48 = vmax.f32 %v840_v42, 0.0  ;;  %v777_v49 = vld [vmem:[%s3829_s23 + $0x50] sm:$0xff]  ;;  %v839_v50 = vld [vmem:[%s3829_s23 + $0x240] sm:$0xff]  ;;  %v780_v56 = vld [vmem:[%s3829_s23 + $0x68] sm:$0xff]  ;;  %s2197_s9 = sshll.u32 (%p2915_p6), %s2755_s11, 1 }
 0x10c   : > { %v841_v51 = vld [vmem:[%s3829_s23 + $0x250] sm:$0xff]  ;;  %2236 = vmatprep.subr.bf16.mxu1 %v2235_v38  ;;  %v2301_v52 = vpack.c.bf16 %v965_v40, %v963_v39  ;;  %v970_v53 = vmax.f32 %v842_v43, 0.0  ;;  %v903_v54 = vmax.f32 %v775_v44, 0.0  ;;  %v905_v55 = vmax.f32 %v777_v49, 0.0  ;;  %v782_v57 = vld [vmem:[%s3829_s23 + $0x78] sm:$0xff]  ;;  %v844_v58 = vld [vmem:[%s3829_s23 + $0x268] sm:$0xff] }
 0x10d   : > { %2300 = vmatprep.subr.bf16.mxu0 %v2299_v45  ;;  %v2239_v59 = vpack.c.bf16 %v906_v47, %v904_v41  ;;  %v967_v60 = vmax.f32 %v839_v50, 0.0  ;;  %v969_v61 = vmax.f32 %v841_v51, 0.0  ;;  %v908_v62 = vmax.f32 %v780_v56, 0.0  ;;  %v846_v63 = vld [vmem:[%s3829_s23 + $0x278] sm:$0xff]  ;;  %v779_v0 = vld [vmem:[%s3829_s23 + $0x60] sm:$0xff]  ;;  %v781_v1 = vld [vmem:[%s3829_s23 + $0x70] sm:$0xff] }
 0x10e   : > { %2238 = vmatpush1.bf16.msra.mxu1 %v2237_v46  ;;  %v2303_v2 = vpack.c.bf16 %v970_v53, %v968_v48  ;;  %v2241_v3 = vpack.c.bf16 %v905_v55, %v903_v54  ;;  %v910_v4 = vmax.f32 %v782_v57, 0.0  ;;  %v972_v5 = vmax.f32 %v844_v58, 0.0  ;;  %v843_v6 = vld [vmem:[%s3829_s23 + $0x260] sm:$0xff]  ;;  %v845_v7 = vld [vmem:[%s3829_s23 + $0x270] sm:$0xff]  ;;  %v784_v8 = vld [vmem:[%s3829_s23 + $0x88] sm:$0xff]  ;;  %s2226_s29 = sshll.u32 (%p2915_p6), %s2755_s11, 4 }
 0x10f   : > { %2302 = vmatpush1.bf16.msra.mxu0 %v2301_v52  ;;  %2240 = vmatprep.subr.bf16.mxu1 %v2239_v59  ;;  %v2305_v9 = vpack.c.bf16 %v969_v61, %v967_v60  ;;  %v974_v10 = vmax.f32 %v846_v63, 0.0  ;;  %v907_v11 = vmax.f32 %v779_v0, 0.0  ;;  %v909_v12 = vmax.f32 %v781_v1, 0.0  ;;  %v786_v13 = vld [vmem:[%s3829_s23 + $0x98] sm:$0xff]  ;;  %v848_v14 = vld [vmem:[%s3829_s23 + $0x288] sm:$0xff]  ;;  %v783_v20 = vld [vmem:[%s3829_s23 + $0x80] sm:$0xff]  ;;  %s4188_s27 = scalar_lea.vmem (%p2915_p6), %s4826_s2, %s2226_s29  }
 0x110   : > { %v850_v15 = vld [vmem:[%s3829_s23 + $0x298] sm:$0xff]  ;;  %2304 = vmatprep.subr.bf16.mxu0 %v2303_v2  ;;  %v2243_v16 = vpack.c.bf16 %v910_v4, %v908_v62  ;;  %v971_v17 = vmax.f32 %v843_v6, 0.0  ;;  %v973_v18 = vmax.f32 %v845_v7, 0.0  ;;  %v912_v19 = vmax.f32 %v784_v8, 0.0  ;;  %v785_v21 = vld [vmem:[%s3829_s23 + $0x90] sm:$0xff]  ;;  %v847_v22 = vld [vmem:[%s3829_s23 + $0x280] sm:$0xff] }
 0x111   : > { %v2307_v23 = vpack.c.bf16 %v974_v10, %v972_v5  ;;  %v2245_v24 = vpack.c.bf16 %v909_v12, %v907_v11  ;;  %v914_v25 = vmax.f32 %v786_v13, 0.0  ;;  %v976_v26 = vmax.f32 %v848_v14, 0.0  ;;  %v849_v27 = vld [vmem:[%s3829_s23 + $0x290] sm:$0xff]  ;;  %v788_v28 = vld [vmem:[%s3829_s23 + $0xa8] sm:$0xff]  ;;  %v790_v29 = vld [vmem:[%s3829_s23 + $0xb8] sm:$0xff]  ;;  %s1449_s17 = ssub.s32 (%p2915_p6), 7, %s2197_s9 }
 0x112   : > { %2242 = vmatpush1.bf16.msra.mxu1 %v2241_v3  ;;  %v2309_v30 = vpack.c.bf16 %v973_v18, %v971_v17  ;;  %v978_v31 = vmax.f32 %v850_v15, 0.0  ;;  %v911_v32 = vmax.f32 %v783_v20, 0.0  ;;  %v913_v33 = vmax.f32 %v785_v21, 0.0  ;;  %v852_v34 = vld [vmem:[%s3829_s23 + $0x2a8] sm:$0xff]  ;;  %v854_v35 = vld [vmem:[%s3829_s23 + $0x2b8] sm:$0xff]  ;;  %v787_v36 = vld [vmem:[%s3829_s23 + $0xa0] sm:$0xff] }
 0x113   : > { %2306 = vmatpush1.bf16.msra.mxu0 %v2305_v9  ;;  %2244 = vmatprep.subr.bf16.mxu1 %v2243_v16  ;;  %v2247_v37 = vpack.c.bf16 %v914_v25, %v912_v19  ;;  %v975_v38 = vmax.f32 %v847_v22, 0.0  ;;  %v977_v39 = vmax.f32 %v849_v27, 0.0  ;;  %v916_v40 = vmax.f32 %v788_v28, 0.0  ;;  %v789_v41 = vld [vmem:[%s3829_s23 + $0xb0] sm:$0xff]  ;;  %v851_v42 = vld [vmem:[%s3829_s23 + $0x2a0] sm:$0xff]  ;;  %v792_v47 = vld [vmem:[%s3829_s23 + $0xc8] sm:$0xff] }
 0x114   : > { %v853_v43 = vld [vmem:[%s3829_s23 + $0x2b0] sm:$0xff]  ;;  %2308 = vmatprep.subr.bf16.mxu0 %v2307_v23  ;;  %v2311_v44 = vpack.c.bf16 %v978_v31, %v976_v26  ;;  %v918_v45 = vmax.f32 %v790_v29, 0.0  ;;  %v980_v46 = vmax.f32 %v852_v34, 0.0  ;;  %v794_v48 = vld [vmem:[%s3829_s23 + $0xd8] sm:$0xff]  ;;  %v2249_v49 = vpack.c.bf16 %v913_v33, %v911_v32  ;;  %v856_v51 = vld [vmem:[%s3829_s23 + $0x2c8] sm:$0xff]  ;;  %p1450_p8 = scmp.lt.s32.totalorder (%p2915_p6), %s1449_s17, 2 }
 0x115   : > { %v982_v50 = vmax.f32 %v854_v35, 0.0  ;;  %v858_v52 = vld [vmem:[%s3829_s23 + $0x2d8] sm:$0xff]  ;;  %v915_v53 = vmax.f32 %v787_v36, 0.0  ;;  %v917_v54 = vmax.f32 %v789_v41, 0.0  ;;  %v979_v55 = vmax.f32 %v851_v42, 0.0  ;;  %v791_v57 = vld [vmem:[%s3829_s23 + $0xc0] sm:$0xff] }
 0x116   : > { %2246 = vmatpush1.bf16.msra.mxu1 %v2245_v24  ;;  %v981_v56 = vmax.f32 %v853_v43, 0.0  ;;  %v793_v58 = vld [vmem:[%s3829_s23 + $0xd0] sm:$0xff]  ;;  %v2313_v59 = vpack.c.bf16 %v977_v39, %v975_v38  ;;  %v2251_v60 = vpack.c.bf16 %v918_v45, %v916_v40  ;;  %v920_v61 = vmax.f32 %v792_v47, 0.0  ;;  %v855_v63 = vld [vmem:[%s3829_s23 + $0x2c0] sm:$0xff]  ;;  %v796_v4 = vld [vmem:[%s3829_s23 + $0xe8] sm:$0xff] }
 0x117   : > { %2310 = vmatpush1.bf16.msra.mxu0 %v2309_v30  ;;  %2248 = vmatprep.subr.bf16.mxu1 %v2247_v37  ;;  %v922_v62 = vmax.f32 %v794_v48, 0.0  ;;  %v2315_v0 = vpack.c.bf16 %v982_v50, %v980_v46  ;;  %v984_v1 = vmax.f32 %v856_v51, 0.0  ;;  %v986_v2 = vmax.f32 %v858_v52, 0.0  ;;  %v857_v3 = vld [vmem:[%s3829_s23 + $0x2d0] sm:$0xff]  ;;  %v798_v5 = vld [vmem:[%s3829_s23 + $0xf8] sm:$0xff]  ;;  %v860_v8 = vld [vmem:[%s3829_s23 + $0x2e8] sm:$0xff] }
 0x118   : > { %2312 = vmatprep.subr.bf16.mxu0 %v2311_v44  ;;  %v919_v6 = vmax.f32 %v791_v57, 0.0  ;;  %v921_v7 = vmax.f32 %v793_v58, 0.0  ;;  %v862_v9 = vld [vmem:[%s3829_s23 + $0x2f8] sm:$0xff]  ;;  %v2253_v10 = vpack.c.bf16 %v917_v54, %v915_v53  ;;  %v2317_v11 = vpack.c.bf16 %v981_v56, %v979_v55  ;;  %v795_v13 = vld [vmem:[%s3829_s23 + $0xe0] sm:$0xff]  ;;  %v797_v14 = vld [vmem:[%s3829_s23 + $0xf0] sm:$0xff] }
 0x119   : > { %v983_v12 = vmax.f32 %v855_v63, 0.0  ;;  %v859_v15 = vld [vmem:[%s3829_s23 + $0x2e0] sm:$0xff]  ;;  %v2255_v16 = vpack.c.bf16 %v922_v62, %v920_v61  ;;  %v985_v17 = vmax.f32 %v857_v3, 0.0  ;;  %v924_v18 = vmax.f32 %v796_v4, 0.0  ;;  %v861_v20 = vld [vmem:[%s3829_s23 + $0x2f0] sm:$0xff]  ;;  %v800_v21 = vld [vmem:[%s3829_s23 + $0x108] sm:$0xff] }
 0x11a   : > { %2250 = vmatpush1.bf16.msra.mxu1 %v2249_v49  ;;  %v926_v19 = vmax.f32 %v798_v5, 0.0  ;;  %v802_v22 = vld [vmem:[%s3829_s23 + $0x118] sm:$0xff]  ;;  %v2319_v23 = vpack.c.bf16 %v986_v2, %v984_v1  ;;  %v988_v24 = vmax.f32 %v860_v8, 0.0  ;;  %v990_v25 = vmax.f32 %v862_v9, 0.0  ;;  %v864_v29 = vld [vmem:[%s3829_s23 + $0x308] sm:$0xff]  ;;  %v799_v35 = vld [vmem:[%s3829_s23 + $0x100] sm:$0xff] }
 0x11b   : > { %2314 = vmatpush1.bf16.msra.mxu0 %v2313_v59  ;;  %2252 = vmatprep.subr.bf16.mxu1 %v2251_v60  ;;  %v2257_v26 = vpack.c.bf16 %v921_v7, %v919_v6  ;;  %v923_v27 = vmax.f32 %v795_v13, 0.0  ;;  %v925_v28 = vmax.f32 %v797_v14, 0.0  ;;  %v866_v30 = vld [vmem:[%s3829_s23 + $0x318] sm:$0xff]  ;;  %v987_v31 = vmax.f32 %v859_v15, 0.0  ;;  %v801_v36 = vld [vmem:[%s3829_s23 + $0x110] sm:$0xff]  ;;  %v863_v39 = vld [vmem:[%s3829_s23 + $0x300] sm:$0xff] }
 0x11c   : > { %2316 = vmatprep.subr.bf16.mxu0 %v2315_v0  ;;  %v989_v32 = vmax.f32 %v861_v20, 0.0  ;;  %v928_v33 = vmax.f32 %v800_v21, 0.0  ;;  %v930_v34 = vmax.f32 %v802_v22, 0.0  ;;  %v2321_v37 = vpack.c.bf16 %v985_v17, %v983_v12  ;;  %v865_v43 = vld [vmem:[%s3829_s23 + $0x310] sm:$0xff]  ;;  %v804_v44 = vld [vmem:[%s3829_s23 + $0x128] sm:$0xff]  ;;  %v806_v45 = vld [vmem:[%s3829_s23 + $0x138] sm:$0xff] }
 0x11d   : > { %v2259_v38 = vpack.c.bf16 %v926_v19, %v924_v18  ;;  %v2323_v40 = vpack.c.bf16 %v990_v25, %v988_v24  ;;  %v992_v41 = vmax.f32 %v864_v29, 0.0  ;;  %v994_v42 = vmax.f32 %v866_v30, 0.0  ;;  %v868_v48 = vld [vmem:[%s3829_s23 + $0x328] sm:$0xff]  ;;  %v870_v49 = vld [vmem:[%s3829_s23 + $0x338] sm:$0xff]  ;;  %v803_v50 = vld [vmem:[%s3829_s23 + $0x120] sm:$0xff] }
 0x11e   : > { %2254 = vmatpush1.bf16.msra.mxu1 %v2253_v10  ;;  %v927_v46 = vmax.f32 %v799_v35, 0.0  ;;  %v929_v47 = vmax.f32 %v801_v36, 0.0  ;;  %v2261_v51 = vpack.c.bf16 %v925_v28, %v923_v27  ;;  %v2325_v52 = vpack.c.bf16 %v989_v32, %v987_v31  ;;  %v805_v54 = vld [vmem:[%s3829_s23 + $0x130] sm:$0xff]  ;;  %v867_v55 = vld [vmem:[%s3829_s23 + $0x320] sm:$0xff]  ;;  %v808_v61 = vld [vmem:[%s3829_s23 + $0x148] sm:$0xff] }
 0x11f   : > { %2318 = vmatpush1.bf16.msra.mxu0 %v2317_v11  ;;  %2256 = vmatprep.subr.bf16.mxu1 %v2255_v16  ;;  %v2263_v53 = vpack.c.bf16 %v930_v34, %v928_v33  ;;  %v869_v56 = vld [vmem:[%s3829_s23 + $0x330] sm:$0xff]  ;;  %v991_v57 = vmax.f32 %v863_v39, 0.0  ;;  %v993_v58 = vmax.f32 %v865_v43, 0.0  ;;  %v932_v59 = vmax.f32 %v804_v44, 0.0  ;;  %v810_v62 = vld [vmem:[%s3829_s23 + $0x158] sm:$0xff]  ;;  %v872_v5 = vld [vmem:[%s3829_s23 + $0x348] sm:$0xff] }
 0x120   : > { %2320 = vmatprep.subr.bf16.mxu0 %v2319_v23  ;;  %v934_v60 = vmax.f32 %v806_v45, 0.0  ;;  %v2327_v63 = vpack.c.bf16 %v994_v42, %v992_v41  ;;  %v996_v0 = vmax.f32 %v868_v48, 0.0  ;;  %v998_v1 = vmax.f32 %v870_v49, 0.0  ;;  %v874_v6 = vld [vmem:[%s3829_s23 + $0x358] sm:$0xff]  ;;  %v807_v11 = vld [vmem:[%s3829_s23 + $0x140] sm:$0xff]  ;;  %v809_v12 = vld [vmem:[%s3829_s23 + $0x150] sm:$0xff] }
 0x121   : > { %v2265_v2 = vpack.c.bf16 %v929_v47, %v927_v46  ;;  %v931_v3 = vmax.f32 %v803_v50, 0.0  ;;  %v933_v4 = vmax.f32 %v805_v54, 0.0  ;;  %v995_v7 = vmax.f32 %v867_v55, 0.0  ;;  %v871_v15 = vld [vmem:[%s3829_s23 + $0x340] sm:$0xff]  ;;  %v873_v19 = vld [vmem:[%s3829_s23 + $0x350] sm:$0xff]  ;;  %v812_v20 = vld [vmem:[%s3829_s23 + $0x168] sm:$0xff] }
 0x122   : > { %2258 = vmatpush1.bf16.msra.mxu1 %v2257_v26  ;;  %v997_v8 = vmax.f32 %v869_v56, 0.0  ;;  %v936_v9 = vmax.f32 %v808_v61, 0.0  ;;  %v938_v10 = vmax.f32 %v810_v62, 0.0  ;;  %v2329_v13 = vpack.c.bf16 %v993_v58, %v991_v57  ;;  %v814_v21 = vld [vmem:[%s3829_s23 + $0x178] sm:$0xff]  ;;  %v876_v24 = vld [vmem:[%s3829_s23 + $0x368] sm:$0xff]  ;;  %v811_v26 = vld [vmem:[%s3829_s23 + $0x160] sm:$0xff] }
 0x123   : > { %2322 = vmatpush1.bf16.msra.mxu0 %v2321_v37  ;;  %2260 = vmatprep.subr.bf16.mxu1 %v2259_v38  ;;  %v2267_v14 = vpack.c.bf16 %v934_v60, %v932_v59  ;;  %v2331_v16 = vpack.c.bf16 %v998_v1, %v996_v0  ;;  %v1000_v17 = vmax.f32 %v872_v5, 0.0  ;;  %v1002_v18 = vmax.f32 %v874_v6, 0.0  ;;  %v878_v25 = vld [vmem:[%s3829_s23 + $0x378] sm:$0xff]  ;;  %v813_v30 = vld [vmem:[%s3829_s23 + $0x170] sm:$0xff]  ;;  %v875_v31 = vld [vmem:[%s3829_s23 + $0x360] sm:$0xff] }
 0x124   : > { %2324 = vmatprep.subr.bf16.mxu0 %v2323_v40  ;;  %v935_v22 = vmax.f32 %v807_v11, 0.0  ;;  %v937_v23 = vmax.f32 %v809_v12, 0.0  ;;  %v2269_v27 = vpack.c.bf16 %v933_v4, %v931_v3  ;;  %v2333_v28 = vpack.c.bf16 %v997_v8, %v995_v7  ;;  %v877_v32 = vld [vmem:[%s3829_s23 + $0x370] sm:$0xff]  ;;  %v816_v37 = vld [vmem:[%s3829_s23 + $0x188] sm:$0xff]  ;;  %v818_v38 = vld [vmem:[%s3829_s23 + $0x198] sm:$0xff] }
 0x125   : > { %v2271_v29 = vpack.c.bf16 %v938_v10, %v936_v9  ;;  %v999_v33 = vmax.f32 %v871_v15, 0.0  ;;  %v1001_v34 = vmax.f32 %v873_v19, 0.0  ;;  %v940_v35 = vmax.f32 %v812_v20, 0.0  ;;  %v880_v45 = vld [vmem:[%s3829_s23 + $0x388] sm:$0xff]  ;;  %v882_v46 = vld [vmem:[%s3829_s23 + $0x398] sm:$0xff]  ;;  %v879_v55 = vld [vmem:[%s3829_s23 + $0x380] sm:$0xff] }
 0x126   : > { %2262 = vmatpush1.bf16.msra.mxu1 %v2261_v51  ;;  %v942_v36 = vmax.f32 %v814_v21, 0.0  ;;  %v2335_v39 = vpack.c.bf16 %v1002_v18, %v1000_v17  ;;  %v1004_v40 = vmax.f32 %v876_v24, 0.0  ;;  %v1006_v41 = vmax.f32 %v878_v25, 0.0  ;;  %v815_v51 = vld [vmem:[%s3829_s23 + $0x180] sm:$0xff]  ;;  %v881_v59 = vld [vmem:[%s3829_s23 + $0x390] sm:$0xff]  ;;  %v820_v60 = vld [vmem:[%s3829_s23 + $0x1a8] sm:$0xff] }
 0x127   : > { %2326 = vmatpush1.bf16.msra.mxu0 %v2325_v52  ;;  %2264 = vmatprep.subr.bf16.mxu1 %v2263_v53  ;;  %v2273_v42 = vpack.c.bf16 %v937_v23, %v935_v22  ;;  %v939_v43 = vmax.f32 %v811_v26, 0.0  ;;  %v941_v44 = vmax.f32 %v813_v30, 0.0  ;;  %v1003_v47 = vmax.f32 %v875_v31, 0.0  ;;  %v817_v52 = vld [vmem:[%s3829_s23 + $0x190] sm:$0xff]  ;;  %v822_v61 = vld [vmem:[%s3829_s23 + $0x1b8] sm:$0xff]  ;;  %v884_v0 = vld [vmem:[%s3829_s23 + $0x3a8] sm:$0xff] }
 0x128   : > { %2328 = vmatprep.subr.bf16.mxu0 %v2327_v63  ;;  %v1005_v48 = vmax.f32 %v877_v32, 0.0  ;;  %v944_v49 = vmax.f32 %v816_v37, 0.0  ;;  %v946_v50 = vmax.f32 %v818_v38, 0.0  ;;  %v2337_v53 = vpack.c.bf16 %v1001_v34, %v999_v33  ;;  %v886_v1 = vld [vmem:[%s3829_s23 + $0x3b8] sm:$0xff]  ;;  %v821_v6 = vld [vmem:[%s3829_s23 + $0x1b0] sm:$0xff]  ;;  %v883_v7 = vld [vmem:[%s3829_s23 + $0x3a0] sm:$0xff] }
 0x129   : > { %v2275_v54 = vpack.c.bf16 %v942_v36, %v940_v35  ;;  %v2339_v56 = vpack.c.bf16 %v1006_v41, %v1004_v40  ;;  %v1008_v57 = vmax.f32 %v880_v45, 0.0  ;;  %v1010_v58 = vmax.f32 %v882_v46, 0.0  ;;  %v885_v8 = vld [vmem:[%s3829_s23 + $0x3b0] sm:$0xff]  ;;  %v888_v21 = vld [vmem:[%s3829_s23 + $0x3c8] sm:$0xff]  ;;  %v890_v22 = vld [vmem:[%s3829_s23 + $0x3d8] sm:$0xff] }
 0x12a   : > { %2266 = vmatpush1.bf16.msra.mxu1 %v2265_v2  ;;  %v943_v62 = vmax.f32 %v815_v51, 0.0  ;;  %v945_v63 = vmax.f32 %v817_v52, 0.0  ;;  %v819_v2 = vld [vmem:[%s3829_s23 + $0x1a0] sm:$0xff]  ;;  %v2277_v3 = vpack.c.bf16 %v941_v44, %v939_v43  ;;  %v2341_v4 = vpack.c.bf16 %v1005_v48, %v1003_v47  ;;  %v825_v30 = vld [vmem:[%s3829_s23 + $0x1d0] sm:$0xff]  ;;  %v828_v36 = vld [vmem:[%s3829_s23 + $0x1e8] sm:$0xff] }
 0x12b   : > { %2330 = vmatpush1.bf16.msra.mxu0 %v2329_v13  ;;  %2268 = vmatprep.subr.bf16.mxu1 %v2267_v14  ;;  %v2279_v5 = vpack.c.bf16 %v946_v50, %v944_v49  ;;  %v1007_v9 = vmax.f32 %v879_v55, 0.0  ;;  %v1009_v10 = vmax.f32 %v881_v59, 0.0  ;;  %v948_v11 = vmax.f32 %v820_v60, 0.0  ;;  %v824_v13 = vld [vmem:[%s3829_s23 + $0x1c8] sm:$0xff]  ;;  %v826_v14 = vld [vmem:[%s3829_s23 + $0x1d8] sm:$0xff]  ;;  %v887_v31 = vld [vmem:[%s3829_s23 + $0x3c0] sm:$0xff] }
 0x12c   : > { %2332 = vmatprep.subr.bf16.mxu0 %v2331_v16  ;;  %v950_v12 = vmax.f32 %v822_v61, 0.0  ;;  %v2343_v15 = vpack.c.bf16 %v1010_v58, %v1008_v57  ;;  %v1012_v16 = vmax.f32 %v884_v0, 0.0  ;;  %v1014_v17 = vmax.f32 %v886_v1, 0.0  ;;  %v889_v35 = vld [vmem:[%s3829_s23 + $0x3d0] sm:$0xff]  ;;  %v830_v37 = vld [vmem:[%s3829_s23 + $0x1f8] sm:$0xff]  ;;  %v827_v49 = vld [vmem:[%s3829_s23 + $0x1e0] sm:$0xff] }
 0x12d   : > { %v2281_v18 = vpack.c.bf16 %v945_v63, %v943_v62  ;;  %v947_v19 = vmax.f32 %v819_v2, 0.0  ;;  %v949_v20 = vmax.f32 %v821_v6, 0.0  ;;  %v1011_v23 = vmax.f32 %v883_v7, 0.0  ;;  %v894_v40 = vld [vmem:[%s3829_s23 + $0x3f8] sm:$0xff]  ;;  %v829_v50 = vld [vmem:[%s3829_s23 + $0x1f0] sm:$0xff]  ;;  %v1023_v2 = vld [vmem:[%s4825_s1] sm:$0xff] }
 0x12e   : > { %2270 = vmatpush1.bf16.msra.mxu1 %v2269_v27  ;;  %v1013_v24 = vmax.f32 %v885_v8, 0.0  ;;  %v952_v25 = vmax.f32 %v824_v13, 0.0  ;;  %v954_v26 = vmax.f32 %v826_v14, 0.0  ;;  %v2345_v27 = vpack.c.bf16 %v1009_v10, %v1007_v9  ;;  %v893_v55 = vld [vmem:[%s3829_s23 + $0x3f0] sm:$0xff]  ;;  %v1027_v6 = vld [vmem:[%s4825_s1 + $0x20] sm:$0xff]  ;;  %v1032_v8 = vld [vmem:[%s4825_s1 + $0x48] sm:$0xff] }
 0x12f   : > { %2334 = vmatpush1.bf16.msra.mxu0 %v2333_v28  ;;  %2272 = vmatprep.subr.bf16.mxu1 %v2271_v29  ;;  %v2283_v28 = vpack.c.bf16 %v950_v12, %v948_v11  ;;  %v823_v29 = vld [vmem:[%s3829_s23 + $0x1c0] sm:$0xff]  ;;  %v2347_v32 = vpack.c.bf16 %v1014_v17, %v1012_v16  ;;  %v1016_v33 = vmax.f32 %v888_v21, 0.0  ;;  %v1018_v34 = vmax.f32 %v890_v22, 0.0  ;;  %v1029_v7 = vld [vmem:[%s4825_s1 + $0x30] sm:$0xff]  ;;  %v1034_v9 = vld [vmem:[%s4825_s1 + $0x58] sm:$0xff] }
 0x130   : > { %2336 = vmatprep.subr.bf16.mxu0 %v2335_v39  ;;  %v2285_v38 = vpack.c.bf16 %v949_v20, %v947_v19  ;;  %v892_v39 = vld [vmem:[%s3829_s23 + $0x3e8] sm:$0xff]  ;;  %v2349_v41 = vpack.c.bf16 %v1013_v24, %v1011_v23  ;;  %v951_v43 = vmax.f32 %v823_v29, 0.0  ;;  %v953_v44 = vmax.f32 %v825_v30, 0.0  ;;  %v1031_v10 = vld [vmem:[%s4825_s1 + $0x40] sm:$0xff]  ;;  %v1033_v11 = vld [vmem:[%s4825_s1 + $0x50] sm:$0xff] }
 0x131   : > { %v1015_v45 = vmax.f32 %v887_v31, 0.0  ;;  %v1017_v46 = vmax.f32 %v889_v35, 0.0  ;;  %v956_v47 = vmax.f32 %v828_v36, 0.0  ;;  %v958_v48 = vmax.f32 %v830_v37, 0.0  ;;  %v1036_v12 = vld [vmem:[%s4825_s1 + $0x68] sm:$0xff]  ;;  %v1038_v13 = vld [vmem:[%s4825_s1 + $0x78] sm:$0xff] }
 0x132   : > { %2274 = vmatpush1.bf16.msra.mxu1 %v2273_v42  ;;  %v2287_v42 = vpack.c.bf16 %v954_v26, %v952_v25  ;;  %v2351_v51 = vpack.c.bf16 %v1018_v34, %v1016_v33  ;;  %v1020_v52 = vmax.f32 %v892_v39, 0.0  ;;  %v955_v57 = vmax.f32 %v827_v49, 0.0  ;;  %v1035_v14 = vld [vmem:[%s4825_s1 + $0x60] sm:$0xff]  ;;  %v1040_v16 = vld [vmem:[%s4825_s1 + $0x88] sm:$0xff]  ;;  %v1042_v17 = vld [vmem:[%s4825_s1 + $0x98] sm:$0xff] }
 0x133   : > { %2338 = vmatpush1.bf16.msra.mxu0 %v2337_v53  ;;  %2276 = vmatprep.subr.bf16.mxu1 %v2275_v54  ;;  %v1022_v53 = vmax.f32 %v894_v40, 0.0  ;;  %v891_v54 = vld [vmem:[%s3829_s23 + $0x3e0] sm:$0xff]  ;;  %v957_v58 = vmax.f32 %v829_v50, 0.0  ;;  %v2353_v59 = vpack.c.bf16 %v1017_v46, %v1015_v45  ;;  %v2291_v60 = vpack.c.bf16 %v958_v48, %v956_v47  ;;  %v1041_v19 = vld [vmem:[%s4825_s1 + $0x90] sm:$0xff]  ;;  %v1044_v20 = vld [vmem:[%s4825_s1 + $0xa8] sm:$0xff] }
 0x134   : > { %2340 = vmatprep.subr.bf16.mxu0 %v2339_v56  ;;  %v2289_v56 = vpack.c.bf16 %v953_v44, %v951_v43  ;;  %v1019_v61 = vmax.f32 %v891_v54, 0.0  ;;  %v1021_v62 = vmax.f32 %v893_v55, 0.0  ;;  %v1046_v21 = vld [vmem:[%s4825_s1 + $0xb8] sm:$0xff]  ;;  %v1043_v22 = vld [vmem:[%s4825_s1 + $0xa0] sm:$0xff]  ;;  %v1045_v23 = vld [vmem:[%s4825_s1 + $0xb0] sm:$0xff] }
 0x135   : > { %v2355_v63 = vpack.c.bf16 %v1022_v53, %v1020_v52  ;;  %v2293_v0 = vpack.c.bf16 %v957_v58, %v955_v57  ;;  %v1048_v24 = vld [vmem:[%s4825_s1 + $0xc8] sm:$0xff]  ;;  %v1050_v25 = vld [vmem:[%s4825_s1 + $0xd8] sm:$0xff]  ;;  %v1047_v26 = vld [vmem:[%s4825_s1 + $0xc0] sm:$0xff] }
 0x136   : > { %2278 = vmatpush1.bf16.msra.mxu1 %v2277_v3  ;;  %v2357_v1 = vpack.c.bf16 %v1021_v62, %v1019_v61  ;;  %v1025_v3 = vld [vmem:[%s4825_s1 + $0x10] sm:$0xff]  ;;  %v1054_v29 = vld [vmem:[%s4825_s1 + $0xf8] sm:$0xff]  ;;  %v1051_v30 = vld [vmem:[%s4825_s1 + $0xe0] sm:$0xff] }
 0x137   : > { %2342 = vmatpush1.bf16.msra.mxu0 %v2341_v4  ;;  %2280 = vmatprep.subr.bf16.mxu1 %v2279_v5  ;;  %v1028_v4 = vld [vmem:[%s4825_s1 + $0x28] sm:$0xff]  ;;  %v1030_v5 = vld [vmem:[%s4825_s1 + $0x38] sm:$0xff]  ;;  %v1053_v31 = vld [vmem:[%s4825_s1 + $0xf0] sm:$0xff] }
 0x138   : > { %2344 = vmatprep.subr.bf16.mxu0 %v2343_v15  ;;  %v1037_v15 = vld [vmem:[%s4825_s1 + $0x70] sm:$0xff]  ;;  %v1058_v33 = vld [vmem:[%s4825_s1 + $0x118] sm:$0xff]  ;;  %v1055_v34 = vld [vmem:[%s4825_s1 + $0x100] sm:$0xff] }
 0x139   : > { %v1057_v35 = vld [vmem:[%s4825_s1 + $0x110] sm:$0xff]  ;;  %v1060_v36 = vld [vmem:[%s4825_s1 + $0x128] sm:$0xff]  ;;  %v1062_v37 = vld [vmem:[%s4825_s1 + $0x138] sm:$0xff] }
 0x13a   : > { %2282 = vmatpush1.bf16.msra.mxu1 %v2281_v18  ;;  %v1039_v18 = vld [vmem:[%s4825_s1 + $0x80] sm:$0xff]  ;;  %v1061_v39 = vld [vmem:[%s4825_s1 + $0x130] sm:$0xff]  ;;  %v1064_v40 = vld [vmem:[%s4825_s1 + $0x148] sm:$0xff] }
 0x13b   : > { %2346 = vmatpush1.bf16.msra.mxu0 %v2345_v27  ;;  %2284 = vmatprep.subr.bf16.mxu1 %v2283_v28  ;;  %v1049_v27 = vld [vmem:[%s4825_s1 + $0xd0] sm:$0xff]  ;;  %v1052_v28 = vld [vmem:[%s4825_s1 + $0xe8] sm:$0xff]  ;;  %v1070_v45 = vld [vmem:[%s4825_s1 + $0x178] sm:$0xff] }
 0x13c   : > { %2348 = vmatprep.subr.bf16.mxu0 %v2347_v32  ;;  %v1056_v32 = vld [vmem:[%s4825_s1 + $0x108] sm:$0xff]  ;;  %v1065_v43 = vld [vmem:[%s4825_s1 + $0x150] sm:$0xff]  ;;  %v1067_v46 = vld [vmem:[%s4825_s1 + $0x160] sm:$0xff] }
 0x13d   : > { %v1068_v44 = vld [vmem:[%s4825_s1 + $0x168] sm:$0xff]  ;;  %v1069_v47 = vld [vmem:[%s4825_s1 + $0x170] sm:$0xff]  ;;  %v1074_v49 = vld [vmem:[%s4825_s1 + $0x198] sm:$0xff] }
 0x13e   : > { %2286 = vmatpush1.bf16.msra.mxu1 %v2285_v38  ;;  %v1059_v38 = vld [vmem:[%s4825_s1 + $0x120] sm:$0xff]  ;;  %v1072_v48 = vld [vmem:[%s4825_s1 + $0x188] sm:$0xff]  ;;  %v1078_v53 = vld [vmem:[%s4825_s1 + $0x1b8] sm:$0xff] }
 0x13f   : > { %2350 = vmatpush1.bf16.msra.mxu0 %v2349_v41  ;;  %2288 = vmatprep.subr.bf16.mxu1 %v2287_v42  ;;  %v1066_v41 = vld [vmem:[%s4825_s1 + $0x158] sm:$0xff]  ;;  %v1063_v42 = vld [vmem:[%s4825_s1 + $0x140] sm:$0xff]  ;;  %v1076_v52 = vld [vmem:[%s4825_s1 + $0x1a8] sm:$0xff] }
 0x140   : > { %2352 = vmatprep.subr.bf16.mxu0 %v2351_v51  ;;  %v1071_v50 = vld [vmem:[%s4825_s1 + $0x180] sm:$0xff]  ;;  %v1073_v51 = vld [vmem:[%s4825_s1 + $0x190] sm:$0xff]  ;;  %v1082_v57 = vld [vmem:[%s4825_s1 + $0x1d8] sm:$0xff] }
 0x141   : > { %v1075_v54 = vld [vmem:[%s4825_s1 + $0x1a0] sm:$0xff]  ;;  %v1077_v55 = vld [vmem:[%s4825_s1 + $0x1b0] sm:$0xff]  ;;  %v1086_v61 = vld [vmem:[%s4825_s1 + $0x1f8] sm:$0xff] }
 0x142   : > { %2290 = vmatpush1.bf16.msra.mxu1 %v2289_v56  ;;  %v1080_v56 = vld [vmem:[%s4825_s1 + $0x1c8] sm:$0xff]  ;;  %v1079_v58 = vld [vmem:[%s4825_s1 + $0x1c0] sm:$0xff] }
 0x143   : > { %2354 = vmatpush1.bf16.msra.mxu0 %v2353_v59  ;;  %2292 = vmatprep.subr.bf16.mxu1 %v2291_v60  ;;  %v1081_v59 = vld [vmem:[%s4825_s1 + $0x1d0] sm:$0xff]  ;;  %v1084_v60 = vld [vmem:[%s4825_s1 + $0x1e8] sm:$0xff]  ;;  %v1083_v62 = vld [vmem:[%s4825_s1 + $0x1e0] sm:$0xff] }
 0x144   : > { %2356 = vmatprep.subr.bf16.mxu0 %v2355_v63  ;;  %v1085_v63 = vld [vmem:[%s4825_s1 + $0x1f0] sm:$0xff] }
 0x146   : > { %2294 = vmatpush1.bf16.msra.mxu1 %v2293_v0 }
 0x147   : > { %2358 = vmatpush1.bf16.msra.mxu0 %v2357_v1 }
 0x149   : > { %1152 = vmatmul.mubr.f32.vlgmr.msra.gmra.mrb[0].mxu1 %v1023_v2 }
 0x14a   : > { %1313 = vmatmul.mubr.f32.vlgmr.msra.gmra.mrb[0].mxu0 %v1025_v3  ;;  %1157 = vmatprep.mubr.f32.mxu1 %v1028_v4 }
 0x14b   : > { %1318 = vmatprep.mubr.f32.mxu0 %v1030_v5 }
 0x14d   : > { %1158 = vmatmul.mubr.f32.gmra.mrb[2].mxu1 %v1027_v6 }
 0x14e   : > { %1319 = vmatmul.mubr.f32.gmra.mrb[2].mxu0 %v1029_v7  ;;  %1163 = vmatprep.mubr.f32.mxu1 %v1032_v8 }
 0x14f   : > { %1324 = vmatprep.mubr.f32.mxu0 %v1034_v9 }
 0x151   : > { %1164 = vmatmul.mubr.f32.gmra.mrb[4].mxu1 %v1031_v10 }
 0x152   : > { %1325 = vmatmul.mubr.f32.gmra.mrb[4].mxu0 %v1033_v11  ;;  %1169 = vmatprep.mubr.f32.mxu1 %v1036_v12 }
 0x153   : > { %1330 = vmatprep.mubr.f32.mxu0 %v1038_v13 }
 0x155   : > { %1170 = vmatmul.mubr.f32.gmra.mrb[6].mxu1 %v1035_v14 }
 0x156   : > { %1331 = vmatmul.mubr.f32.gmra.mrb[6].mxu0 %v1037_v15  ;;  %1175 = vmatprep.mubr.f32.mxu1 %v1040_v16 }
 0x157   : > { %1336 = vmatprep.mubr.f32.mxu0 %v1042_v17 }
 0x159   : > { %1176 = vmatmul.mubr.f32.gmra.mrb[8].mxu1 %v1039_v18 }
 0x15a   : > { %1337 = vmatmul.mubr.f32.gmra.mrb[8].mxu0 %v1041_v19  ;;  %1181 = vmatprep.mubr.f32.mxu1 %v1044_v20 }
 0x15b   : > { %1342 = vmatprep.mubr.f32.mxu0 %v1046_v21 }
 0x15d   : > { %1182 = vmatmul.mubr.f32.gmra.mrb[10].mxu1 %v1043_v22 }
 0x15e   : > { %1343 = vmatmul.mubr.f32.gmra.mrb[10].mxu0 %v1045_v23  ;;  %1187 = vmatprep.mubr.f32.mxu1 %v1048_v24 }
 0x15f   : > { %1348 = vmatprep.mubr.f32.mxu0 %v1050_v25 }
 0x161   : > { %1188 = vmatmul.mubr.f32.gmra.mrb[12].mxu1 %v1047_v26 }
 0x162   : > { %1349 = vmatmul.mubr.f32.gmra.mrb[12].mxu0 %v1049_v27  ;;  %1193 = vmatprep.mubr.f32.mxu1 %v1052_v28 }
 0x163   : > { %1354 = vmatprep.mubr.f32.mxu0 %v1054_v29 }
 0x165   : > { %1194 = vmatmul.mubr.f32.gmra.mrb[14].mxu1 %v1051_v30 }
 0x166   : > { %1355 = vmatmul.mubr.f32.gmra.mrb[14].mxu0 %v1053_v31  ;;  %1199 = vmatprep.mubr.f32.mxu1 %v1056_v32 }
 0x167   : > { %1360 = vmatprep.mubr.f32.mxu0 %v1058_v33 }
 0x169   : > { %1200 = vmatmul.mubr.f32.gmra.mrb[16].mxu1 %v1055_v34 }
 0x16a   : > { %1361 = vmatmul.mubr.f32.gmra.mrb[16].mxu0 %v1057_v35  ;;  %1205 = vmatprep.mubr.f32.mxu1 %v1060_v36 }
 0x16b   : > { %1366 = vmatprep.mubr.f32.mxu0 %v1062_v37 }
 0x16d   : > { %1206 = vmatmul.mubr.f32.gmra.mrb[18].mxu1 %v1059_v38 }
 0x16e   : > { %1367 = vmatmul.mubr.f32.gmra.mrb[18].mxu0 %v1061_v39  ;;  %1211 = vmatprep.mubr.f32.mxu1 %v1064_v40 }
 0x16f   : > { %1372 = vmatprep.mubr.f32.mxu0 %v1066_v41 }
 0x171   : > { %1212 = vmatmul.mubr.f32.gmra.mrb[20].mxu1 %v1063_v42 }
 0x172   : > { %1373 = vmatmul.mubr.f32.gmra.mrb[20].mxu0 %v1065_v43  ;;  %1217 = vmatprep.mubr.f32.mxu1 %v1068_v44 }
 0x173   : > { %1378 = vmatprep.mubr.f32.mxu0 %v1070_v45 }
 0x175   : > { %1218 = vmatmul.mubr.f32.gmra.mrb[22].mxu1 %v1067_v46 }
 0x176   : > { %1379 = vmatmul.mubr.f32.gmra.mrb[22].mxu0 %v1069_v47  ;;  %1223 = vmatprep.mubr.f32.mxu1 %v1072_v48 }
 0x177   : > { %1384 = vmatprep.mubr.f32.mxu0 %v1074_v49 }
 0x179   : > { %1224 = vmatmul.mubr.f32.gmra.mrb[24].mxu1 %v1071_v50 }
 0x17a   : > { %1385 = vmatmul.mubr.f32.gmra.mrb[24].mxu0 %v1073_v51  ;;  %1229 = vmatprep.mubr.f32.mxu1 %v1076_v52 }
 0x17b   : > { %1390 = vmatprep.mubr.f32.mxu0 %v1078_v53 }
 0x17d   : > { %1230 = vmatmul.mubr.f32.gmra.mrb[26].mxu1 %v1075_v54 }
 0x17e   : > { %1391 = vmatmul.mubr.f32.gmra.mrb[26].mxu0 %v1077_v55  ;;  %1235 = vmatprep.mubr.f32.mxu1 %v1080_v56 }
 0x17f   : > { %1396 = vmatprep.mubr.f32.mxu0 %v1082_v57 }
 0x181   : > { %1236 = vmatmul.mubr.f32.gmra.mrb[28].mxu1 %v1079_v58 }
 0x182   : > { %1397 = vmatmul.mubr.f32.gmra.mrb[28].mxu0 %v1081_v59  ;;  %1241 = vmatprep.mubr.f32.mxu1 %v1084_v60 }
 0x183   : > { %1402 = vmatprep.mubr.f32.mxu0 %v1086_v61 }
 0x185   : > { %1242 = vmatmul.mubr.f32.gmra.mrb[30].mxu1 %v1083_v62 }
 0x186   : > { %1403 = vmatmul.mubr.f32.gmra.mrb[30].mxu0 %v1085_v63 }
 0x21c   : > { %v1153_v0 = vpop.f32.mrb[0].mxu1 }
 0x21d   : > { %v1314_v1 = vpop.f32.mrb[0].mxu0  ;;  %v1155_v2 = vpop.f32.mrb[1].mxu1 }
 0x21e   : > { %v1315_v3 = vadd.f32 %v1314_v1, %v1153_v0  ;;  %v1316_v4 = vpop.f32.mrb[1].mxu0 }
 0x21f   : > { %v1317_v5 = vadd.f32 %v1316_v4, %v1155_v2 }
 0x220   : > { %1409 = vst [vmem:[%s4147_s3] sm:$0xff] %v1315_v3  ;;  %v1159_v6 = vpop.f32.mrb[2].mxu1 }
 0x221   : > { %1410 = vst [vmem:[%s4147_s3 + $0x8] sm:$0xff] %v1317_v5  ;;  %v1320_v7 = vpop.f32.mrb[2].mxu0  ;;  %v1161_v8 = vpop.f32.mrb[3].mxu1 }
 0x222   : > { %v1321_v9 = vadd.f32 %v1320_v7, %v1159_v6  ;;  %v1322_v10 = vpop.f32.mrb[3].mxu0 }
 0x223   : > { %v1323_v11 = vadd.f32 %v1322_v10, %v1161_v8 }
 0x224   : > { %1411 = vst [vmem:[%s4147_s3 + $0x10] sm:$0xff] %v1321_v9  ;;  %v1165_v12 = vpop.f32.mrb[4].mxu1 }
 0x225   : > { %1412 = vst [vmem:[%s4147_s3 + $0x18] sm:$0xff] %v1323_v11  ;;  %v1326_v13 = vpop.f32.mrb[4].mxu0  ;;  %v1167_v14 = vpop.f32.mrb[5].mxu1 }
 0x226   : > { %v1327_v15 = vadd.f32 %v1326_v13, %v1165_v12  ;;  %v1328_v16 = vpop.f32.mrb[5].mxu0 }
 0x227   : > { %v1329_v17 = vadd.f32 %v1328_v16, %v1167_v14 }
 0x228   : > { %1413 = vst [vmem:[%s4147_s3 + $0x20] sm:$0xff] %v1327_v15  ;;  %v1171_v18 = vpop.f32.mrb[6].mxu1 }
 0x229   : > { %1414 = vst [vmem:[%s4147_s3 + $0x28] sm:$0xff] %v1329_v17  ;;  %v1332_v19 = vpop.f32.mrb[6].mxu0  ;;  %v1173_v20 = vpop.f32.mrb[7].mxu1 }
 0x22a   : > { %v1333_v21 = vadd.f32 %v1332_v19, %v1171_v18  ;;  %v1334_v22 = vpop.f32.mrb[7].mxu0 }
 0x22b   : > { %v1335_v23 = vadd.f32 %v1334_v22, %v1173_v20 }
 0x22c   : > { %1415 = vst [vmem:[%s4147_s3 + $0x30] sm:$0xff] %v1333_v21  ;;  %v1177_v24 = vpop.f32.mrb[8].mxu1 }
 0x22d   : > { %1416 = vst [vmem:[%s4147_s3 + $0x38] sm:$0xff] %v1335_v23  ;;  %v1338_v25 = vpop.f32.mrb[8].mxu0  ;;  %v1179_v26 = vpop.f32.mrb[9].mxu1 }
 0x22e   : > { %v1339_v27 = vadd.f32 %v1338_v25, %v1177_v24  ;;  %v1340_v28 = vpop.f32.mrb[9].mxu0 }
 0x22f   : > { %v1341_v29 = vadd.f32 %v1340_v28, %v1179_v26 }
 0x230   : > { %1417 = vst [vmem:[%s4147_s3 + $0x40] sm:$0xff] %v1339_v27  ;;  %v1183_v30 = vpop.f32.mrb[10].mxu1 }
 0x231   : > { %1418 = vst [vmem:[%s4147_s3 + $0x48] sm:$0xff] %v1341_v29  ;;  %v1344_v31 = vpop.f32.mrb[10].mxu0  ;;  %v1185_v32 = vpop.f32.mrb[11].mxu1 }
 0x232   : > { %v1345_v33 = vadd.f32 %v1344_v31, %v1183_v30  ;;  %v1346_v34 = vpop.f32.mrb[11].mxu0 }
 0x233   : > { %v1347_v35 = vadd.f32 %v1346_v34, %v1185_v32 }
 0x234   : > { %1419 = vst [vmem:[%s4147_s3 + $0x50] sm:$0xff] %v1345_v33  ;;  %v1189_v36 = vpop.f32.mrb[12].mxu1 }
 0x235   : > { %1420 = vst [vmem:[%s4147_s3 + $0x58] sm:$0xff] %v1347_v35  ;;  %v1350_v37 = vpop.f32.mrb[12].mxu0  ;;  %v1191_v38 = vpop.f32.mrb[13].mxu1 }
 0x236   : > { %v1351_v39 = vadd.f32 %v1350_v37, %v1189_v36  ;;  %v1352_v40 = vpop.f32.mrb[13].mxu0 }
 0x237   : > { %v1353_v41 = vadd.f32 %v1352_v40, %v1191_v38 }
 0x238   : > { %1421 = vst [vmem:[%s4147_s3 + $0x60] sm:$0xff] %v1351_v39  ;;  %v1195_v42 = vpop.f32.mrb[14].mxu1 }
 0x239   : > { %1422 = vst [vmem:[%s4147_s3 + $0x68] sm:$0xff] %v1353_v41  ;;  %v1356_v43 = vpop.f32.mrb[14].mxu0  ;;  %v1197_v44 = vpop.f32.mrb[15].mxu1 }
 0x23a   : > { %v1357_v45 = vadd.f32 %v1356_v43, %v1195_v42  ;;  %v1358_v46 = vpop.f32.mrb[15].mxu0 }
 0x23b   : > { %v1359_v47 = vadd.f32 %v1358_v46, %v1197_v44 }
 0x23c   : > { %1423 = vst [vmem:[%s4147_s3 + $0x70] sm:$0xff] %v1357_v45  ;;  %v1201_v48 = vpop.f32.mrb[16].mxu1 }
 0x23d   : > { %1424 = vst [vmem:[%s4147_s3 + $0x78] sm:$0xff] %v1359_v47  ;;  %v1362_v49 = vpop.f32.mrb[16].mxu0  ;;  %v1203_v50 = vpop.f32.mrb[17].mxu1 }
 0x23e   : > { %v1363_v51 = vadd.f32 %v1362_v49, %v1201_v48  ;;  %v1364_v52 = vpop.f32.mrb[17].mxu0 }
 0x23f   : > { %v1365_v53 = vadd.f32 %v1364_v52, %v1203_v50 }
 0x240   : > { %1425 = vst [vmem:[%s4147_s3 + $0x80] sm:$0xff] %v1363_v51  ;;  %v1207_v54 = vpop.f32.mrb[18].mxu1 }
 0x241   : > { %1426 = vst [vmem:[%s4147_s3 + $0x88] sm:$0xff] %v1365_v53  ;;  %v1368_v55 = vpop.f32.mrb[18].mxu0  ;;  %v1209_v56 = vpop.f32.mrb[19].mxu1 }
 0x242   : > { %v1369_v57 = vadd.f32 %v1368_v55, %v1207_v54  ;;  %v1370_v58 = vpop.f32.mrb[19].mxu0 }
 0x243   : > { %v1371_v59 = vadd.f32 %v1370_v58, %v1209_v56 }
 0x244   : > { %1427 = vst [vmem:[%s4147_s3 + $0x90] sm:$0xff] %v1369_v57  ;;  %v1213_v60 = vpop.f32.mrb[20].mxu1 }
 0x245   : > { %1428 = vst [vmem:[%s4147_s3 + $0x98] sm:$0xff] %v1371_v59  ;;  %v1374_v61 = vpop.f32.mrb[20].mxu0  ;;  %v1215_v62 = vpop.f32.mrb[21].mxu1 }
 0x246   : > { %v1375_v63 = vadd.f32 %v1374_v61, %v1213_v60  ;;  %v1376_v0 = vpop.f32.mrb[21].mxu0 }
 0x247   : > { %v1377_v1 = vadd.f32 %v1376_v0, %v1215_v62 }
 0x248   : > { %1429 = vst [vmem:[%s4147_s3 + $0xa0] sm:$0xff] %v1375_v63  ;;  %v1219_v2 = vpop.f32.mrb[22].mxu1 }
 0x249   : > { %1430 = vst [vmem:[%s4147_s3 + $0xa8] sm:$0xff] %v1377_v1  ;;  %v1380_v3 = vpop.f32.mrb[22].mxu0  ;;  %v1221_v4 = vpop.f32.mrb[23].mxu1 }
 0x24a   : > { %v1381_v5 = vadd.f32 %v1380_v3, %v1219_v2  ;;  %v1382_v6 = vpop.f32.mrb[23].mxu0 }
 0x24b   : > { %v1383_v7 = vadd.f32 %v1382_v6, %v1221_v4 }
 0x24c   : > { %1431 = vst [vmem:[%s4147_s3 + $0xb0] sm:$0xff] %v1381_v5  ;;  %v1225_v8 = vpop.f32.mrb[24].mxu1 }
 0x24d   : > { %1432 = vst [vmem:[%s4147_s3 + $0xb8] sm:$0xff] %v1383_v7  ;;  %v1386_v9 = vpop.f32.mrb[24].mxu0  ;;  %v1227_v10 = vpop.f32.mrb[25].mxu1 }
 0x24e   : > { %v1387_v11 = vadd.f32 %v1386_v9, %v1225_v8  ;;  %v1388_v12 = vpop.f32.mrb[25].mxu0 }
 0x24f   : > { %v1389_v13 = vadd.f32 %v1388_v12, %v1227_v10 }
 0x250   : > { %1433 = vst [vmem:[%s4147_s3 + $0xc0] sm:$0xff] %v1387_v11  ;;  %v1231_v14 = vpop.f32.mrb[26].mxu1 }
 0x251   : > { %1434 = vst [vmem:[%s4147_s3 + $0xc8] sm:$0xff] %v1389_v13  ;;  %v1392_v15 = vpop.f32.mrb[26].mxu0  ;;  %v1233_v16 = vpop.f32.mrb[27].mxu1 }
 0x252   : > { %v1393_v17 = vadd.f32 %v1392_v15, %v1231_v14  ;;  %v1394_v18 = vpop.f32.mrb[27].mxu0 }
 0x253   : > { %v1395_v19 = vadd.f32 %v1394_v18, %v1233_v16 }
 0x254   : > { %1435 = vst [vmem:[%s4147_s3 + $0xd0] sm:$0xff] %v1393_v17  ;;  %v1237_v20 = vpop.f32.mrb[28].mxu1 }
 0x255   : > { %1436 = vst [vmem:[%s4147_s3 + $0xd8] sm:$0xff] %v1395_v19  ;;  %v1398_v21 = vpop.f32.mrb[28].mxu0  ;;  %v1239_v22 = vpop.f32.mrb[29].mxu1 }
 0x256   : > { %v1399_v23 = vadd.f32 %v1398_v21, %v1237_v20  ;;  %v1400_v24 = vpop.f32.mrb[29].mxu0 }
 0x257   : > { %v1401_v25 = vadd.f32 %v1400_v24, %v1239_v22  ;;  %1447 = sbr.rel (!%p2915_p6) target bundleno = 795 (0x31b), region = 84 }
 0x258   : > { %1437 = vst [vmem:[%s4147_s3 + $0xe0] sm:$0xff] %v1399_v23  ;;  %v1243_v26 = vpop.f32.mrb[30].mxu1 }
 0x259   : > { %1438 = vst [vmem:[%s4147_s3 + $0xe8] sm:$0xff] %v1401_v25  ;;  %v1404_v27 = vpop.f32.mrb[30].mxu0  ;;  %v1245_v28 = vpop.f32.mrb[31].mxu1 }
 0x25a   : > { %v1405_v29 = vadd.f32 %v1404_v27, %v1243_v26  ;;  %v1406_v30 = vpop.f32.mrb[31].mxu0 }
 0x25b   : > { %v1407_v31 = vadd.f32 %v1406_v30, %v1245_v28 }
 0x25c   : > { %1439 = vst [vmem:[%s4147_s3 + $0xf0] sm:$0xff] %v1405_v29 }
 0x25d   : > { %1440 = vst [vmem:[%s4147_s3 + $0xf8] sm:$0xff] %v1407_v31 }
 0x25e   : > { %s4869_s17 = smov (!%p1450_p8, %s1449_s17), 2 }
 0x25f   : > { %s2198_s22 = sshll.u32 %s4869_s17, 11  ;;  %s4190_s30 = sshll.u32 %s4869_s17, 3 }
 0x260   : > { %p2202_p9 = scmp.eq.s32.totalorder %s2198_s22, 0 }
 0x261   : > { %p1462_p10 = scmp.lt.u32.totalorder (!%p2202_p9), %s4190_s30, 8 }
 0x262   : > { %1461 = sbr.rel (%p2202_p9) target bundleno = 795 (0x31b), region = 88 }
 0x269   : > { %1465 = sbr.rel (%p1462_p10) target bundleno = 776 (0x308), region = 92  ;;  %s4194_s18 = sand.u32 (!%p1462_p10), 7, %s4190_s30  }
 0x26a   : > { %p1511_p6 = scmp.eq.s32.totalorder (!%p1462_p10), %s4194_s18, 0  ;;  %p2203_p11 = scmp.ne.s32.totalorder (!%p1462_p10), %s4194_s18, 0 }
 0x270   : > { %1514 = sbr.rel (%p2203_p11) target bundleno = 691 (0x2b3), region = 107  ;;  %s1515_s11 = sshrl.u32 (!%p2203_p11), %s4190_s30, 3 }
 0x271   : > { %s4201_s23 = sshrl.u32 (!%p2203_p11), %s1515_s11, 2 }
 0x272   : > { %p2204_p12 = scmp.le.s32.totalorder (!%p2203_p11), %s4201_s23, 0 }
 0x277   : > { %2094 = sbr.rel (%p2204_p12) target bundleno = 671 (0x29f), region = 225  ;;  %s4838_s24 = smov (!%p2204_p12), %s4188_s27 }
 0x278   : > { %s4839_s25 = smov (!%p2204_p12), %s4147_s3  ;;  %s4210_s26 = smov (!%p2204_p12), 0  }
 0x279   : > { %s4212_s28 = smov (!%p2204_p12), 0  }
 0x27e LB: >> { %v1528_v32 = vld [vmem:[%s2803_s25] sm:$0xff]  ;;  %v1530_v33 = vld [vmem:[%s2803_s25 + $0x8] sm:$0xff]  ;;  %v1532_v34 = vld [vmem:[%s2803_s25 + $0x10] sm:$0xff]  ;;  %s1656_s4 = sadd.s32 1, %s2807_s26  ;;  %s1522_s28 = sadd.s32 1, %s2811_s28   ;;  %s2811_s28 = sphi %s4212_s28, %s1522_s28   ;;  %s2807_s26 = sphi %s4210_s26, %s4843_s26   ;;  %s2803_s25 = sphi %s4839_s25, %s4842_s25   ;;  %s2799_s24 = sphi %s4838_s24, %s4841_s24  }
 0x27f   : >> { %1529 = vst [vmem:[%s2799_s24] sm:$0xff] %v1528_v32  ;;  %1531 = vst [vmem:[%s2799_s24 + $0x8] sm:$0xff] %v1530_v33  ;;  %v1534_v35 = vld [vmem:[%s2803_s25 + $0x18] sm:$0xff]  ;;  %v1540_v36 = vld [vmem:[%s2803_s25 + $0x20] sm:$0xff]  ;;  %p4238_p13 = scmp.ge.s32.totalorder %s1656_s4, %s4201_s23  ;;  %p1521_p0 = scmp.ge.s32.totalorder %s1522_s28, %s4201_s23 }
 0x280   : >> { %1533 = vst [vmem:[%s2799_s24 + $0x10] sm:$0xff] %v1532_v34  ;;  %1537 = vst [vmem:[%s2799_s24 + $0x38] sm:$0xff] %v1532_v34  ;;  %v1542_v37 = vld [vmem:[%s2803_s25 + $0x28] sm:$0xff]  ;;  %v1548_v38 = vld [vmem:[%s2803_s25 + $0x30] sm:$0xff] }
 0x281   : >> { %1535 = vst [vmem:[%s2799_s24 + $0x18] sm:$0xff] %v1534_v35  ;;  %1539 = vst [vmem:[%s2799_s24 + $0x40] sm:$0xff] %v1534_v35  ;;  %v1550_v39 = vld [vmem:[%s2803_s25 + $0x38] sm:$0xff]  ;;  %v1556_v40 = vld [vmem:[%s2803_s25 + $0x40] sm:$0xff]  ;;  %s4871_s4 = smov (%p4238_p13, %s1656_s4), 0 }
 0x282   : >> { %1541 = vst [vmem:[%s2799_s24 + $0x48] sm:$0xff] %v1540_v36  ;;  %1543 = vst [vmem:[%s2799_s24 + $0x50] sm:$0xff] %v1542_v37  ;;  %v1558_v41 = vld [vmem:[%s2803_s25 + $0x48] sm:$0xff]  ;;  %v1564_v42 = vld [vmem:[%s2803_s25 + $0x50] sm:$0xff]  ;;  %s2205_s6 = sshll.u32 %s4871_s4, 5  ;;  %s4843_s26 = smov %s4871_s4 }
 0x283   : >> { %1545 = vst [vmem:[%s2799_s24 + $0x70] sm:$0xff] %v1540_v36  ;;  %1547 = vst [vmem:[%s2799_s24 + $0x78] sm:$0xff] %v1542_v37  ;;  %v1566_v43 = vld [vmem:[%s2803_s25 + $0x58] sm:$0xff]  ;;  %v1572_v44 = vld [vmem:[%s2803_s25 + $0x60] sm:$0xff]  ;;  %s4293_s7 = scalar_lea.vmem %s4147_s3, %s2205_s6 [#allocation3]   ;;  %s4296_s8 = scalar_lea.vmem %s4188_s27, %s2205_s6  }
 0x284   : >> { %1549 = vst [vmem:[%s2799_s24 + $0x80] sm:$0xff] %v1548_v38  ;;  %1551 = vst [vmem:[%s2799_s24 + $0x88] sm:$0xff] %v1550_v39  ;;  %v1574_v45 = vld [vmem:[%s2803_s25 + $0x68] sm:$0xff]  ;;  %v1580_v46 = vld [vmem:[%s2803_s25 + $0x70] sm:$0xff] }
 0x285   : >> { %1553 = vst [vmem:[%s2799_s24 + $0xa8] sm:$0xff] %v1548_v38  ;;  %1555 = vst [vmem:[%s2799_s24 + $0xb0] sm:$0xff] %v1550_v39  ;;  %v1582_v47 = vld [vmem:[%s2803_s25 + $0x78] sm:$0xff]  ;;  %v1588_v48 = vld [vmem:[%s2803_s25 + $0x80] sm:$0xff] }
 0x286   : >> { %1557 = vst [vmem:[%s2799_s24 + $0xb8] sm:$0xff] %v1556_v40  ;;  %1561 = vst [vmem:[%s2799_s24 + $0xe0] sm:$0xff] %v1556_v40  ;;  %v1590_v49 = vld [vmem:[%s2803_s25 + $0x88] sm:$0xff]  ;;  %v1596_v50 = vld [vmem:[%s2803_s25 + $0x90] sm:$0xff] }
 0x287   : >> { %1559 = vst [vmem:[%s2799_s24 + $0xc0] sm:$0xff] %v1558_v41  ;;  %1563 = vst [vmem:[%s2799_s24 + $0xe8] sm:$0xff] %v1558_v41  ;;  %v1598_v51 = vld [vmem:[%s2803_s25 + $0x98] sm:$0xff]  ;;  %v1604_v52 = vld [vmem:[%s2803_s25 + $0xa0] sm:$0xff] }
 0x288   : >> { %1565 = vst [vmem:[%s2799_s24 + $0xf0] sm:$0xff] %v1564_v42  ;;  %1567 = vst [vmem:[%s2799_s24 + $0xf8] sm:$0xff] %v1566_v43  ;;  %v1606_v53 = vld [vmem:[%s2803_s25 + $0xa8] sm:$0xff]  ;;  %v1612_v54 = vld [vmem:[%s2803_s25 + $0xb0] sm:$0xff] }
 0x289   : >> { %1569 = vst [vmem:[%s2799_s24 + $0x118] sm:$0xff] %v1564_v42  ;;  %1571 = vst [vmem:[%s2799_s24 + $0x120] sm:$0xff] %v1566_v43  ;;  %v1614_v55 = vld [vmem:[%s2803_s25 + $0xb8] sm:$0xff]  ;;  %v1620_v56 = vld [vmem:[%s2803_s25 + $0xc0] sm:$0xff] }
 0x28a   : >> { %1573 = vst [vmem:[%s2799_s24 + $0x128] sm:$0xff] %v1572_v44  ;;  %1575 = vst [vmem:[%s2799_s24 + $0x130] sm:$0xff] %v1574_v45  ;;  %v1622_v57 = vld [vmem:[%s2803_s25 + $0xc8] sm:$0xff]  ;;  %v1628_v58 = vld [vmem:[%s2803_s25 + $0xd0] sm:$0xff] }
 0x28b   : >> { %1577 = vst [vmem:[%s2799_s24 + $0x150] sm:$0xff] %v1572_v44  ;;  %1579 = vst [vmem:[%s2799_s24 + $0x158] sm:$0xff] %v1574_v45  ;;  %v1630_v59 = vld [vmem:[%s2803_s25 + $0xd8] sm:$0xff]  ;;  %v1636_v60 = vld [vmem:[%s2803_s25 + $0xe0] sm:$0xff] }
 0x28c   : >> { %1581 = vst [vmem:[%s2799_s24 + $0x160] sm:$0xff] %v1580_v46  ;;  %1585 = vst [vmem:[%s2799_s24 + $0x188] sm:$0xff] %v1580_v46  ;;  %v1638_v61 = vld [vmem:[%s2803_s25 + $0xe8] sm:$0xff]  ;;  %v1644_v62 = vld [vmem:[%s2803_s25 + $0xf0] sm:$0xff] }
 0x28d   : >> { %1583 = vst [vmem:[%s2799_s24 + $0x168] sm:$0xff] %v1582_v47  ;;  %1587 = vst [vmem:[%s2799_s24 + $0x190] sm:$0xff] %v1582_v47  ;;  %v1646_v63 = vld [vmem:[%s2803_s25 + $0xf8] sm:$0xff]  ;;  %v1652_v0 = vld [vmem:[%s2803_s25 + $0x100] sm:$0xff] }
 0x28e   : >> { %1589 = vst [vmem:[%s2799_s24 + $0x198] sm:$0xff] %v1588_v48  ;;  %1591 = vst [vmem:[%s2799_s24 + $0x1a0] sm:$0xff] %v1590_v49  ;;  %v1654_v1 = vld [vmem:[%s2803_s25 + $0x108] sm:$0xff]  ;;  %s4842_s25 = smov %s4293_s7 }
 0x28f   : >> { %1593 = vst [vmem:[%s2799_s24 + $0x1c0] sm:$0xff] %v1588_v48  ;;  %1595 = vst [vmem:[%s2799_s24 + $0x1c8] sm:$0xff] %v1590_v49 }
 0x290   : >> { %1597 = vst [vmem:[%s2799_s24 + $0x1d0] sm:$0xff] %v1596_v50  ;;  %1599 = vst [vmem:[%s2799_s24 + $0x1d8] sm:$0xff] %v1598_v51 }
 0x291   : >> { %1601 = vst [vmem:[%s2799_s24 + $0x1f8] sm:$0xff] %v1596_v50  ;;  %1603 = vst [vmem:[%s2799_s24 + $0x200] sm:$0xff] %v1598_v51 }
 0x292   : >> { %1605 = vst [vmem:[%s2799_s24 + $0x208] sm:$0xff] %v1604_v52  ;;  %1609 = vst [vmem:[%s2799_s24 + $0x230] sm:$0xff] %v1604_v52 }
 0x293   : >> { %1607 = vst [vmem:[%s2799_s24 + $0x210] sm:$0xff] %v1606_v53  ;;  %1611 = vst [vmem:[%s2799_s24 + $0x238] sm:$0xff] %v1606_v53 }
 0x294   : >> { %1613 = vst [vmem:[%s2799_s24 + $0x240] sm:$0xff] %v1612_v54  ;;  %1615 = vst [vmem:[%s2799_s24 + $0x248] sm:$0xff] %v1614_v55 }
 0x295   : >> { %1617 = vst [vmem:[%s2799_s24 + $0x268] sm:$0xff] %v1612_v54  ;;  %1619 = vst [vmem:[%s2799_s24 + $0x270] sm:$0xff] %v1614_v55 }
 0x296   : >> { %1621 = vst [vmem:[%s2799_s24 + $0x278] sm:$0xff] %v1620_v56  ;;  %1623 = vst [vmem:[%s2799_s24 + $0x280] sm:$0xff] %v1622_v57 }
 0x297   : >> { %1625 = vst [vmem:[%s2799_s24 + $0x2a0] sm:$0xff] %v1620_v56  ;;  %1627 = vst [vmem:[%s2799_s24 + $0x2a8] sm:$0xff] %v1622_v57 }
 0x298   : >> { %1629 = vst [vmem:[%s2799_s24 + $0x2b0] sm:$0xff] %v1628_v58  ;;  %1633 = vst [vmem:[%s2799_s24 + $0x2d8] sm:$0xff] %v1628_v58  ;;  %1524 = sbr.rel (!%p1521_p0) target bundleno = 638 (0x27e), region = 231 }
 0x299   : >> { %1631 = vst [vmem:[%s2799_s24 + $0x2b8] sm:$0xff] %v1630_v59  ;;  %1635 = vst [vmem:[%s2799_s24 + $0x2e0] sm:$0xff] %v1630_v59 }
 0x29a   : >> { %1637 = vst [vmem:[%s2799_s24 + $0x2e8] sm:$0xff] %v1636_v60  ;;  %1639 = vst [vmem:[%s2799_s24 + $0x2f0] sm:$0xff] %v1638_v61 }
 0x29b   : >> { %1641 = vst [vmem:[%s2799_s24 + $0x310] sm:$0xff] %v1636_v60  ;;  %1643 = vst [vmem:[%s2799_s24 + $0x318] sm:$0xff] %v1638_v61 }
 0x29c   : >> { %1645 = vst [vmem:[%s2799_s24 + $0x320] sm:$0xff] %v1644_v62  ;;  %1647 = vst [vmem:[%s2799_s24 + $0x328] sm:$0xff] %v1646_v63 }
 0x29d   : >> { %1649 = vst [vmem:[%s2799_s24 + $0x348] sm:$0xff] %v1644_v62  ;;  %1651 = vst [vmem:[%s2799_s24 + $0x350] sm:$0xff] %v1646_v63 }
 0x29e   : >> { %1653 = vst [vmem:[%s2799_s24 + $0x358] sm:$0xff] %v1652_v0  ;;  %1655 = vst [vmem:[%s2799_s24 + $0x360] sm:$0xff] %v1654_v1  ;;  %s4841_s24 = smov %s4296_s8 }
 0x29f PF: > { %s4356_s15 = sand.u32 3, %s1515_s11   ;;  %s2227_s16 = sshll.u32 %s4201_s23, 9 }
 0x2a0   : > { %s1667_s9 = sshra.s32 %s2227_s16, 4  ;;  %p2210_p1 = scmp.le.s32.totalorder %s4356_s15, 0 }
 0x2a1   : > { %s4360_s29 = scalar_lea.vmem %s4147_s3, %s1667_s9 [#allocation3]   ;;  %s4363_s17 = scalar_lea.vmem %s4188_s27, %s1667_s9  }
 0x2a2   : > { %2108 = sbr.rel (%p2210_p1) target bundleno = 691 (0x2b3), region = 236  ;;  %s4844_s20 = smov (!%p2210_p1), %s4363_s17 }
 0x2a3   : > { %s4845_s21 = smov (!%p2210_p1), %s4360_s29  ;;  %s4372_s22 = smov (!%p2210_p1), 0  }
 0x2a4   : > { %s4374_s24 = smov (!%p2210_p1), 0  }
 0x2a9 LB: >> { %v1683_v2 = vld [vmem:[%s2819_s21] sm:$0xff]  ;;  %v1685_v3 = vld [vmem:[%s2819_s21 + $0x10] sm:$0xff]  ;;  %s1715_s11 = sadd.s32 1, %s2823_s22  ;;  %s1677_s24 = sadd.s32 1, %s2827_s24   ;;  %s2827_s24 = sphi %s4374_s24, %s1677_s24   ;;  %s2823_s22 = sphi %s4372_s22, %s4846_s22   ;;  %s2819_s21 = sphi %s4845_s21, %s1720_s21   ;;  %s2815_s20 = sphi %s4844_s20, %s1721_s20  }
 0x2aa   : >> { %v1687_v4 = vld [vmem:[%s2819_s21 + $0x20] sm:$0xff]  ;;  %1684 = vst [vmem:[%s2815_s20] sm:$0xff] %v1683_v2  ;;  %1686 = vst [vmem:[%s2815_s20 + $0x38] sm:$0xff] %v1685_v3  ;;  %v1689_v5 = vld [vmem:[%s2819_s21 + $0x30] sm:$0xff]  ;;  %p1716_p2 = scmp.ge.s32.totalorder %s1715_s11, %s4356_s15  ;;  %p1676_p3 = scmp.ge.s32.totalorder %s1677_s24, %s4356_s15 }
 0x2ab   : >> { %1688 = vst [vmem:[%s2815_s20 + $0x70] sm:$0xff] %v1687_v4  ;;  %v1691_v6 = vld [vmem:[%s2819_s21 + $0x40] sm:$0xff]  ;;  %v1693_v7 = vld [vmem:[%s2819_s21 + $0x50] sm:$0xff]  ;;  %1690 = vst [vmem:[%s2815_s20 + $0xa8] sm:$0xff] %v1689_v5 }
 0x2ac   : >> { %1692 = vst [vmem:[%s2815_s20 + $0xe0] sm:$0xff] %v1691_v6  ;;  %1694 = vst [vmem:[%s2815_s20 + $0x118] sm:$0xff] %v1693_v7  ;;  %v1695_v8 = vld [vmem:[%s2819_s21 + $0x60] sm:$0xff]  ;;  %v1697_v9 = vld [vmem:[%s2819_s21 + $0x70] sm:$0xff]  ;;  %s4873_s11 = smov (%p1716_p2, %s1715_s11), 0  ;;  %1679 = sbr.rel (!%p1676_p3) target bundleno = 681 (0x2a9), region = 242 }
 0x2ad   : >> { %v1699_v10 = vld [vmem:[%s2819_s21 + $0x80] sm:$0xff]  ;;  %1696 = vst [vmem:[%s2815_s20 + $0x150] sm:$0xff] %v1695_v8  ;;  %1698 = vst [vmem:[%s2815_s20 + $0x188] sm:$0xff] %v1697_v9  ;;  %v1701_v11 = vld [vmem:[%s2819_s21 + $0x90] sm:$0xff]  ;;  %s2211_s23 = sshll.u32 %s4873_s11, 3  ;;  %s4846_s22 = smov %s4873_s11 }
 0x2ae   : >> { %1700 = vst [vmem:[%s2815_s20 + $0x1c0] sm:$0xff] %v1699_v10  ;;  %v1703_v12 = vld [vmem:[%s2819_s21 + $0xa0] sm:$0xff]  ;;  %v1705_v13 = vld [vmem:[%s2819_s21 + $0xb0] sm:$0xff]  ;;  %1702 = vst [vmem:[%s2815_s20 + $0x1f8] sm:$0xff] %v1701_v11 }
 0x2af   : >> { %1704 = vst [vmem:[%s2815_s20 + $0x230] sm:$0xff] %v1703_v12  ;;  %1706 = vst [vmem:[%s2815_s20 + $0x268] sm:$0xff] %v1705_v13  ;;  %v1707_v14 = vld [vmem:[%s2819_s21 + $0xc0] sm:$0xff]  ;;  %v1709_v15 = vld [vmem:[%s2819_s21 + $0xd0] sm:$0xff] }
 0x2b0   : >> { %v1711_v16 = vld [vmem:[%s2819_s21 + $0xe0] sm:$0xff]  ;;  %1708 = vst [vmem:[%s2815_s20 + $0x2a0] sm:$0xff] %v1707_v14  ;;  %1710 = vst [vmem:[%s2815_s20 + $0x2d8] sm:$0xff] %v1709_v15  ;;  %v1713_v17 = vld [vmem:[%s2819_s21 + $0xf0] sm:$0xff]  ;;  %s1720_s21 = scalar_lea.vmem %s4360_s29, %s2211_s23 [#allocation3]  }
 0x2b1   : >> { %1712 = vst [vmem:[%s2815_s20 + $0x310] sm:$0xff] %v1711_v16  ;;  %1714 = vst [vmem:[%s2815_s20 + $0x348] sm:$0xff] %v1713_v17  ;;  %s1721_s20 = scalar_lea.vmem %s4363_s17, %s2211_s23  }
 0x2b3 PF: > { %1724 = sbr.rel (%p1511_p6) target bundleno = 776 (0x308), region = 125  ;;  %s1726_s25 = ssub.s32 (!%p1511_p6), %s4190_s30, %s4194_s18 }
 0x2b4   : > { %s1730_s26 = sshrl.u32 (!%p1511_p6), %s4190_s30, 3  ;;  %s4437_s28 = scalar_lea.vmem (!%p1511_p6), %s4147_s3, %s1726_s25 [#allocation3] }
 0x2b5   : > { %s4440_s4 = scalar_lea.vmem (!%p1511_p6), %s4188_s27, %s1726_s25  ;;  %s4444_s5 = sshrl.u32 (!%p1511_p6), %s1730_s26, 2 }
 0x2b6   : > { %p2213_p4 = scmp.le.s32.totalorder (!%p1511_p6), %s4444_s5, 0 }
 0x2ba   : > { %2122 = sbr.rel (%p2213_p4) target bundleno = 738 (0x2e2), region = 247  ;;  %s4847_s6 = smov (!%p2213_p4), %s4188_s27 }
 0x2bb   : > { %s4848_s7 = smov (!%p2213_p4), %s4147_s3  ;;  %s4453_s8 = smov (!%p2213_p4), 0  }
 0x2bc   : > { %s4455_s15 = smov (!%p2213_p4), 0  }
 0x2c1 LB: >> { %v1743_v18 = vld [vmem:[%s2835_s7] sm:$0xff]  ;;  %v1745_v19 = vld [vmem:[%s2835_s7 + $0x8] sm:$0xff]  ;;  %v1747_v20 = vld [vmem:[%s2835_s7 + $0x10] sm:$0xff]  ;;  %s1871_s16 = sadd.s32 1, %s2839_s8  ;;  %s1737_s15 = sadd.s32 1, %s2843_s15   ;;  %s2843_s15 = sphi %s4455_s15, %s1737_s15   ;;  %s2839_s8 = sphi %s4453_s8, %s4852_s8   ;;  %s2835_s7 = sphi %s4848_s7, %s4851_s7   ;;  %s2831_s6 = sphi %s4847_s6, %s4850_s6  }
 0x2c2   : >> { %1744 = vst [vmem:[%s2831_s6] sm:$0xff] %v1743_v18  ;;  %1746 = vst [vmem:[%s2831_s6 + $0x8] sm:$0xff] %v1745_v19  ;;  %v1749_v21 = vld [vmem:[%s2835_s7 + $0x18] sm:$0xff]  ;;  %v1755_v22 = vld [vmem:[%s2835_s7 + $0x20] sm:$0xff]  ;;  %p4481_p5 = scmp.ge.s32.totalorder %s1871_s16, %s4444_s5  ;;  %p1736_p7 = scmp.ge.s32.totalorder %s1737_s15, %s4444_s5 }
 0x2c3   : >> { %1748 = vst [vmem:[%s2831_s6 + $0x10] sm:$0xff] %v1747_v20  ;;  %1752 = vst [vmem:[%s2831_s6 + $0x38] sm:$0xff] %v1747_v20  ;;  %v1757_v23 = vld [vmem:[%s2835_s7 + $0x28] sm:$0xff]  ;;  %v1763_v24 = vld [vmem:[%s2835_s7 + $0x30] sm:$0xff] }
 0x2c4   : >> { %1750 = vst [vmem:[%s2831_s6 + $0x18] sm:$0xff] %v1749_v21  ;;  %1754 = vst [vmem:[%s2831_s6 + $0x40] sm:$0xff] %v1749_v21  ;;  %v1765_v25 = vld [vmem:[%s2835_s7 + $0x38] sm:$0xff]  ;;  %v1771_v26 = vld [vmem:[%s2835_s7 + $0x40] sm:$0xff]  ;;  %s4875_s16 = smov (%p4481_p5, %s1871_s16), 0 }
 0x2c5   : >> { %1756 = vst [vmem:[%s2831_s6 + $0x48] sm:$0xff] %v1755_v22  ;;  %1758 = vst [vmem:[%s2831_s6 + $0x50] sm:$0xff] %v1757_v23  ;;  %v1773_v27 = vld [vmem:[%s2835_s7 + $0x48] sm:$0xff]  ;;  %v1779_v28 = vld [vmem:[%s2835_s7 + $0x50] sm:$0xff]  ;;  %s2214_s29 = sshll.u32 %s4875_s16, 5  ;;  %s4852_s8 = smov %s4875_s16 }
 0x2c6   : >> { %1760 = vst [vmem:[%s2831_s6 + $0x70] sm:$0xff] %v1755_v22  ;;  %1762 = vst [vmem:[%s2831_s6 + $0x78] sm:$0xff] %v1757_v23  ;;  %v1781_v29 = vld [vmem:[%s2835_s7 + $0x58] sm:$0xff]  ;;  %v1787_v30 = vld [vmem:[%s2835_s7 + $0x60] sm:$0xff]  ;;  %s4536_s17 = scalar_lea.vmem %s4147_s3, %s2214_s29 [#allocation3]   ;;  %s4539_s20 = scalar_lea.vmem %s4188_s27, %s2214_s29  }
 0x2c7   : >> { %1764 = vst [vmem:[%s2831_s6 + $0x80] sm:$0xff] %v1763_v24  ;;  %1766 = vst [vmem:[%s2831_s6 + $0x88] sm:$0xff] %v1765_v25  ;;  %v1789_v31 = vld [vmem:[%s2835_s7 + $0x68] sm:$0xff]  ;;  %v1795_v32 = vld [vmem:[%s2835_s7 + $0x70] sm:$0xff] }
 0x2c8   : >> { %1768 = vst [vmem:[%s2831_s6 + $0xa8] sm:$0xff] %v1763_v24  ;;  %1770 = vst [vmem:[%s2831_s6 + $0xb0] sm:$0xff] %v1765_v25  ;;  %v1797_v33 = vld [vmem:[%s2835_s7 + $0x78] sm:$0xff]  ;;  %v1803_v34 = vld [vmem:[%s2835_s7 + $0x80] sm:$0xff] }
 0x2c9   : >> { %1772 = vst [vmem:[%s2831_s6 + $0xb8] sm:$0xff] %v1771_v26  ;;  %1776 = vst [vmem:[%s2831_s6 + $0xe0] sm:$0xff] %v1771_v26  ;;  %v1805_v35 = vld [vmem:[%s2835_s7 + $0x88] sm:$0xff]  ;;  %v1811_v36 = vld [vmem:[%s2835_s7 + $0x90] sm:$0xff] }
 0x2ca   : >> { %1774 = vst [vmem:[%s2831_s6 + $0xc0] sm:$0xff] %v1773_v27  ;;  %1778 = vst [vmem:[%s2831_s6 + $0xe8] sm:$0xff] %v1773_v27  ;;  %v1813_v37 = vld [vmem:[%s2835_s7 + $0x98] sm:$0xff]  ;;  %v1819_v38 = vld [vmem:[%s2835_s7 + $0xa0] sm:$0xff] }
 0x2cb   : >> { %1780 = vst [vmem:[%s2831_s6 + $0xf0] sm:$0xff] %v1779_v28  ;;  %1782 = vst [vmem:[%s2831_s6 + $0xf8] sm:$0xff] %v1781_v29  ;;  %v1821_v39 = vld [vmem:[%s2835_s7 + $0xa8] sm:$0xff]  ;;  %v1827_v40 = vld [vmem:[%s2835_s7 + $0xb0] sm:$0xff] }
 0x2cc   : >> { %1784 = vst [vmem:[%s2831_s6 + $0x118] sm:$0xff] %v1779_v28  ;;  %1786 = vst [vmem:[%s2831_s6 + $0x120] sm:$0xff] %v1781_v29  ;;  %v1829_v41 = vld [vmem:[%s2835_s7 + $0xb8] sm:$0xff]  ;;  %v1835_v42 = vld [vmem:[%s2835_s7 + $0xc0] sm:$0xff] }
 0x2cd   : >> { %1788 = vst [vmem:[%s2831_s6 + $0x128] sm:$0xff] %v1787_v30  ;;  %1790 = vst [vmem:[%s2831_s6 + $0x130] sm:$0xff] %v1789_v31  ;;  %v1837_v43 = vld [vmem:[%s2835_s7 + $0xc8] sm:$0xff]  ;;  %v1843_v44 = vld [vmem:[%s2835_s7 + $0xd0] sm:$0xff] }
 0x2ce   : >> { %1792 = vst [vmem:[%s2831_s6 + $0x150] sm:$0xff] %v1787_v30  ;;  %1794 = vst [vmem:[%s2831_s6 + $0x158] sm:$0xff] %v1789_v31  ;;  %v1845_v45 = vld [vmem:[%s2835_s7 + $0xd8] sm:$0xff]  ;;  %v1851_v46 = vld [vmem:[%s2835_s7 + $0xe0] sm:$0xff] }
 0x2cf   : >> { %1796 = vst [vmem:[%s2831_s6 + $0x160] sm:$0xff] %v1795_v32  ;;  %1800 = vst [vmem:[%s2831_s6 + $0x188] sm:$0xff] %v1795_v32  ;;  %v1853_v47 = vld [vmem:[%s2835_s7 + $0xe8] sm:$0xff]  ;;  %v1859_v48 = vld [vmem:[%s2835_s7 + $0xf0] sm:$0xff] }
 0x2d0   : >> { %1798 = vst [vmem:[%s2831_s6 + $0x168] sm:$0xff] %v1797_v33  ;;  %1802 = vst [vmem:[%s2831_s6 + $0x190] sm:$0xff] %v1797_v33  ;;  %v1861_v49 = vld [vmem:[%s2835_s7 + $0xf8] sm:$0xff]  ;;  %v1867_v50 = vld [vmem:[%s2835_s7 + $0x100] sm:$0xff] }
 0x2d1   : >> { %1804 = vst [vmem:[%s2831_s6 + $0x198] sm:$0xff] %v1803_v34  ;;  %1806 = vst [vmem:[%s2831_s6 + $0x1a0] sm:$0xff] %v1805_v35  ;;  %v1869_v51 = vld [vmem:[%s2835_s7 + $0x108] sm:$0xff]  ;;  %s4851_s7 = smov %s4536_s17 }
 0x2d2   : >> { %1808 = vst [vmem:[%s2831_s6 + $0x1c0] sm:$0xff] %v1803_v34  ;;  %1810 = vst [vmem:[%s2831_s6 + $0x1c8] sm:$0xff] %v1805_v35 }
 0x2d3   : >> { %1812 = vst [vmem:[%s2831_s6 + $0x1d0] sm:$0xff] %v1811_v36  ;;  %1814 = vst [vmem:[%s2831_s6 + $0x1d8] sm:$0xff] %v1813_v37 }
 0x2d4   : >> { %1816 = vst [vmem:[%s2831_s6 + $0x1f8] sm:$0xff] %v1811_v36  ;;  %1818 = vst [vmem:[%s2831_s6 + $0x200] sm:$0xff] %v1813_v37 }
 0x2d5   : >> { %1820 = vst [vmem:[%s2831_s6 + $0x208] sm:$0xff] %v1819_v38  ;;  %1824 = vst [vmem:[%s2831_s6 + $0x230] sm:$0xff] %v1819_v38 }
 0x2d6   : >> { %1822 = vst [vmem:[%s2831_s6 + $0x210] sm:$0xff] %v1821_v39  ;;  %1826 = vst [vmem:[%s2831_s6 + $0x238] sm:$0xff] %v1821_v39 }
 0x2d7   : >> { %1828 = vst [vmem:[%s2831_s6 + $0x240] sm:$0xff] %v1827_v40  ;;  %1830 = vst [vmem:[%s2831_s6 + $0x248] sm:$0xff] %v1829_v41 }
 0x2d8   : >> { %1832 = vst [vmem:[%s2831_s6 + $0x268] sm:$0xff] %v1827_v40  ;;  %1834 = vst [vmem:[%s2831_s6 + $0x270] sm:$0xff] %v1829_v41 }
 0x2d9   : >> { %1836 = vst [vmem:[%s2831_s6 + $0x278] sm:$0xff] %v1835_v42  ;;  %1838 = vst [vmem:[%s2831_s6 + $0x280] sm:$0xff] %v1837_v43 }
 0x2da   : >> { %1840 = vst [vmem:[%s2831_s6 + $0x2a0] sm:$0xff] %v1835_v42  ;;  %1842 = vst [vmem:[%s2831_s6 + $0x2a8] sm:$0xff] %v1837_v43 }
 0x2db   : >> { %1844 = vst [vmem:[%s2831_s6 + $0x2b0] sm:$0xff] %v1843_v44  ;;  %1848 = vst [vmem:[%s2831_s6 + $0x2d8] sm:$0xff] %v1843_v44  ;;  %1739 = sbr.rel (!%p1736_p7) target bundleno = 705 (0x2c1), region = 253 }
 0x2dc   : >> { %1846 = vst [vmem:[%s2831_s6 + $0x2b8] sm:$0xff] %v1845_v45  ;;  %1850 = vst [vmem:[%s2831_s6 + $0x2e0] sm:$0xff] %v1845_v45 }
 0x2dd   : >> { %1852 = vst [vmem:[%s2831_s6 + $0x2e8] sm:$0xff] %v1851_v46  ;;  %1854 = vst [vmem:[%s2831_s6 + $0x2f0] sm:$0xff] %v1853_v47 }
 0x2de   : >> { %1856 = vst [vmem:[%s2831_s6 + $0x310] sm:$0xff] %v1851_v46  ;;  %1858 = vst [vmem:[%s2831_s6 + $0x318] sm:$0xff] %v1853_v47 }
 0x2df   : >> { %1860 = vst [vmem:[%s2831_s6 + $0x320] sm:$0xff] %v1859_v48  ;;  %1862 = vst [vmem:[%s2831_s6 + $0x328] sm:$0xff] %v1861_v49 }
 0x2e0   : >> { %1864 = vst [vmem:[%s2831_s6 + $0x348] sm:$0xff] %v1859_v48  ;;  %1866 = vst [vmem:[%s2831_s6 + $0x350] sm:$0xff] %v1861_v49 }
 0x2e1   : >> { %1868 = vst [vmem:[%s2831_s6 + $0x358] sm:$0xff] %v1867_v50  ;;  %1870 = vst [vmem:[%s2831_s6 + $0x360] sm:$0xff] %v1869_v51  ;;  %s4850_s6 = smov %s4539_s20 }
 0x2e2 PF: > { %s4599_s21 = sand.u32 3, %s1730_s26   ;;  %s2229_s22 = sshll.u32 %s4444_s5, 9 }
 0x2e3   : > { %s1882_s24 = sshra.s32 %s2229_s22, 4  ;;  %p2219_p8 = scmp.le.s32.totalorder %s4599_s21, 0 }
 0x2e4   : > { %s4603_s11 = scalar_lea.vmem %s4147_s3, %s1882_s24 [#allocation3]   ;;  %s4606_s23 = scalar_lea.vmem %s4188_s27, %s1882_s24  }
 0x2e5   : > { %2136 = sbr.rel (%p2219_p8) target bundleno = 758 (0x2f6), region = 258  ;;  %s4853_s25 = smov (!%p2219_p8), %s4606_s23 }
 0x2e6   : > { %s4854_s6 = smov (!%p2219_p8), %s4603_s11  ;;  %s4615_s7 = smov (!%p2219_p8), 0  }
 0x2e7   : > { %s4617_s8 = smov (!%p2219_p8), 0  }
 0x2ec LB: >> { %v1898_v52 = vld [vmem:[%s2851_s6] sm:$0xff]  ;;  %v1900_v53 = vld [vmem:[%s2851_s6 + $0x10] sm:$0xff]  ;;  %s1930_s26 = sadd.s32 1, %s2855_s7  ;;  %s1892_s8 = sadd.s32 1, %s2859_s8   ;;  %s2859_s8 = sphi %s4617_s8, %s1892_s8   ;;  %s2855_s7 = sphi %s4615_s7, %s4855_s7   ;;  %s2851_s6 = sphi %s4854_s6, %s1935_s6   ;;  %s2847_s25 = sphi %s4853_s25, %s1936_s25  }
 0x2ed   : >> { %v1902_v54 = vld [vmem:[%s2851_s6 + $0x20] sm:$0xff]  ;;  %1899 = vst [vmem:[%s2847_s25] sm:$0xff] %v1898_v52  ;;  %1901 = vst [vmem:[%s2847_s25 + $0x38] sm:$0xff] %v1900_v53  ;;  %v1904_v55 = vld [vmem:[%s2851_s6 + $0x30] sm:$0xff]  ;;  %p1931_p9 = scmp.ge.s32.totalorder %s1930_s26, %s4599_s21  ;;  %p1891_p10 = scmp.ge.s32.totalorder %s1892_s8, %s4599_s21 }
 0x2ee   : >> { %1903 = vst [vmem:[%s2847_s25 + $0x70] sm:$0xff] %v1902_v54  ;;  %v1906_v56 = vld [vmem:[%s2851_s6 + $0x40] sm:$0xff]  ;;  %v1908_v57 = vld [vmem:[%s2851_s6 + $0x50] sm:$0xff]  ;;  %1905 = vst [vmem:[%s2847_s25 + $0xa8] sm:$0xff] %v1904_v55 }
 0x2ef   : >> { %1907 = vst [vmem:[%s2847_s25 + $0xe0] sm:$0xff] %v1906_v56  ;;  %1909 = vst [vmem:[%s2847_s25 + $0x118] sm:$0xff] %v1908_v57  ;;  %v1910_v58 = vld [vmem:[%s2851_s6 + $0x60] sm:$0xff]  ;;  %v1912_v59 = vld [vmem:[%s2851_s6 + $0x70] sm:$0xff]  ;;  %s4877_s26 = smov (%p1931_p9, %s1930_s26), 0  ;;  %1894 = sbr.rel (!%p1891_p10) target bundleno = 748 (0x2ec), region = 264 }
 0x2f0   : >> { %v1914_v60 = vld [vmem:[%s2851_s6 + $0x80] sm:$0xff]  ;;  %1911 = vst [vmem:[%s2847_s25 + $0x150] sm:$0xff] %v1910_v58  ;;  %1913 = vst [vmem:[%s2847_s25 + $0x188] sm:$0xff] %v1912_v59  ;;  %v1916_v61 = vld [vmem:[%s2851_s6 + $0x90] sm:$0xff]  ;;  %s2220_s5 = sshll.u32 %s4877_s26, 3  ;;  %s4855_s7 = smov %s4877_s26 }
 0x2f1   : >> { %1915 = vst [vmem:[%s2847_s25 + $0x1c0] sm:$0xff] %v1914_v60  ;;  %v1918_v62 = vld [vmem:[%s2851_s6 + $0xa0] sm:$0xff]  ;;  %v1920_v63 = vld [vmem:[%s2851_s6 + $0xb0] sm:$0xff]  ;;  %1917 = vst [vmem:[%s2847_s25 + $0x1f8] sm:$0xff] %v1916_v61 }
 0x2f2   : >> { %1919 = vst [vmem:[%s2847_s25 + $0x230] sm:$0xff] %v1918_v62  ;;  %1921 = vst [vmem:[%s2847_s25 + $0x268] sm:$0xff] %v1920_v63  ;;  %v1922_v0 = vld [vmem:[%s2851_s6 + $0xc0] sm:$0xff]  ;;  %v1924_v1 = vld [vmem:[%s2851_s6 + $0xd0] sm:$0xff] }
 0x2f3   : >> { %v1926_v2 = vld [vmem:[%s2851_s6 + $0xe0] sm:$0xff]  ;;  %1923 = vst [vmem:[%s2847_s25 + $0x2a0] sm:$0xff] %v1922_v0  ;;  %1925 = vst [vmem:[%s2847_s25 + $0x2d8] sm:$0xff] %v1924_v1  ;;  %v1928_v3 = vld [vmem:[%s2851_s6 + $0xf0] sm:$0xff]  ;;  %s1935_s6 = scalar_lea.vmem %s4603_s11, %s2220_s5 [#allocation3]  }
 0x2f4   : >> { %1927 = vst [vmem:[%s2847_s25 + $0x310] sm:$0xff] %v1926_v2  ;;  %1929 = vst [vmem:[%s2847_s25 + $0x348] sm:$0xff] %v1928_v3  ;;  %s1936_s25 = scalar_lea.vmem %s4606_s23, %s2220_s5  }
 0x2f6 PF: > { %s2863_s15 = smov 0  }
 0x2f7   : > { %s4675_s16 = sshllo.u32 %s2863_s15, %s4194_s18 }
 0x2f8   : > { %v1946_v4 = vld [vmem:[%s4437_s28] sm:%s4675_s16]  ;;  %v1948_v5 = vld [vmem:[%s4437_s28 + $0x10] sm:%s4675_s16] }
 0x2f9   : > { %1947 = vst [vmem:[%s4440_s4] sm:%s4675_s16] %v1946_v4  ;;  %1949 = vst [vmem:[%s4440_s4 + $0x38] sm:%s4675_s16] %v1948_v5 }
 0x2fa   : > { %v1950_v6 = vld [vmem:[%s4437_s28 + $0x20] sm:%s4675_s16]  ;;  %v1952_v7 = vld [vmem:[%s4437_s28 + $0x30] sm:%s4675_s16] }
 0x2fb   : > { %1951 = vst [vmem:[%s4440_s4 + $0x70] sm:%s4675_s16] %v1950_v6  ;;  %1953 = vst [vmem:[%s4440_s4 + $0xa8] sm:%s4675_s16] %v1952_v7 }
 0x2fc   : > { %v1954_v8 = vld [vmem:[%s4437_s28 + $0x40] sm:%s4675_s16]  ;;  %v1956_v9 = vld [vmem:[%s4437_s28 + $0x50] sm:%s4675_s16] }
 0x2fd   : > { %1955 = vst [vmem:[%s4440_s4 + $0xe0] sm:%s4675_s16] %v1954_v8  ;;  %1957 = vst [vmem:[%s4440_s4 + $0x118] sm:%s4675_s16] %v1956_v9 }
 0x2fe   : > { %v1958_v10 = vld [vmem:[%s4437_s28 + $0x60] sm:%s4675_s16]  ;;  %v1960_v11 = vld [vmem:[%s4437_s28 + $0x70] sm:%s4675_s16] }
 0x2ff   : > { %1959 = vst [vmem:[%s4440_s4 + $0x150] sm:%s4675_s16] %v1958_v10  ;;  %1961 = vst [vmem:[%s4440_s4 + $0x188] sm:%s4675_s16] %v1960_v11 }
 0x300   : > { %v1962_v12 = vld [vmem:[%s4437_s28 + $0x80] sm:%s4675_s16]  ;;  %v1964_v13 = vld [vmem:[%s4437_s28 + $0x90] sm:%s4675_s16] }
 0x301   : > { %1963 = vst [vmem:[%s4440_s4 + $0x1c0] sm:%s4675_s16] %v1962_v12  ;;  %1965 = vst [vmem:[%s4440_s4 + $0x1f8] sm:%s4675_s16] %v1964_v13 }
 0x302   : > { %v1966_v14 = vld [vmem:[%s4437_s28 + $0xa0] sm:%s4675_s16]  ;;  %v1968_v15 = vld [vmem:[%s4437_s28 + $0xb0] sm:%s4675_s16] }
 0x303   : > { %1967 = vst [vmem:[%s4440_s4 + $0x230] sm:%s4675_s16] %v1966_v14  ;;  %1969 = vst [vmem:[%s4440_s4 + $0x268] sm:%s4675_s16] %v1968_v15 }
 0x304   : > { %v1970_v16 = vld [vmem:[%s4437_s28 + $0xc0] sm:%s4675_s16]  ;;  %v1972_v17 = vld [vmem:[%s4437_s28 + $0xd0] sm:%s4675_s16] }
 0x305   : > { %1971 = vst [vmem:[%s4440_s4 + $0x2a0] sm:%s4675_s16] %v1970_v16  ;;  %1973 = vst [vmem:[%s4440_s4 + $0x2d8] sm:%s4675_s16] %v1972_v17 }
 0x306   : > { %v1974_v18 = vld [vmem:[%s4437_s28 + $0xe0] sm:%s4675_s16]  ;;  %v1976_v19 = vld [vmem:[%s4437_s28 + $0xf0] sm:%s4675_s16] }
 0x307   : > { %1975 = vst [vmem:[%s4440_s4 + $0x310] sm:%s4675_s16] %v1974_v18  ;;  %1977 = vst [vmem:[%s4440_s4 + $0x348] sm:%s4675_s16] %v1976_v19 }
 0x308 PF: > { %p2222_p6 = scmp.ge.u32.totalorder %s4190_s30, 8 }
 0x309   : > { %s2864_s18 = smov (!%p2222_p6), 0  }
 0x30a   : > { %1468 = sbr.rel (%p2222_p6) target bundleno = 795 (0x31b), region = 96  ;;  %s4743_s28 = sshllo.u32 (!%p2222_p6), %s2864_s18, %s4190_s30 }
 0x30b   : > { %v1478_v20 = vld [vmem:[%s4147_s3] sm:%s4743_s28] (!%p2222_p6)  ;;  %v1480_v21 = vld [vmem:[%s4147_s3 + $0x10] sm:%s4743_s28] (!%p2222_p6) }
 0x30c   : > { %1479 = vst [vmem:[%s4188_s27] sm:%s4743_s28] (!%p2222_p6), %v1478_v20  ;;  %1481 = vst [vmem:[%s4188_s27 + $0x38] sm:%s4743_s28] (!%p2222_p6), %v1480_v21 }
 0x30d   : > { %v1482_v22 = vld [vmem:[%s4147_s3 + $0x20] sm:%s4743_s28] (!%p2222_p6)  ;;  %v1484_v23 = vld [vmem:[%s4147_s3 + $0x30] sm:%s4743_s28] (!%p2222_p6) }
 0x30e   : > { %1483 = vst [vmem:[%s4188_s27 + $0x70] sm:%s4743_s28] (!%p2222_p6), %v1482_v22  ;;  %1485 = vst [vmem:[%s4188_s27 + $0xa8] sm:%s4743_s28] (!%p2222_p6), %v1484_v23 }
 0x30f   : > { %v1486_v24 = vld [vmem:[%s4147_s3 + $0x40] sm:%s4743_s28] (!%p2222_p6)  ;;  %v1488_v25 = vld [vmem:[%s4147_s3 + $0x50] sm:%s4743_s28] (!%p2222_p6) }
 0x310   : > { %1487 = vst [vmem:[%s4188_s27 + $0xe0] sm:%s4743_s28] (!%p2222_p6), %v1486_v24  ;;  %1489 = vst [vmem:[%s4188_s27 + $0x118] sm:%s4743_s28] (!%p2222_p6), %v1488_v25 }
 0x311   : > { %v1490_v26 = vld [vmem:[%s4147_s3 + $0x60] sm:%s4743_s28]  ;;  %v1492_v27 = vld [vmem:[%s4147_s3 + $0x70] sm:%s4743_s28] }
 0x312   : > { %1491 = vst [vmem:[%s4188_s27 + $0x150] sm:%s4743_s28] %v1490_v26  ;;  %1493 = vst [vmem:[%s4188_s27 + $0x188] sm:%s4743_s28] %v1492_v27 }
 0x313   : > { %v1494_v28 = vld [vmem:[%s4147_s3 + $0x80] sm:%s4743_s28]  ;;  %v1496_v29 = vld [vmem:[%s4147_s3 + $0x90] sm:%s4743_s28] }
 0x314   : > { %1495 = vst [vmem:[%s4188_s27 + $0x1c0] sm:%s4743_s28] %v1494_v28  ;;  %1497 = vst [vmem:[%s4188_s27 + $0x1f8] sm:%s4743_s28] %v1496_v29 }
 0x315   : > { %v1498_v30 = vld [vmem:[%s4147_s3 + $0xa0] sm:%s4743_s28]  ;;  %v1500_v31 = vld [vmem:[%s4147_s3 + $0xb0] sm:%s4743_s28] }
 0x316   : > { %1499 = vst [vmem:[%s4188_s27 + $0x230] sm:%s4743_s28] %v1498_v30  ;;  %1501 = vst [vmem:[%s4188_s27 + $0x268] sm:%s4743_s28] %v1500_v31 }
 0x317   : > { %v1502_v32 = vld [vmem:[%s4147_s3 + $0xc0] sm:%s4743_s28]  ;;  %v1504_v33 = vld [vmem:[%s4147_s3 + $0xd0] sm:%s4743_s28] }
 0x318   : > { %1503 = vst [vmem:[%s4188_s27 + $0x2a0] sm:%s4743_s28] %v1502_v32  ;;  %1505 = vst [vmem:[%s4188_s27 + $0x2d8] sm:%s4743_s28] %v1504_v33 }
 0x319   : > { %v1506_v34 = vld [vmem:[%s4147_s3 + $0xe0] sm:%s4743_s28]  ;;  %v1508_v35 = vld [vmem:[%s4147_s3 + $0xf0] sm:%s4743_s28] }
 0x31a   : > { %1507 = vst [vmem:[%s4188_s27 + $0x310] sm:%s4743_s28] %v1506_v34  ;;  %1509 = vst [vmem:[%s4188_s27 + $0x348] sm:%s4743_s28] %v1508_v35 }
 0x31b PF: > { %s12_s13 = sadd.s32 1, %s2763_s13   ;;  %s4856_s9 = smov %s2751_s10 }
 0x31c   : > { %p9_p11 = scmp.ge.s32.totalorder %s12_s13, 6   ;;  %s4857_s10 = smov %s2920_s19 }
 0x31d   : > { %s4858_s11 = smov %s2759_s12  ;;  %s4859_s12 = smov %s4861_s14 }
 0x31e   :  { %11 = sbr.rel (!%p9_p11) target bundleno = 3 (0x3), region = 275 }

// kernel: tpu_custom_call.1
= control target key start
LH: loop header
LB: loop body
LE: loop exit
PB: predicated region body
PF: predicated region fallthrough
CT: control target
= control target key end

     0   :  { %s2880_s9 = smov 0   ;;  %s2882_s10 = smov 0   ;;  %s4824_s0 = inlined_call_operand.vmem [shape: f32[1,512,784], index: 0, kind: input, shape index: {}]   ;;  %s4825_s1 = inlined_call_operand.vmem [shape: f32[128,512], index: 1, kind: input, shape index: {}]   ;;  %s4826_s2 = inlined_call_operand.vmem [shape: f32[1,128,784], index: 2, kind: output, shape index: {}]  }
   0x1   :  { %s2884_s11 = smov 0   ;;  %s2886_s12 = smov 0  }
   0x2   :  { %s2888_s13 = smov 0  }
   0x3 LB: > { %s21_s14 = sadd.s32 1, %s2759_s12  ;;  %s2174_s15 = sadd.s32 4294967295, %s2763_s13   ;;  %s2763_s13 = sphi %s2888_s13, %s12_s13   ;;  %s2759_s12 = sphi %s2886_s12, %s4859_s12   ;;  %s2755_s11 = sphi %s2884_s11, %s4858_s11   ;;  %s2751_s10 = sphi %s2882_s10, %s4857_s10   ;;  %s2747_s9 = sphi %s2880_s9, %s4856_s9  }
   0x4   : > { %p22_p0 = scmp.ge.s32.totalorder %s21_s14, 4  ;;  %p40_p1 = scmp.ne.s32.totalorder %s2751_s10, %s2747_s9 }
   0x5   : > { %p41_p2 = scmp.eq.s32.totalorder %s2763_s13, 0  ;;  %p93_p4 = scmp.eq.s32.totalorder %s2174_s15, 3 }
   0x6   : > { %s4861_s14 = smov (%p22_p0, %s21_s14), 0  ;;  %s33_s17 = sadd.s32 1, %s2751_s10 }
   0x7   : > { %p42_p3 = por %p41_p2, %p40_p1  ;;  %s29_s16 = ssub.s32 %s2759_s12, %s4861_s14 }
   0x8   : > { %p31_p5 = scmp.eq.s32.totalorder %s29_s16, 0  ;;  %p2915_p6 = por %p93_p4, %p40_p1 }
   0x9   : > { %p2177_p7 = scmp.ge.s32.totalorder %s2763_s13, 4 }
   0xa   : > { %s2920_s19 = scalar_select %p31_p5, %s2751_s10, %s33_s17  }
   0xb   : > { %118 = sbr.rel (%p2177_p7) target bundleno = 254 (0xfe), region = 20 }
  0x12   : > { %121 = sbr.rel (!%p42_p3) target bundleno = 254 (0xfe), region = 24  ;;  %s123_s20 = sand.u32 (%p42_p3), 1, %s2751_s10  }
  0x13   : > { %s2179_s21 = sshll.u32 (%p42_p3), %s2759_s12, 1  ;;  %s2178_s22 = sshll.u32 (%p42_p3), %s123_s20, 10 }
  0x14   : > { %s127_s23 = ssub.s32 (%p42_p3), 7, %s2179_s21  ;;  %s2225_s24 = sshll.u32 (%p42_p3), %s2759_s12, 4 }
  0x15   : > { %p128_p8 = scmp.lt.s32.totalorder (%p42_p3), %s127_s23, 2  ;;  %s2929_s27 = scalar_lea.vmem (%p42_p3), %s4824_s0, %s2225_s24  }
  0x16   : > { %s2933_s30 = scalar_lea.vmem (%p42_p3), [#allocation2], %s2178_s22  }
  0x19   : > { %s4863_s23 = smov (!%p128_p8, %s127_s23), 2 }
  0x1a   : > { %s2180_s28 = sshll.u32 %s4863_s23, 13  ;;  %s2931_s29 = sshll.u32 %s4863_s23, 3 }
  0x1b   : > { %p2184_p9 = scmp.eq.s32.totalorder %s2180_s28, 0 }
  0x1c   : > { %p140_p10 = scmp.lt.u32.totalorder (!%p2184_p9), %s2931_s29, 8 }
  0x1d   : > { %139 = sbr.rel (%p2184_p9) target bundleno = 254 (0xfe), region = 28 }
  0x24   : > { %143 = sbr.rel (%p140_p10) target bundleno = 187 (0xbb), region = 32  ;;  %s2937_s3 = sand.u32 (!%p140_p10), 7, %s2931_s29  }
  0x25   : > { %p285_p11 = scmp.eq.s32.totalorder (!%p140_p10), %s2937_s3, 0  ;;  %p2185_p12 = scmp.ne.s32.totalorder (!%p140_p10), %s2937_s3, 0 }
  0x2b   : > { %288 = sbr.rel (%p2185_p12) target bundleno = 83 (0x53), region = 47  ;;  %s289_s4 = sshrl.u32 (!%p2185_p12), %s2931_s29, 3 }
  0x2c   : > { %s4828_s5 = smov (!%p2185_p12), %s2933_s30  ;;  %s4829_s6 = smov (!%p2185_p12), %s2929_s27 }
  0x2d   : > { %s2948_s7 = smov (!%p2185_p12), 0   ;;  %s2950_s8 = smov (!%p2185_p12), 0  }
  0x32 LB: >> { %v301_v0 = vld [vmem:[%s2771_s6] sm:$0xff]  ;;  %v303_v1 = vld [vmem:[%s2771_s6 + $0x38] sm:$0xff]  ;;  %v305_v2 = vld [vmem:[%s2771_s6 + $0x70] sm:$0xff]  ;;  %s429_s15 = sadd.s32 1, %s2775_s7  ;;  %s295_s8 = sadd.s32 1, %s2779_s8   ;;  %s2779_s8 = sphi %s2950_s8, %s295_s8   ;;  %s2775_s7 = sphi %s2948_s7, %s4832_s7   ;;  %s2771_s6 = sphi %s4829_s6, %s4831_s6   ;;  %s2767_s5 = sphi %s4828_s5, %s4830_s5  }
  0x33   : >> { %302 = vst [vmem:[%s2767_s5] sm:$0xff] %v301_v0  ;;  %304 = vst [vmem:[%s2767_s5 + $0x10] sm:$0xff] %v303_v1  ;;  %v307_v3 = vld [vmem:[%s2771_s6 + $0xa8] sm:$0xff]  ;;  %v309_v4 = vld [vmem:[%s2771_s6 + $0xe0] sm:$0xff]  ;;  %p430_p13 = scmp.ge.s32.totalorder %s429_s15, %s289_s4  ;;  %p294_p0 = scmp.ge.s32.totalorder %s295_s8, %s289_s4 }
  0x34   : >> { %306 = vst [vmem:[%s2767_s5 + $0x20] sm:$0xff] %v305_v2  ;;  %v311_v5 = vld [vmem:[%s2771_s6 + $0x118] sm:$0xff]  ;;  %308 = vst [vmem:[%s2767_s5 + $0x30] sm:$0xff] %v307_v3  ;;  %v313_v6 = vld [vmem:[%s2771_s6 + $0x150] sm:$0xff] }
  0x35   : >> { %310 = vst [vmem:[%s2767_s5 + $0x40] sm:$0xff] %v309_v4  ;;  %312 = vst [vmem:[%s2767_s5 + $0x50] sm:$0xff] %v311_v5  ;;  %v315_v7 = vld [vmem:[%s2771_s6 + $0x188] sm:$0xff]  ;;  %v317_v8 = vld [vmem:[%s2771_s6 + $0x1c0] sm:$0xff]  ;;  %s4865_s15 = smov (%p430_p13, %s429_s15), 0 }
  0x36   : >> { %314 = vst [vmem:[%s2767_s5 + $0x60] sm:$0xff] %v313_v6  ;;  %316 = vst [vmem:[%s2767_s5 + $0x70] sm:$0xff] %v315_v7  ;;  %v319_v9 = vld [vmem:[%s2771_s6 + $0x1f8] sm:$0xff]  ;;  %v321_v10 = vld [vmem:[%s2771_s6 + $0x230] sm:$0xff]  ;;  %s2187_s16 = sshll.u32 %s4865_s15, 3  ;;  %s4832_s7 = smov %s4865_s15 }
  0x37   : >> { %318 = vst [vmem:[%s2767_s5 + $0x80] sm:$0xff] %v317_v8  ;;  %v323_v11 = vld [vmem:[%s2771_s6 + $0x268] sm:$0xff]  ;;  %320 = vst [vmem:[%s2767_s5 + $0x90] sm:$0xff] %v319_v9  ;;  %v325_v12 = vld [vmem:[%s2771_s6 + $0x2a0] sm:$0xff]  ;;  %s3007_s17 = scalar_lea.vmem %s2929_s27, %s2187_s16   ;;  %s3010_s20 = scalar_lea.vmem %s2933_s30, %s2187_s16 [#allocation2]  }
  0x38   : >> { %322 = vst [vmem:[%s2767_s5 + $0xa0] sm:$0xff] %v321_v10  ;;  %324 = vst [vmem:[%s2767_s5 + $0xb0] sm:$0xff] %v323_v11  ;;  %v327_v13 = vld [vmem:[%s2771_s6 + $0x2d8] sm:$0xff]  ;;  %v329_v14 = vld [vmem:[%s2771_s6 + $0x310] sm:$0xff] }
  0x39   : >> { %326 = vst [vmem:[%s2767_s5 + $0xc0] sm:$0xff] %v325_v12  ;;  %328 = vst [vmem:[%s2767_s5 + $0xd0] sm:$0xff] %v327_v13  ;;  %v331_v15 = vld [vmem:[%s2771_s6 + $0x348] sm:$0xff]  ;;  %v333_v16 = vld [vmem:[%s2771_s6 + $0x380] sm:$0xff] }
  0x3a   : >> { %330 = vst [vmem:[%s2767_s5 + $0xe0] sm:$0xff] %v329_v14  ;;  %v335_v17 = vld [vmem:[%s2771_s6 + $0x3b8] sm:$0xff]  ;;  %332 = vst [vmem:[%s2767_s5 + $0xf0] sm:$0xff] %v331_v15  ;;  %v337_v18 = vld [vmem:[%s2771_s6 + $0x3f0] sm:$0xff] }
  0x3b   : >> { %334 = vst [vmem:[%s2767_s5 + $0x100] sm:$0xff] %v333_v16  ;;  %336 = vst [vmem:[%s2767_s5 + $0x110] sm:$0xff] %v335_v17  ;;  %v339_v19 = vld [vmem:[%s2771_s6 + $0x428] sm:$0xff]  ;;  %v341_v20 = vld [vmem:[%s2771_s6 + $0x460] sm:$0xff] }
  0x3c   : >> { %338 = vst [vmem:[%s2767_s5 + $0x120] sm:$0xff] %v337_v18  ;;  %340 = vst [vmem:[%s2767_s5 + $0x130] sm:$0xff] %v339_v19  ;;  %v343_v21 = vld [vmem:[%s2771_s6 + $0x498] sm:$0xff]  ;;  %v345_v22 = vld [vmem:[%s2771_s6 + $0x4d0] sm:$0xff] }
  0x3d   : >> { %342 = vst [vmem:[%s2767_s5 + $0x140] sm:$0xff] %v341_v20  ;;  %v347_v23 = vld [vmem:[%s2771_s6 + $0x508] sm:$0xff]  ;;  %344 = vst [vmem:[%s2767_s5 + $0x150] sm:$0xff] %v343_v21  ;;  %v349_v24 = vld [vmem:[%s2771_s6 + $0x540] sm:$0xff] }
  0x3e   : >> { %346 = vst [vmem:[%s2767_s5 + $0x160] sm:$0xff] %v345_v22  ;;  %348 = vst [vmem:[%s2767_s5 + $0x170] sm:$0xff] %v347_v23  ;;  %v351_v25 = vld [vmem:[%s2771_s6 + $0x578] sm:$0xff]  ;;  %v353_v26 = vld [vmem:[%s2771_s6 + $0x5b0] sm:$0xff] }
  0x3f   : >> { %350 = vst [vmem:[%s2767_s5 + $0x180] sm:$0xff] %v349_v24  ;;  %352 = vst [vmem:[%s2767_s5 + $0x190] sm:$0xff] %v351_v25  ;;  %v355_v27 = vld [vmem:[%s2771_s6 + $0x5e8] sm:$0xff]  ;;  %v357_v28 = vld [vmem:[%s2771_s6 + $0x620] sm:$0xff] }
  0x40   : >> { %354 = vst [vmem:[%s2767_s5 + $0x1a0] sm:$0xff] %v353_v26  ;;  %v359_v29 = vld [vmem:[%s2771_s6 + $0x658] sm:$0xff]  ;;  %356 = vst [vmem:[%s2767_s5 + $0x1b0] sm:$0xff] %v355_v27  ;;  %v361_v30 = vld [vmem:[%s2771_s6 + $0x690] sm:$0xff] }
  0x41   : >> { %358 = vst [vmem:[%s2767_s5 + $0x1c0] sm:$0xff] %v357_v28  ;;  %360 = vst [vmem:[%s2767_s5 + $0x1d0] sm:$0xff] %v359_v29  ;;  %v363_v31 = vld [vmem:[%s2771_s6 + $0x6c8] sm:$0xff]  ;;  %v365_v32 = vld [vmem:[%s2771_s6 + $0x700] sm:$0xff] }
  0x42   : >> { %362 = vst [vmem:[%s2767_s5 + $0x1e0] sm:$0xff] %v361_v30  ;;  %364 = vst [vmem:[%s2767_s5 + $0x1f0] sm:$0xff] %v363_v31  ;;  %v367_v33 = vld [vmem:[%s2771_s6 + $0x738] sm:$0xff]  ;;  %v369_v34 = vld [vmem:[%s2771_s6 + $0x770] sm:$0xff] }
  0x43   : >> { %366 = vst [vmem:[%s2767_s5 + $0x200] sm:$0xff] %v365_v32  ;;  %v371_v35 = vld [vmem:[%s2771_s6 + $0x7a8] sm:$0xff]  ;;  %368 = vst [vmem:[%s2767_s5 + $0x210] sm:$0xff] %v367_v33  ;;  %v373_v36 = vld [vmem:[%s2771_s6 + $0x7e0] sm:$0xff] }
  0x44   : >> { %370 = vst [vmem:[%s2767_s5 + $0x220] sm:$0xff] %v369_v34  ;;  %372 = vst [vmem:[%s2767_s5 + $0x230] sm:$0xff] %v371_v35  ;;  %v375_v37 = vld [vmem:[%s2771_s6 + $0x818] sm:$0xff]  ;;  %v377_v38 = vld [vmem:[%s2771_s6 + $0x850] sm:$0xff] }
  0x45   : >> { %374 = vst [vmem:[%s2767_s5 + $0x240] sm:$0xff] %v373_v36  ;;  %376 = vst [vmem:[%s2767_s5 + $0x250] sm:$0xff] %v375_v37  ;;  %v379_v39 = vld [vmem:[%s2771_s6 + $0x888] sm:$0xff]  ;;  %v381_v40 = vld [vmem:[%s2771_s6 + $0x8c0] sm:$0xff] }
  0x46   : >> { %378 = vst [vmem:[%s2767_s5 + $0x260] sm:$0xff] %v377_v38  ;;  %v383_v41 = vld [vmem:[%s2771_s6 + $0x8f8] sm:$0xff]  ;;  %380 = vst [vmem:[%s2767_s5 + $0x270] sm:$0xff] %v379_v39  ;;  %v385_v42 = vld [vmem:[%s2771_s6 + $0x930] sm:$0xff] }
  0x47   : >> { %382 = vst [vmem:[%s2767_s5 + $0x280] sm:$0xff] %v381_v40  ;;  %384 = vst [vmem:[%s2767_s5 + $0x290] sm:$0xff] %v383_v41  ;;  %v387_v43 = vld [vmem:[%s2771_s6 + $0x968] sm:$0xff]  ;;  %v389_v44 = vld [vmem:[%s2771_s6 + $0x9a0] sm:$0xff] }
  0x48   : >> { %386 = vst [vmem:[%s2767_s5 + $0x2a0] sm:$0xff] %v385_v42  ;;  %388 = vst [vmem:[%s2767_s5 + $0x2b0] sm:$0xff] %v387_v43  ;;  %v391_v45 = vld [vmem:[%s2771_s6 + $0x9d8] sm:$0xff]  ;;  %v393_v46 = vld [vmem:[%s2771_s6 + $0xa10] sm:$0xff] }
  0x49   : >> { %390 = vst [vmem:[%s2767_s5 + $0x2c0] sm:$0xff] %v389_v44  ;;  %v395_v47 = vld [vmem:[%s2771_s6 + $0xa48] sm:$0xff]  ;;  %392 = vst [vmem:[%s2767_s5 + $0x2d0] sm:$0xff] %v391_v45  ;;  %v397_v48 = vld [vmem:[%s2771_s6 + $0xa80] sm:$0xff] }
  0x4a   : >> { %394 = vst [vmem:[%s2767_s5 + $0x2e0] sm:$0xff] %v393_v46  ;;  %396 = vst [vmem:[%s2767_s5 + $0x2f0] sm:$0xff] %v395_v47  ;;  %v399_v49 = vld [vmem:[%s2771_s6 + $0xab8] sm:$0xff]  ;;  %v401_v50 = vld [vmem:[%s2771_s6 + $0xaf0] sm:$0xff] }
  0x4b   : >> { %398 = vst [vmem:[%s2767_s5 + $0x300] sm:$0xff] %v397_v48  ;;  %400 = vst [vmem:[%s2767_s5 + $0x310] sm:$0xff] %v399_v49  ;;  %v403_v51 = vld [vmem:[%s2771_s6 + $0xb28] sm:$0xff]  ;;  %v405_v52 = vld [vmem:[%s2771_s6 + $0xb60] sm:$0xff] }
  0x4c   : >> { %402 = vst [vmem:[%s2767_s5 + $0x320] sm:$0xff] %v401_v50  ;;  %v407_v53 = vld [vmem:[%s2771_s6 + $0xb98] sm:$0xff]  ;;  %404 = vst [vmem:[%s2767_s5 + $0x330] sm:$0xff] %v403_v51  ;;  %v409_v54 = vld [vmem:[%s2771_s6 + $0xbd0] sm:$0xff]  ;;  %297 = sbr.rel (!%p294_p0) target bundleno = 50 (0x32), region = 209 }
  0x4d   : >> { %406 = vst [vmem:[%s2767_s5 + $0x340] sm:$0xff] %v405_v52  ;;  %408 = vst [vmem:[%s2767_s5 + $0x350] sm:$0xff] %v407_v53  ;;  %v411_v55 = vld [vmem:[%s2771_s6 + $0xc08] sm:$0xff]  ;;  %v413_v56 = vld [vmem:[%s2771_s6 + $0xc40] sm:$0xff] }
  0x4e   : >> { %410 = vst [vmem:[%s2767_s5 + $0x360] sm:$0xff] %v409_v54  ;;  %412 = vst [vmem:[%s2767_s5 + $0x370] sm:$0xff] %v411_v55  ;;  %v415_v57 = vld [vmem:[%s2771_s6 + $0xc78] sm:$0xff]  ;;  %v417_v58 = vld [vmem:[%s2771_s6 + $0xcb0] sm:$0xff] }
  0x4f   : >> { %414 = vst [vmem:[%s2767_s5 + $0x380] sm:$0xff] %v413_v56  ;;  %v419_v59 = vld [vmem:[%s2771_s6 + $0xce8] sm:$0xff]  ;;  %416 = vst [vmem:[%s2767_s5 + $0x390] sm:$0xff] %v415_v57  ;;  %v421_v60 = vld [vmem:[%s2771_s6 + $0xd20] sm:$0xff] }
  0x50   : >> { %418 = vst [vmem:[%s2767_s5 + $0x3a0] sm:$0xff] %v417_v58  ;;  %420 = vst [vmem:[%s2767_s5 + $0x3b0] sm:$0xff] %v419_v59  ;;  %v423_v61 = vld [vmem:[%s2771_s6 + $0xd58] sm:$0xff]  ;;  %v425_v62 = vld [vmem:[%s2771_s6 + $0xd90] sm:$0xff] }
  0x51   : >> { %422 = vst [vmem:[%s2767_s5 + $0x3c0] sm:$0xff] %v421_v60  ;;  %424 = vst [vmem:[%s2767_s5 + $0x3d0] sm:$0xff] %v423_v61  ;;  %v427_v63 = vld [vmem:[%s2771_s6 + $0xdc8] sm:$0xff]  ;;  %s4831_s6 = smov %s3007_s17 }
  0x52   : >> { %426 = vst [vmem:[%s2767_s5 + $0x3e0] sm:$0xff] %v425_v62  ;;  %428 = vst [vmem:[%s2767_s5 + $0x3f0] sm:$0xff] %v427_v63  ;;  %s4830_s5 = smov %s3010_s20 }
  0x53 PF: > { %438 = sbr.rel (%p285_p11) target bundleno = 187 (0xbb), region = 58  ;;  %s440_s21 = ssub.s32 (!%p285_p11), %s2931_s29, %s2937_s3 }
  0x54   : > { %s444_s22 = sshrl.u32 (!%p285_p11), %s2931_s29, 3  ;;  %s3121_s23 = scalar_lea.vmem (!%p285_p11), %s2929_s27, %s440_s21 }
  0x55   : > { %s3124_s24 = scalar_lea.vmem (!%p285_p11), %s2933_s30, %s440_s21 [#allocation2]  ;;  %s4833_s25 = smov (!%p285_p11), %s2933_s30 }
  0x56   : > { %s4834_s26 = smov (!%p285_p11), %s2929_s27  ;;  %s3132_s28 = smov (!%p285_p11), 0  }
  0x57   : > { %s3134_s4 = smov (!%p285_p11), 0  }
  0x5a LB: >> { %v456_v0 = vld [vmem:[%s2787_s26] sm:$0xff]  ;;  %v458_v1 = vld [vmem:[%s2787_s26 + $0x38] sm:$0xff]  ;;  %v460_v2 = vld [vmem:[%s2787_s26 + $0x70] sm:$0xff]  ;;  %s584_s5 = sadd.s32 1, %s2791_s28  ;;  %s450_s4 = sadd.s32 1, %s2795_s4   ;;  %s2795_s4 = sphi %s3134_s4, %s450_s4   ;;  %s2791_s28 = sphi %s3132_s28, %s4837_s28   ;;  %s2787_s26 = sphi %s4834_s26, %s4836_s26   ;;  %s2783_s25 = sphi %s4833_s25, %s4835_s25  }
  0x5b   : >> { %457 = vst [vmem:[%s2783_s25] sm:$0xff] %v456_v0  ;;  %459 = vst [vmem:[%s2783_s25 + $0x10] sm:$0xff] %v458_v1  ;;  %v462_v3 = vld [vmem:[%s2787_s26 + $0xa8] sm:$0xff]  ;;  %v464_v4 = vld [vmem:[%s2787_s26 + $0xe0] sm:$0xff]  ;;  %p585_p1 = scmp.ge.s32.totalorder %s584_s5, %s444_s22  ;;  %p449_p2 = scmp.ge.s32.totalorder %s450_s4, %s444_s22 }
  0x5c   : >> { %461 = vst [vmem:[%s2783_s25 + $0x20] sm:$0xff] %v460_v2  ;;  %v466_v5 = vld [vmem:[%s2787_s26 + $0x118] sm:$0xff]  ;;  %463 = vst [vmem:[%s2783_s25 + $0x30] sm:$0xff] %v462_v3  ;;  %v468_v6 = vld [vmem:[%s2787_s26 + $0x150] sm:$0xff]  ;;  %s2861_s15 = smov (%p449_p2), 0  }
  0x5d   : >> { %465 = vst [vmem:[%s2783_s25 + $0x40] sm:$0xff] %v464_v4  ;;  %467 = vst [vmem:[%s2783_s25 + $0x50] sm:$0xff] %v466_v5  ;;  %v470_v7 = vld [vmem:[%s2787_s26 + $0x188] sm:$0xff]  ;;  %v472_v8 = vld [vmem:[%s2787_s26 + $0x1c0] sm:$0xff]  ;;  %s4867_s5 = smov (%p585_p1, %s584_s5), 0  ;;  %s3300_s16 = sshllo.u32 (%p449_p2), %s2861_s15, %s2937_s3 }
  0x5e   : >> { %469 = vst [vmem:[%s2783_s25 + $0x60] sm:$0xff] %v468_v6  ;;  %471 = vst [vmem:[%s2783_s25 + $0x70] sm:$0xff] %v470_v7  ;;  %v474_v9 = vld [vmem:[%s2787_s26 + $0x1f8] sm:$0xff]  ;;  %v476_v10 = vld [vmem:[%s2787_s26 + $0x230] sm:$0xff]  ;;  %s2190_s6 = sshll.u32 %s4867_s5, 3  ;;  %s4837_s28 = smov %s4867_s5 }
  0x5f   : >> { %473 = vst [vmem:[%s2783_s25 + $0x80] sm:$0xff] %v472_v8  ;;  %v478_v11 = vld [vmem:[%s2787_s26 + $0x268] sm:$0xff]  ;;  %475 = vst [vmem:[%s2783_s25 + $0x90] sm:$0xff] %v474_v9  ;;  %v480_v12 = vld [vmem:[%s2787_s26 + $0x2a0] sm:$0xff]  ;;  %s3191_s7 = scalar_lea.vmem %s2929_s27, %s2190_s6   ;;  %s3194_s8 = scalar_lea.vmem %s2933_s30, %s2190_s6 [#allocation2]  }
  0x60   : >> { %477 = vst [vmem:[%s2783_s25 + $0xa0] sm:$0xff] %v476_v10  ;;  %479 = vst [vmem:[%s2783_s25 + $0xb0] sm:$0xff] %v478_v11  ;;  %v482_v13 = vld [vmem:[%s2787_s26 + $0x2d8] sm:$0xff]  ;;  %v484_v14 = vld [vmem:[%s2787_s26 + $0x310] sm:$0xff] }
  0x61   : >> { %481 = vst [vmem:[%s2783_s25 + $0xc0] sm:$0xff] %v480_v12  ;;  %483 = vst [vmem:[%s2783_s25 + $0xd0] sm:$0xff] %v482_v13  ;;  %v486_v15 = vld [vmem:[%s2787_s26 + $0x348] sm:$0xff]  ;;  %v488_v16 = vld [vmem:[%s2787_s26 + $0x380] sm:$0xff] }
  0x62   : >> { %485 = vst [vmem:[%s2783_s25 + $0xe0] sm:$0xff] %v484_v14  ;;  %v490_v17 = vld [vmem:[%s2787_s26 + $0x3b8] sm:$0xff]  ;;  %487 = vst [vmem:[%s2783_s25 + $0xf0] sm:$0xff] %v486_v15  ;;  %v492_v18 = vld [vmem:[%s2787_s26 + $0x3f0] sm:$0xff] }
  0x63   : >> { %489 = vst [vmem:[%s2783_s25 + $0x100] sm:$0xff] %v488_v16  ;;  %491 = vst [vmem:[%s2783_s25 + $0x110] sm:$0xff] %v490_v17  ;;  %v494_v19 = vld [vmem:[%s2787_s26 + $0x428] sm:$0xff]  ;;  %v496_v20 = vld [vmem:[%s2787_s26 + $0x460] sm:$0xff] }
  0x64   : >> { %493 = vst [vmem:[%s2783_s25 + $0x120] sm:$0xff] %v492_v18  ;;  %495 = vst [vmem:[%s2783_s25 + $0x130] sm:$0xff] %v494_v19  ;;  %v498_v21 = vld [vmem:[%s2787_s26 + $0x498] sm:$0xff]  ;;  %v500_v22 = vld [vmem:[%s2787_s26 + $0x4d0] sm:$0xff] }
  0x65   : >> { %497 = vst [vmem:[%s2783_s25 + $0x140] sm:$0xff] %v496_v20  ;;  %v502_v23 = vld [vmem:[%s2787_s26 + $0x508] sm:$0xff]  ;;  %499 = vst [vmem:[%s2783_s25 + $0x150] sm:$0xff] %v498_v21  ;;  %v504_v24 = vld [vmem:[%s2787_s26 + $0x540] sm:$0xff] }
  0x66   : >> { %501 = vst [vmem:[%s2783_s25 + $0x160] sm:$0xff] %v500_v22  ;;  %503 = vst [vmem:[%s2783_s25 + $0x170] sm:$0xff] %v502_v23  ;;  %v506_v25 = vld [vmem:[%s2787_s26 + $0x578] sm:$0xff]  ;;  %v508_v26 = vld [vmem:[%s2787_s26 + $0x5b0] sm:$0xff] }
  0x67   : >> { %505 = vst [vmem:[%s2783_s25 + $0x180] sm:$0xff] %v504_v24  ;;  %507 = vst [vmem:[%s2783_s25 + $0x190] sm:$0xff] %v506_v25  ;;  %v510_v27 = vld [vmem:[%s2787_s26 + $0x5e8] sm:$0xff]  ;;  %v512_v28 = vld [vmem:[%s2787_s26 + $0x620] sm:$0xff] }
  0x68   : >> { %509 = vst [vmem:[%s2783_s25 + $0x1a0] sm:$0xff] %v508_v26  ;;  %v514_v29 = vld [vmem:[%s2787_s26 + $0x658] sm:$0xff]  ;;  %511 = vst [vmem:[%s2783_s25 + $0x1b0] sm:$0xff] %v510_v27  ;;  %v516_v30 = vld [vmem:[%s2787_s26 + $0x690] sm:$0xff] }
  0x69   : >> { %513 = vst [vmem:[%s2783_s25 + $0x1c0] sm:$0xff] %v512_v28  ;;  %515 = vst [vmem:[%s2783_s25 + $0x1d0] sm:$0xff] %v514_v29  ;;  %v518_v31 = vld [vmem:[%s2787_s26 + $0x6c8] sm:$0xff]  ;;  %v520_v32 = vld [vmem:[%s2787_s26 + $0x700] sm:$0xff] }
  0x6a   : >> { %517 = vst [vmem:[%s2783_s25 + $0x1e0] sm:$0xff] %v516_v30  ;;  %519 = vst [vmem:[%s2783_s25 + $0x1f0] sm:$0xff] %v518_v31  ;;  %v522_v33 = vld [vmem:[%s2787_s26 + $0x738] sm:$0xff]  ;;  %v524_v34 = vld [vmem:[%s2787_s26 + $0x770] sm:$0xff] }
  0x6b   : >> { %521 = vst [vmem:[%s2783_s25 + $0x200] sm:$0xff] %v520_v32  ;;  %v526_v35 = vld [vmem:[%s2787_s26 + $0x7a8] sm:$0xff]  ;;  %523 = vst [vmem:[%s2783_s25 + $0x210] sm:$0xff] %v522_v33  ;;  %v528_v36 = vld [vmem:[%s2787_s26 + $0x7e0] sm:$0xff] }
  0x6c   : >> { %525 = vst [vmem:[%s2783_s25 + $0x220] sm:$0xff] %v524_v34  ;;  %527 = vst [vmem:[%s2783_s25 + $0x230] sm:$0xff] %v526_v35  ;;  %v530_v37 = vld [vmem:[%s2787_s26 + $0x818] sm:$0xff]  ;;  %v532_v38 = vld [vmem:[%s2787_s26 + $0x850] sm:$0xff] }
  0x6d   : >> { %529 = vst [vmem:[%s2783_s25 + $0x240] sm:$0xff] %v528_v36  ;;  %531 = vst [vmem:[%s2783_s25 + $0x250] sm:$0xff] %v530_v37  ;;  %v534_v39 = vld [vmem:[%s2787_s26 + $0x888] sm:$0xff]  ;;  %v536_v40 = vld [vmem:[%s2787_s26 + $0x8c0] sm:$0xff] }
  0x6e   : >> { %533 = vst [vmem:[%s2783_s25 + $0x260] sm:$0xff] %v532_v38  ;;  %v538_v41 = vld [vmem:[%s2787_s26 + $0x8f8] sm:$0xff]  ;;  %535 = vst [vmem:[%s2783_s25 + $0x270] sm:$0xff] %v534_v39  ;;  %v540_v42 = vld [vmem:[%s2787_s26 + $0x930] sm:$0xff] }
  0x6f   : >> { %537 = vst [vmem:[%s2783_s25 + $0x280] sm:$0xff] %v536_v40  ;;  %539 = vst [vmem:[%s2783_s25 + $0x290] sm:$0xff] %v538_v41  ;;  %v542_v43 = vld [vmem:[%s2787_s26 + $0x968] sm:$0xff]  ;;  %v544_v44 = vld [vmem:[%s2787_s26 + $0x9a0] sm:$0xff] }
  0x70   : >> { %541 = vst [vmem:[%s2783_s25 + $0x2a0] sm:$0xff] %v540_v42  ;;  %543 = vst [vmem:[%s2783_s25 + $0x2b0] sm:$0xff] %v542_v43  ;;  %v546_v45 = vld [vmem:[%s2787_s26 + $0x9d8] sm:$0xff]  ;;  %v548_v46 = vld [vmem:[%s2787_s26 + $0xa10] sm:$0xff] }
  0x71   : >> { %545 = vst [vmem:[%s2783_s25 + $0x2c0] sm:$0xff] %v544_v44  ;;  %v550_v47 = vld [vmem:[%s2787_s26 + $0xa48] sm:$0xff]  ;;  %547 = vst [vmem:[%s2783_s25 + $0x2d0] sm:$0xff] %v546_v45  ;;  %v552_v48 = vld [vmem:[%s2787_s26 + $0xa80] sm:$0xff] }
  0x72   : >> { %549 = vst [vmem:[%s2783_s25 + $0x2e0] sm:$0xff] %v548_v46  ;;  %551 = vst [vmem:[%s2783_s25 + $0x2f0] sm:$0xff] %v550_v47  ;;  %v554_v49 = vld [vmem:[%s2787_s26 + $0xab8] sm:$0xff]  ;;  %v556_v50 = vld [vmem:[%s2787_s26 + $0xaf0] sm:$0xff] }
  0x73   : >> { %553 = vst [vmem:[%s2783_s25 + $0x300] sm:$0xff] %v552_v48  ;;  %555 = vst [vmem:[%s2783_s25 + $0x310] sm:$0xff] %v554_v49  ;;  %v558_v51 = vld [vmem:[%s2787_s26 + $0xb28] sm:$0xff]  ;;  %v560_v52 = vld [vmem:[%s2787_s26 + $0xb60] sm:$0xff] }
  0x74   : >> { %557 = vst [vmem:[%s2783_s25 + $0x320] sm:$0xff] %v556_v50  ;;  %v562_v53 = vld [vmem:[%s2787_s26 + $0xb98] sm:$0xff]  ;;  %559 = vst [vmem:[%s2783_s25 + $0x330] sm:$0xff] %v558_v51  ;;  %v564_v54 = vld [vmem:[%s2787_s26 + $0xbd0] sm:$0xff]  ;;  %452 = sbr.rel (!%p449_p2) target bundleno = 90 (0x5a), region = 220 }
  0x75   : >> { %561 = vst [vmem:[%s2783_s25 + $0x340] sm:$0xff] %v560_v52  ;;  %563 = vst [vmem:[%s2783_s25 + $0x350] sm:$0xff] %v562_v53  ;;  %v566_v55 = vld [vmem:[%s2787_s26 + $0xc08] sm:$0xff]  ;;  %v568_v56 = vld [vmem:[%s2787_s26 + $0xc40] sm:$0xff] }
  0x76   : >> { %565 = vst [vmem:[%s2783_s25 + $0x360] sm:$0xff] %v564_v54  ;;  %567 = vst [vmem:[%s2783_s25 + $0x370] sm:$0xff] %v566_v55  ;;  %v570_v57 = vld [vmem:[%s2787_s26 + $0xc78] sm:$0xff]  ;;  %v572_v58 = vld [vmem:[%s2787_s26 + $0xcb0] sm:$0xff] }
  0x77   : >> { %569 = vst [vmem:[%s2783_s25 + $0x380] sm:$0xff] %v568_v56  ;;  %v574_v59 = vld [vmem:[%s2787_s26 + $0xce8] sm:$0xff]  ;;  %571 = vst [vmem:[%s2783_s25 + $0x390] sm:$0xff] %v570_v57  ;;  %v576_v60 = vld [vmem:[%s2787_s26 + $0xd20] sm:$0xff] }
  0x78   : >> { %573 = vst [vmem:[%s2783_s25 + $0x3a0] sm:$0xff] %v572_v58  ;;  %575 = vst [vmem:[%s2783_s25 + $0x3b0] sm:$0xff] %v574_v59  ;;  %v578_v61 = vld [vmem:[%s2787_s26 + $0xd58] sm:$0xff]  ;;  %v580_v62 = vld [vmem:[%s2787_s26 + $0xd90] sm:$0xff] }
  0x79   : >> { %577 = vst [vmem:[%s2783_s25 + $0x3c0] sm:$0xff] %v576_v60  ;;  %579 = vst [vmem:[%s2783_s25 + $0x3d0] sm:$0xff] %v578_v61  ;;  %v582_v63 = vld [vmem:[%s2787_s26 + $0xdc8] sm:$0xff]  ;;  %s4836_s26 = smov %s3191_s7 }
  0x7a   : >> { %581 = vst [vmem:[%s2783_s25 + $0x3e0] sm:$0xff] %v580_v62  ;;  %583 = vst [vmem:[%s2783_s25 + $0x3f0] sm:$0xff] %v582_v63  ;;  %s4835_s25 = smov %s3194_s8  ;;  %v600_v0 = vld [vmem:[%s3121_s23] sm:%s3300_s16] (%p449_p2) }
  0x7b   : > { %v602_v1 = vld [vmem:[%s3121_s23 + $0x38] sm:%s3300_s16]  ;;  %601 = vst [vmem:[%s3124_s24] sm:%s3300_s16] %v600_v0 }
  0x7c   : > { %603 = vst [vmem:[%s3124_s24 + $0x10] sm:%s3300_s16] %v602_v1  ;;  %v604_v2 = vld [vmem:[%s3121_s23 + $0x70] sm:%s3300_s16] }
  0x7d   : > { %v606_v3 = vld [vmem:[%s3121_s23 + $0xa8] sm:%s3300_s16]  ;;  %605 = vst [vmem:[%s3124_s24 + $0x20] sm:%s3300_s16] %v604_v2 }
  0x7e   : > { %607 = vst [vmem:[%s3124_s24 + $0x30] sm:%s3300_s16] %v606_v3  ;;  %v608_v4 = vld [vmem:[%s3121_s23 + $0xe0] sm:%s3300_s16] }
  0x7f   : > { %v610_v5 = vld [vmem:[%s3121_s23 + $0x118] sm:%s3300_s16]  ;;  %609 = vst [vmem:[%s3124_s24 + $0x40] sm:%s3300_s16] %v608_v4 }
  0x80   : > { %611 = vst [vmem:[%s3124_s24 + $0x50] sm:%s3300_s16] %v610_v5  ;;  %v612_v6 = vld [vmem:[%s3121_s23 + $0x150] sm:%s3300_s16] }
  0x81   : > { %v614_v7 = vld [vmem:[%s3121_s23 + $0x188] sm:%s3300_s16]  ;;  %613 = vst [vmem:[%s3124_s24 + $0x60] sm:%s3300_s16] %v612_v6 }
  0x82   : > { %615 = vst [vmem:[%s3124_s24 + $0x70] sm:%s3300_s16] %v614_v7  ;;  %v616_v8 = vld [vmem:[%s3121_s23 + $0x1c0] sm:%s3300_s16] }
  0x83   : > { %v618_v9 = vld [vmem:[%s3121_s23 + $0x1f8] sm:%s3300_s16]  ;;  %617 = vst [vmem:[%s3124_s24 + $0x80] sm:%s3300_s16] %v616_v8 }
  0x84   : > { %619 = vst [vmem:[%s3124_s24 + $0x90] sm:%s3300_s16] %v618_v9  ;;  %v620_v10 = vld [vmem:[%s3121_s23 + $0x230] sm:%s3300_s16] }
  0x85   : > { %v622_v11 = vld [vmem:[%s3121_s23 + $0x268] sm:%s3300_s16]  ;;  %621 = vst [vmem:[%s3124_s24 + $0xa0] sm:%s3300_s16] %v620_v10 }
  0x86   : > { %623 = vst [vmem:[%s3124_s24 + $0xb0] sm:%s3300_s16] %v622_v11  ;;  %v624_v12 = vld [vmem:[%s3121_s23 + $0x2a0] sm:%s3300_s16] }
  0x87   : > { %v626_v13 = vld [vmem:[%s3121_s23 + $0x2d8] sm:%s3300_s16]  ;;  %625 = vst [vmem:[%s3124_s24 + $0xc0] sm:%s3300_s16] %v624_v12 }
  0x88   : > { %627 = vst [vmem:[%s3124_s24 + $0xd0] sm:%s3300_s16] %v626_v13  ;;  %v628_v14 = vld [vmem:[%s3121_s23 + $0x310] sm:%s3300_s16] }
  0x89   : > { %v630_v15 = vld [vmem:[%s3121_s23 + $0x348] sm:%s3300_s16]  ;;  %629 = vst [vmem:[%s3124_s24 + $0xe0] sm:%s3300_s16] %v628_v14 }
  0x8a   : > { %631 = vst [vmem:[%s3124_s24 + $0xf0] sm:%s3300_s16] %v630_v15  ;;  %v632_v16 = vld [vmem:[%s3121_s23 + $0x380] sm:%s3300_s16] }
  0x8b   : > { %v634_v17 = vld [vmem:[%s3121_s23 + $0x3b8] sm:%s3300_s16]  ;;  %633 = vst [vmem:[%s3124_s24 + $0x100] sm:%s3300_s16] %v632_v16 }
  0x8c   : > { %635 = vst [vmem:[%s3124_s24 + $0x110] sm:%s3300_s16] %v634_v17  ;;  %v636_v18 = vld [vmem:[%s3121_s23 + $0x3f0] sm:%s3300_s16] }
  0x8d   : > { %v638_v19 = vld [vmem:[%s3121_s23 + $0x428] sm:%s3300_s16]  ;;  %637 = vst [vmem:[%s3124_s24 + $0x120] sm:%s3300_s16] %v636_v18 }
  0x8e   : > { %639 = vst [vmem:[%s3124_s24 + $0x130] sm:%s3300_s16] %v638_v19  ;;  %v640_v20 = vld [vmem:[%s3121_s23 + $0x460] sm:%s3300_s16] }
  0x8f   : > { %v642_v21 = vld [vmem:[%s3121_s23 + $0x498] sm:%s3300_s16]  ;;  %641 = vst [vmem:[%s3124_s24 + $0x140] sm:%s3300_s16] %v640_v20 }
  0x90   : > { %643 = vst [vmem:[%s3124_s24 + $0x150] sm:%s3300_s16] %v642_v21  ;;  %v644_v22 = vld [vmem:[%s3121_s23 + $0x4d0] sm:%s3300_s16] }
  0x91   : > { %v646_v23 = vld [vmem:[%s3121_s23 + $0x508] sm:%s3300_s16]  ;;  %645 = vst [vmem:[%s3124_s24 + $0x160] sm:%s3300_s16] %v644_v22 }
  0x92   : > { %647 = vst [vmem:[%s3124_s24 + $0x170] sm:%s3300_s16] %v646_v23  ;;  %v648_v24 = vld [vmem:[%s3121_s23 + $0x540] sm:%s3300_s16] }
  0x93   : > { %v650_v25 = vld [vmem:[%s3121_s23 + $0x578] sm:%s3300_s16]  ;;  %649 = vst [vmem:[%s3124_s24 + $0x180] sm:%s3300_s16] %v648_v24 }
  0x94   : > { %651 = vst [vmem:[%s3124_s24 + $0x190] sm:%s3300_s16] %v650_v25  ;;  %v652_v26 = vld [vmem:[%s3121_s23 + $0x5b0] sm:%s3300_s16] }
  0x95   : > { %v654_v27 = vld [vmem:[%s3121_s23 + $0x5e8] sm:%s3300_s16]  ;;  %653 = vst [vmem:[%s3124_s24 + $0x1a0] sm:%s3300_s16] %v652_v26 }
  0x96   : > { %655 = vst [vmem:[%s3124_s24 + $0x1b0] sm:%s3300_s16] %v654_v27  ;;  %v656_v28 = vld [vmem:[%s3121_s23 + $0x620] sm:%s3300_s16] }
  0x97   : > { %v658_v29 = vld [vmem:[%s3121_s23 + $0x658] sm:%s3300_s16]  ;;  %657 = vst [vmem:[%s3124_s24 + $0x1c0] sm:%s3300_s16] %v656_v28 }
  0x98   : > { %659 = vst [vmem:[%s3124_s24 + $0x1d0] sm:%s3300_s16] %v658_v29  ;;  %v660_v30 = vld [vmem:[%s3121_s23 + $0x690] sm:%s3300_s16] }
  0x99   : > { %v662_v31 = vld [vmem:[%s3121_s23 + $0x6c8] sm:%s3300_s16]  ;;  %661 = vst [vmem:[%s3124_s24 + $0x1e0] sm:%s3300_s16] %v660_v30 }
  0x9a   : > { %663 = vst [vmem:[%s3124_s24 + $0x1f0] sm:%s3300_s16] %v662_v31  ;;  %v664_v32 = vld [vmem:[%s3121_s23 + $0x700] sm:%s3300_s16] }
  0x9b   : > { %v666_v33 = vld [vmem:[%s3121_s23 + $0x738] sm:%s3300_s16]  ;;  %665 = vst [vmem:[%s3124_s24 + $0x200] sm:%s3300_s16] %v664_v32 }
  0x9c   : > { %667 = vst [vmem:[%s3124_s24 + $0x210] sm:%s3300_s16] %v666_v33  ;;  %v668_v34 = vld [vmem:[%s3121_s23 + $0x770] sm:%s3300_s16] }
  0x9d   : > { %v670_v35 = vld [vmem:[%s3121_s23 + $0x7a8] sm:%s3300_s16]  ;;  %669 = vst [vmem:[%s3124_s24 + $0x220] sm:%s3300_s16] %v668_v34 }
  0x9e   : > { %671 = vst [vmem:[%s3124_s24 + $0x230] sm:%s3300_s16] %v670_v35  ;;  %v672_v36 = vld [vmem:[%s3121_s23 + $0x7e0] sm:%s3300_s16] }
  0x9f   : > { %v674_v37 = vld [vmem:[%s3121_s23 + $0x818] sm:%s3300_s16]  ;;  %673 = vst [vmem:[%s3124_s24 + $0x240] sm:%s3300_s16] %v672_v36 }
  0xa0   : > { %675 = vst [vmem:[%s3124_s24 + $0x250] sm:%s3300_s16] %v674_v37  ;;  %v676_v38 = vld [vmem:[%s3121_s23 + $0x850] sm:%s3300_s16] }
  0xa1   : > { %v678_v39 = vld [vmem:[%s3121_s23 + $0x888] sm:%s3300_s16]  ;;  %677 = vst [vmem:[%s3124_s24 + $0x260] sm:%s3300_s16] %v676_v38 }
  0xa2   : > { %679 = vst [vmem:[%s3124_s24 + $0x270] sm:%s3300_s16] %v678_v39  ;;  %v680_v40 = vld [vmem:[%s3121_s23 + $0x8c0] sm:%s3300_s16] }
  0xa3   : > { %v682_v41 = vld [vmem:[%s3121_s23 + $0x8f8] sm:%s3300_s16]  ;;  %681 = vst [vmem:[%s3124_s24 + $0x280] sm:%s3300_s16] %v680_v40 }
  0xa4   : > { %683 = vst [vmem:[%s3124_s24 + $0x290] sm:%s3300_s16] %v682_v41  ;;  %v684_v42 = vld [vmem:[%s3121_s23 + $0x930] sm:%s3300_s16] }
  0xa5   : > { %v686_v43 = vld [vmem:[%s3121_s23 + $0x968] sm:%s3300_s16]  ;;  %685 = vst [vmem:[%s3124_s24 + $0x2a0] sm:%s3300_s16] %v684_v42 }
  0xa6   : > { %687 = vst [vmem:[%s3124_s24 + $0x2b0] sm:%s3300_s16] %v686_v43  ;;  %v688_v44 = vld [vmem:[%s3121_s23 + $0x9a0] sm:%s3300_s16] }
  0xa7   : > { %v690_v45 = vld [vmem:[%s3121_s23 + $0x9d8] sm:%s3300_s16]  ;;  %689 = vst [vmem:[%s3124_s24 + $0x2c0] sm:%s3300_s16] %v688_v44 }
  0xa8   : > { %691 = vst [vmem:[%s3124_s24 + $0x2d0] sm:%s3300_s16] %v690_v45  ;;  %v692_v46 = vld [vmem:[%s3121_s23 + $0xa10] sm:%s3300_s16] }
  0xa9   : > { %v694_v47 = vld [vmem:[%s3121_s23 + $0xa48] sm:%s3300_s16]  ;;  %693 = vst [vmem:[%s3124_s24 + $0x2e0] sm:%s3300_s16] %v692_v46 }
  0xaa   : > { %695 = vst [vmem:[%s3124_s24 + $0x2f0] sm:%s3300_s16] %v694_v47  ;;  %v696_v48 = vld [vmem:[%s3121_s23 + $0xa80] sm:%s3300_s16] }
  0xab   : > { %v698_v49 = vld [vmem:[%s3121_s23 + $0xab8] sm:%s3300_s16]  ;;  %697 = vst [vmem:[%s3124_s24 + $0x300] sm:%s3300_s16] %v696_v48 }
  0xac   : > { %699 = vst [vmem:[%s3124_s24 + $0x310] sm:%s3300_s16] %v698_v49  ;;  %v700_v50 = vld [vmem:[%s3121_s23 + $0xaf0] sm:%s3300_s16] }
  0xad   : > { %v702_v51 = vld [vmem:[%s3121_s23 + $0xb28] sm:%s3300_s16]  ;;  %701 = vst [vmem:[%s3124_s24 + $0x320] sm:%s3300_s16] %v700_v50 }
  0xae   : > { %703 = vst [vmem:[%s3124_s24 + $0x330] sm:%s3300_s16] %v702_v51  ;;  %v704_v52 = vld [vmem:[%s3121_s23 + $0xb60] sm:%s3300_s16] }
  0xaf   : > { %v706_v53 = vld [vmem:[%s3121_s23 + $0xb98] sm:%s3300_s16]  ;;  %705 = vst [vmem:[%s3124_s24 + $0x340] sm:%s3300_s16] %v704_v52 }
  0xb0   : > { %707 = vst [vmem:[%s3124_s24 + $0x350] sm:%s3300_s16] %v706_v53  ;;  %v708_v54 = vld [vmem:[%s3121_s23 + $0xbd0] sm:%s3300_s16] }
  0xb1   : > { %v710_v55 = vld [vmem:[%s3121_s23 + $0xc08] sm:%s3300_s16]  ;;  %709 = vst [vmem:[%s3124_s24 + $0x360] sm:%s3300_s16] %v708_v54 }
  0xb2   : > { %711 = vst [vmem:[%s3124_s24 + $0x370] sm:%s3300_s16] %v710_v55  ;;  %v712_v56 = vld [vmem:[%s3121_s23 + $0xc40] sm:%s3300_s16] }
  0xb3   : > { %v714_v57 = vld [vmem:[%s3121_s23 + $0xc78] sm:%s3300_s16]  ;;  %713 = vst [vmem:[%s3124_s24 + $0x380] sm:%s3300_s16] %v712_v56 }
  0xb4   : > { %715 = vst [vmem:[%s3124_s24 + $0x390] sm:%s3300_s16] %v714_v57  ;;  %v716_v58 = vld [vmem:[%s3121_s23 + $0xcb0] sm:%s3300_s16] }
  0xb5   : > { %v718_v59 = vld [vmem:[%s3121_s23 + $0xce8] sm:%s3300_s16]  ;;  %717 = vst [vmem:[%s3124_s24 + $0x3a0] sm:%s3300_s16] %v716_v58 }
  0xb6   : > { %719 = vst [vmem:[%s3124_s24 + $0x3b0] sm:%s3300_s16] %v718_v59  ;;  %v720_v60 = vld [vmem:[%s3121_s23 + $0xd20] sm:%s3300_s16] }
  0xb7   : > { %v722_v61 = vld [vmem:[%s3121_s23 + $0xd58] sm:%s3300_s16]  ;;  %721 = vst [vmem:[%s3124_s24 + $0x3c0] sm:%s3300_s16] %v720_v60 }
  0xb8   : > { %723 = vst [vmem:[%s3124_s24 + $0x3d0] sm:%s3300_s16] %v722_v61  ;;  %v724_v62 = vld [vmem:[%s3121_s23 + $0xd90] sm:%s3300_s16] }
  0xb9   : > { %v726_v63 = vld [vmem:[%s3121_s23 + $0xdc8] sm:%s3300_s16]  ;;  %725 = vst [vmem:[%s3124_s24 + $0x3e0] sm:%s3300_s16] %v724_v62 }
  0xba   : > { %727 = vst [vmem:[%s3124_s24 + $0x3f0] sm:%s3300_s16] %v726_v63 }
  0xbb PF: > { %p2192_p3 = scmp.ge.u32.totalorder %s2931_s29, 8 }
  0xbc   : > { %s2862_s3 = smov (!%p2192_p3), 0  }
  0xbd   : > { %146 = sbr.rel (%p2192_p3) target bundleno = 254 (0xfe), region = 36  ;;  %s3560_s17 = sshllo.u32 (!%p2192_p3), %s2862_s3, %s2931_s29 }
  0xbe   : > { %v156_v0 = vld [vmem:[%s2929_s27] sm:%s3560_s17] (!%p2192_p3)  ;;  %v158_v1 = vld [vmem:[%s2929_s27 + $0x38] sm:%s3560_s17] (!%p2192_p3) }
  0xbf   : > { %157 = vst [vmem:[%s2933_s30] sm:%s3560_s17] (!%p2192_p3), %v156_v0  ;;  %159 = vst [vmem:[%s2933_s30 + $0x10] sm:%s3560_s17] (!%p2192_p3), %v158_v1 }
  0xc0   : > { %v160_v2 = vld [vmem:[%s2929_s27 + $0x70] sm:%s3560_s17] (!%p2192_p3)  ;;  %v162_v3 = vld [vmem:[%s2929_s27 + $0xa8] sm:%s3560_s17] (!%p2192_p3) }
  0xc1   : > { %161 = vst [vmem:[%s2933_s30 + $0x20] sm:%s3560_s17] (!%p2192_p3), %v160_v2  ;;  %163 = vst [vmem:[%s2933_s30 + $0x30] sm:%s3560_s17] (!%p2192_p3), %v162_v3 }
  0xc2   : > { %v164_v4 = vld [vmem:[%s2929_s27 + $0xe0] sm:%s3560_s17] (!%p2192_p3)  ;;  %v166_v5 = vld [vmem:[%s2929_s27 + $0x118] sm:%s3560_s17] (!%p2192_p3) }
  0xc3   : > { %165 = vst [vmem:[%s2933_s30 + $0x40] sm:%s3560_s17] (!%p2192_p3), %v164_v4  ;;  %167 = vst [vmem:[%s2933_s30 + $0x50] sm:%s3560_s17] (!%p2192_p3), %v166_v5 }
  0xc4   : > { %v168_v6 = vld [vmem:[%s2929_s27 + $0x150] sm:%s3560_s17]  ;;  %v170_v7 = vld [vmem:[%s2929_s27 + $0x188] sm:%s3560_s17] }
  0xc5   : > { %169 = vst [vmem:[%s2933_s30 + $0x60] sm:%s3560_s17] %v168_v6  ;;  %171 = vst [vmem:[%s2933_s30 + $0x70] sm:%s3560_s17] %v170_v7 }
  0xc6   : > { %v172_v8 = vld [vmem:[%s2929_s27 + $0x1c0] sm:%s3560_s17]  ;;  %v174_v9 = vld [vmem:[%s2929_s27 + $0x1f8] sm:%s3560_s17] }
  0xc7   : > { %173 = vst [vmem:[%s2933_s30 + $0x80] sm:%s3560_s17] %v172_v8  ;;  %175 = vst [vmem:[%s2933_s30 + $0x90] sm:%s3560_s17] %v174_v9 }
  0xc8   : > { %v176_v10 = vld [vmem:[%s2929_s27 + $0x230] sm:%s3560_s17]  ;;  %v178_v11 = vld [vmem:[%s2929_s27 + $0x268] sm:%s3560_s17] }
  0xc9   : > { %177 = vst [vmem:[%s2933_s30 + $0xa0] sm:%s3560_s17] %v176_v10  ;;  %179 = vst [vmem:[%s2933_s30 + $0xb0] sm:%s3560_s17] %v178_v11 }
  0xca   : > { %v180_v12 = vld [vmem:[%s2929_s27 + $0x2a0] sm:%s3560_s17]  ;;  %v182_v13 = vld [vmem:[%s2929_s27 + $0x2d8] sm:%s3560_s17] }
  0xcb   : > { %181 = vst [vmem:[%s2933_s30 + $0xc0] sm:%s3560_s17] %v180_v12  ;;  %183 = vst [vmem:[%s2933_s30 + $0xd0] sm:%s3560_s17] %v182_v13 }
  0xcc   : > { %v184_v14 = vld [vmem:[%s2929_s27 + $0x310] sm:%s3560_s17]  ;;  %v186_v15 = vld [vmem:[%s2929_s27 + $0x348] sm:%s3560_s17] }
  0xcd   : > { %185 = vst [vmem:[%s2933_s30 + $0xe0] sm:%s3560_s17] %v184_v14  ;;  %187 = vst [vmem:[%s2933_s30 + $0xf0] sm:%s3560_s17] %v186_v15 }
  0xce   : > { %v188_v16 = vld [vmem:[%s2929_s27 + $0x380] sm:%s3560_s17]  ;;  %v190_v17 = vld [vmem:[%s2929_s27 + $0x3b8] sm:%s3560_s17] }
  0xcf   : > { %189 = vst [vmem:[%s2933_s30 + $0x100] sm:%s3560_s17] %v188_v16  ;;  %191 = vst [vmem:[%s2933_s30 + $0x110] sm:%s3560_s17] %v190_v17 }
  0xd0   : > { %v192_v18 = vld [vmem:[%s2929_s27 + $0x3f0] sm:%s3560_s17]  ;;  %v194_v19 = vld [vmem:[%s2929_s27 + $0x428] sm:%s3560_s17] }
  0xd1   : > { %193 = vst [vmem:[%s2933_s30 + $0x120] sm:%s3560_s17] %v192_v18  ;;  %195 = vst [vmem:[%s2933_s30 + $0x130] sm:%s3560_s17] %v194_v19 }
  0xd2   : > { %v196_v20 = vld [vmem:[%s2929_s27 + $0x460] sm:%s3560_s17]  ;;  %v198_v21 = vld [vmem:[%s2929_s27 + $0x498] sm:%s3560_s17] }
  0xd3   : > { %197 = vst [vmem:[%s2933_s30 + $0x140] sm:%s3560_s17] %v196_v20  ;;  %199 = vst [vmem:[%s2933_s30 + $0x150] sm:%s3560_s17] %v198_v21 }
  0xd4   : > { %v200_v22 = vld [vmem:[%s2929_s27 + $0x4d0] sm:%s3560_s17]  ;;  %v202_v23 = vld [vmem:[%s2929_s27 + $0x508] sm:%s3560_s17] }
  0xd5   : > { %201 = vst [vmem:[%s2933_s30 + $0x160] sm:%s3560_s17] %v200_v22  ;;  %203 = vst [vmem:[%s2933_s30 + $0x170] sm:%s3560_s17] %v202_v23 }
  0xd6   : > { %v204_v24 = vld [vmem:[%s2929_s27 + $0x540] sm:%s3560_s17]  ;;  %v206_v25 = vld [vmem:[%s2929_s27 + $0x578] sm:%s3560_s17] }
  0xd7   : > { %205 = vst [vmem:[%s2933_s30 + $0x180] sm:%s3560_s17] %v204_v24  ;;  %207 = vst [vmem:[%s2933_s30 + $0x190] sm:%s3560_s17] %v206_v25 }
  0xd8   : > { %v208_v26 = vld [vmem:[%s2929_s27 + $0x5b0] sm:%s3560_s17]  ;;  %v210_v27 = vld [vmem:[%s2929_s27 + $0x5e8] sm:%s3560_s17] }
  0xd9   : > { %209 = vst [vmem:[%s2933_s30 + $0x1a0] sm:%s3560_s17] %v208_v26  ;;  %211 = vst [vmem:[%s2933_s30 + $0x1b0] sm:%s3560_s17] %v210_v27 }
  0xda   : > { %v212_v28 = vld [vmem:[%s2929_s27 + $0x620] sm:%s3560_s17]  ;;  %v214_v29 = vld [vmem:[%s2929_s27 + $0x658] sm:%s3560_s17] }
  0xdb   : > { %213 = vst [vmem:[%s2933_s30 + $0x1c0] sm:%s3560_s17] %v212_v28  ;;  %215 = vst [vmem:[%s2933_s30 + $0x1d0] sm:%s3560_s17] %v214_v29 }
  0xdc   : > { %v216_v30 = vld [vmem:[%s2929_s27 + $0x690] sm:%s3560_s17]  ;;  %v218_v31 = vld [vmem:[%s2929_s27 + $0x6c8] sm:%s3560_s17] }
  0xdd   : > { %217 = vst [vmem:[%s2933_s30 + $0x1e0] sm:%s3560_s17] %v216_v30  ;;  %219 = vst [vmem:[%s2933_s30 + $0x1f0] sm:%s3560_s17] %v218_v31 }
  0xde   : > { %v220_v32 = vld [vmem:[%s2929_s27 + $0x700] sm:%s3560_s17]  ;;  %v222_v33 = vld [vmem:[%s2929_s27 + $0x738] sm:%s3560_s17] }
  0xdf   : > { %221 = vst [vmem:[%s2933_s30 + $0x200] sm:%s3560_s17] %v220_v32  ;;  %223 = vst [vmem:[%s2933_s30 + $0x210] sm:%s3560_s17] %v222_v33 }
  0xe0   : > { %v224_v34 = vld [vmem:[%s2929_s27 + $0x770] sm:%s3560_s17]  ;;  %v226_v35 = vld [vmem:[%s2929_s27 + $0x7a8] sm:%s3560_s17] }
  0xe1   : > { %225 = vst [vmem:[%s2933_s30 + $0x220] sm:%s3560_s17] %v224_v34  ;;  %227 = vst [vmem:[%s2933_s30 + $0x230] sm:%s3560_s17] %v226_v35 }
  0xe2   : > { %v228_v36 = vld [vmem:[%s2929_s27 + $0x7e0] sm:%s3560_s17]  ;;  %v230_v37 = vld [vmem:[%s2929_s27 + $0x818] sm:%s3560_s17] }
  0xe3   : > { %229 = vst [vmem:[%s2933_s30 + $0x240] sm:%s3560_s17] %v228_v36  ;;  %231 = vst [vmem:[%s2933_s30 + $0x250] sm:%s3560_s17] %v230_v37 }
  0xe4   : > { %v232_v38 = vld [vmem:[%s2929_s27 + $0x850] sm:%s3560_s17]  ;;  %v234_v39 = vld [vmem:[%s2929_s27 + $0x888] sm:%s3560_s17] }
  0xe5   : > { %233 = vst [vmem:[%s2933_s30 + $0x260] sm:%s3560_s17] %v232_v38  ;;  %235 = vst [vmem:[%s2933_s30 + $0x270] sm:%s3560_s17] %v234_v39 }
  0xe6   : > { %v236_v40 = vld [vmem:[%s2929_s27 + $0x8c0] sm:%s3560_s17]  ;;  %v238_v41 = vld [vmem:[%s2929_s27 + $0x8f8] sm:%s3560_s17] }
  0xe7   : > { %237 = vst [vmem:[%s2933_s30 + $0x280] sm:%s3560_s17] %v236_v40  ;;  %239 = vst [vmem:[%s2933_s30 + $0x290] sm:%s3560_s17] %v238_v41 }
  0xe8   : > { %v240_v42 = vld [vmem:[%s2929_s27 + $0x930] sm:%s3560_s17]  ;;  %v242_v43 = vld [vmem:[%s2929_s27 + $0x968] sm:%s3560_s17] }
  0xe9   : > { %241 = vst [vmem:[%s2933_s30 + $0x2a0] sm:%s3560_s17] %v240_v42  ;;  %243 = vst [vmem:[%s2933_s30 + $0x2b0] sm:%s3560_s17] %v242_v43 }
  0xea   : > { %v244_v44 = vld [vmem:[%s2929_s27 + $0x9a0] sm:%s3560_s17]  ;;  %v246_v45 = vld [vmem:[%s2929_s27 + $0x9d8] sm:%s3560_s17] }
  0xeb   : > { %245 = vst [vmem:[%s2933_s30 + $0x2c0] sm:%s3560_s17] %v244_v44  ;;  %247 = vst [vmem:[%s2933_s30 + $0x2d0] sm:%s3560_s17] %v246_v45 }
  0xec   : > { %v248_v46 = vld [vmem:[%s2929_s27 + $0xa10] sm:%s3560_s17]  ;;  %v250_v47 = vld [vmem:[%s2929_s27 + $0xa48] sm:%s3560_s17] }
  0xed   : > { %249 = vst [vmem:[%s2933_s30 + $0x2e0] sm:%s3560_s17] %v248_v46  ;;  %251 = vst [vmem:[%s2933_s30 + $0x2f0] sm:%s3560_s17] %v250_v47 }
  0xee   : > { %v252_v48 = vld [vmem:[%s2929_s27 + $0xa80] sm:%s3560_s17]  ;;  %v254_v49 = vld [vmem:[%s2929_s27 + $0xab8] sm:%s3560_s17] }
  0xef   : > { %253 = vst [vmem:[%s2933_s30 + $0x300] sm:%s3560_s17] %v252_v48  ;;  %255 = vst [vmem:[%s2933_s30 + $0x310] sm:%s3560_s17] %v254_v49 }
  0xf0   : > { %v256_v50 = vld [vmem:[%s2929_s27 + $0xaf0] sm:%s3560_s17]  ;;  %v258_v51 = vld [vmem:[%s2929_s27 + $0xb28] sm:%s3560_s17] }
  0xf1   : > { %257 = vst [vmem:[%s2933_s30 + $0x320] sm:%s3560_s17] %v256_v50  ;;  %259 = vst [vmem:[%s2933_s30 + $0x330] sm:%s3560_s17] %v258_v51 }
  0xf2   : > { %v260_v52 = vld [vmem:[%s2929_s27 + $0xb60] sm:%s3560_s17]  ;;  %v262_v53 = vld [vmem:[%s2929_s27 + $0xb98] sm:%s3560_s17] }
  0xf3   : > { %261 = vst [vmem:[%s2933_s30 + $0x340] sm:%s3560_s17] %v260_v52  ;;  %263 = vst [vmem:[%s2933_s30 + $0x350] sm:%s3560_s17] %v262_v53 }
  0xf4   : > { %v264_v54 = vld [vmem:[%s2929_s27 + $0xbd0] sm:%s3560_s17]  ;;  %v266_v55 = vld [vmem:[%s2929_s27 + $0xc08] sm:%s3560_s17] }
  0xf5   : > { %265 = vst [vmem:[%s2933_s30 + $0x360] sm:%s3560_s17] %v264_v54  ;;  %267 = vst [vmem:[%s2933_s30 + $0x370] sm:%s3560_s17] %v266_v55 }
  0xf6   : > { %v268_v56 = vld [vmem:[%s2929_s27 + $0xc40] sm:%s3560_s17]  ;;  %v270_v57 = vld [vmem:[%s2929_s27 + $0xc78] sm:%s3560_s17] }
  0xf7   : > { %269 = vst [vmem:[%s2933_s30 + $0x380] sm:%s3560_s17] %v268_v56  ;;  %271 = vst [vmem:[%s2933_s30 + $0x390] sm:%s3560_s17] %v270_v57 }
  0xf8   : > { %v272_v58 = vld [vmem:[%s2929_s27 + $0xcb0] sm:%s3560_s17]  ;;  %v274_v59 = vld [vmem:[%s2929_s27 + $0xce8] sm:%s3560_s17] }
  0xf9   : > { %273 = vst [vmem:[%s2933_s30 + $0x3a0] sm:%s3560_s17] %v272_v58  ;;  %275 = vst [vmem:[%s2933_s30 + $0x3b0] sm:%s3560_s17] %v274_v59 }
  0xfa   : > { %v276_v60 = vld [vmem:[%s2929_s27 + $0xd20] sm:%s3560_s17]  ;;  %v278_v61 = vld [vmem:[%s2929_s27 + $0xd58] sm:%s3560_s17] }
  0xfb   : > { %277 = vst [vmem:[%s2933_s30 + $0x3c0] sm:%s3560_s17] %v276_v60  ;;  %279 = vst [vmem:[%s2933_s30 + $0x3d0] sm:%s3560_s17] %v278_v61 }
  0xfc   : > { %v280_v62 = vld [vmem:[%s2929_s27 + $0xd90] sm:%s3560_s17]  ;;  %v282_v63 = vld [vmem:[%s2929_s27 + $0xdc8] sm:%s3560_s17] }
  0xfd   : > { %281 = vst [vmem:[%s2933_s30 + $0x3e0] sm:%s3560_s17] %v280_v62  ;;  %283 = vst [vmem:[%s2933_s30 + $0x3f0] sm:%s3560_s17] %v282_v63 }
  0xfe PF: > { %p2193_p4 = scmp.ge.s32.totalorder %s2763_s13, 1  ;;  %p730_p5 = scmp.lt.s32.totalorder %s2763_s13, 5 }
 0x100   : > { %p731_p7 = pnand %p2193_p4, %p730_p5 }
 0x101   : > { %s737_s29 = sand.u32 (!%p731_p7), 1, %s2747_s9   ;;  %v1024_v0 = vld [vmem:[%s4825_s1 + $0x8] sm:$0xff] (!%p731_p7)  ;;  %v1026_v1 = vld [vmem:[%s4825_s1 + $0x18] sm:$0xff] (!%p731_p7) }
 0x102   : > { %734 = sbr.rel (%p731_p7) target bundleno = 795 (0x31b), region = 76  ;;  %s2194_s30 = sshll.u32 (!%p731_p7), %s737_s29, 10  ;;  %1151 = vmatprep.mubr.f32.mxu1 (!%p731_p7), %v1024_v0  ;;  %1312 = vmatprep.mubr.f32.mxu0 (!%p731_p7), %v1026_v1 }
 0x103   : > { %s3829_s23 = scalar_lea.vmem (!%p731_p7), [#allocation2], %s2194_s30  ;;  %s2195_s16 = sshll.u32 (!%p731_p7), %s737_s29, 8 }
 0x104   : > { %v768_v2 = vld [vmem:[%s3829_s23 + $0x8] sm:$0xff] (!%p731_p7)  ;;  %v770_v3 = vld [vmem:[%s3829_s23 + $0x18] sm:$0xff] (!%p731_p7)  ;;  %v767_v9 = vld [vmem:[%s3829_s23] sm:$0xff] (!%p731_p7)  ;;  %s4147_s3 = scalar_lea.vmem (!%p731_p7), [#allocation3], %s2195_s16  }
 0x105   : > { %v832_v4 = vld [vmem:[%s3829_s23 + $0x208] sm:$0xff] (!%p731_p7)  ;;  %v896_v5 = vmax.f32 (!%p731_p7), %v768_v2, 0.0  ;;  %v898_v6 = vmax.f32 (!%p731_p7), %v770_v3, 0.0  ;;  %v834_v7 = vld [vmem:[%s3829_s23 + $0x218] sm:$0xff] (!%p731_p7)  ;;  %v769_v10 = vld [vmem:[%s3829_s23 + $0x10] sm:$0xff] (!%p731_p7)  ;;  %v895_v12 = vmax.f32 (!%p731_p7), %v767_v9, 0.0 }
 0x106   : > { %v960_v8 = vmax.f32 (!%p731_p7), %v832_v4, 0.0  ;;  %v962_v11 = vmax.f32 (!%p731_p7), %v834_v7, 0.0  ;;  %v897_v13 = vmax.f32 (!%p731_p7), %v769_v10, 0.0  ;;  %v831_v14 = vld [vmem:[%s3829_s23 + $0x200] sm:$0xff] (!%p731_p7)  ;;  %v833_v15 = vld [vmem:[%s3829_s23 + $0x210] sm:$0xff] (!%p731_p7)  ;;  %v772_v16 = vld [vmem:[%s3829_s23 + $0x28] sm:$0xff] (!%p731_p7) }
 0x107   : > { %v2231_v17 = vpack.c.bf16 (!%p731_p7), %v898_v6, %v896_v5  ;;  %v959_v18 = vmax.f32 (!%p731_p7), %v831_v14, 0.0  ;;  %v961_v19 = vmax.f32 (!%p731_p7), %v833_v15, 0.0  ;;  %v774_v20 = vld [vmem:[%s3829_s23 + $0x38] sm:$0xff] (!%p731_p7)  ;;  %v900_v21 = vmax.f32 (!%p731_p7), %v772_v16, 0.0  ;;  %v836_v22 = vld [vmem:[%s3829_s23 + $0x228] sm:$0xff] (!%p731_p7)  ;;  %v771_v28 = vld [vmem:[%s3829_s23 + $0x20] sm:$0xff] (!%p731_p7) }
 0x108   : > { %v838_v23 = vld [vmem:[%s3829_s23 + $0x238] sm:$0xff] (!%p731_p7)  ;;  %v2295_v24 = vpack.c.bf16 (!%p731_p7), %v962_v11, %v960_v8  ;;  %v2233_v25 = vpack.c.bf16 (!%p731_p7), %v897_v13, %v895_v12  ;;  %v902_v26 = vmax.f32 (!%p731_p7), %v774_v20, 0.0  ;;  %v964_v27 = vmax.f32 (!%p731_p7), %v836_v22, 0.0  ;;  %v773_v29 = vld [vmem:[%s3829_s23 + $0x30] sm:$0xff] (!%p731_p7)  ;;  %v835_v30 = vld [vmem:[%s3829_s23 + $0x220] sm:$0xff] (!%p731_p7) }
 0x109   : > { %2232 = vmatprep.subr.bf16.mxu1 %v2231_v17  ;;  %v2297_v31 = vpack.c.bf16 %v961_v19, %v959_v18  ;;  %v966_v32 = vmax.f32 %v838_v23, 0.0  ;;  %v899_v33 = vmax.f32 %v771_v28, 0.0  ;;  %v901_v34 = vmax.f32 %v773_v29, 0.0  ;;  %v837_v35 = vld [vmem:[%s3829_s23 + $0x230] sm:$0xff]  ;;  %v776_v36 = vld [vmem:[%s3829_s23 + $0x48] sm:$0xff]  ;;  %v778_v37 = vld [vmem:[%s3829_s23 + $0x58] sm:$0xff] }
 0x10a   : > { %2296 = vmatprep.subr.bf16.mxu0 %v2295_v24  ;;  %2234 = vmatpush1.bf16.msra.mxu1 %v2233_v25  ;;  %v2235_v38 = vpack.c.bf16 %v902_v26, %v900_v21  ;;  %v963_v39 = vmax.f32 %v835_v30, 0.0  ;;  %v965_v40 = vmax.f32 %v837_v35, 0.0  ;;  %v904_v41 = vmax.f32 %v776_v36, 0.0  ;;  %v840_v42 = vld [vmem:[%s3829_s23 + $0x248] sm:$0xff]  ;;  %v842_v43 = vld [vmem:[%s3829_s23 + $0x258] sm:$0xff]  ;;  %v775_v44 = vld [vmem:[%s3829_s23 + $0x40] sm:$0xff] }
 0x10b   : > { %2298 = vmatpush1.bf16.msra.mxu0 %v2297_v31  ;;  %v2299_v45 = vpack.c.bf16 %v966_v32, %v964_v27  ;;  %v2237_v46 = vpack.c.bf16 %v901_v34, %v899_v33  ;;  %v906_v47 = vmax.f32 %v778_v37, 0.0  ;;  %v968_v48 = vmax.f32 %v840_v42, 0.0  ;;  %v777_v49 = vld [vmem:[%s3829_s23 + $0x50] sm:$0xff]  ;;  %v839_v50 = vld [vmem:[%s3829_s23 + $0x240] sm:$0xff]  ;;  %v780_v56 = vld [vmem:[%s3829_s23 + $0x68] sm:$0xff]  ;;  %s2197_s9 = sshll.u32 (%p2915_p6), %s2755_s11, 1 }
 0x10c   : > { %v841_v51 = vld [vmem:[%s3829_s23 + $0x250] sm:$0xff]  ;;  %2236 = vmatprep.subr.bf16.mxu1 %v2235_v38  ;;  %v2301_v52 = vpack.c.bf16 %v965_v40, %v963_v39  ;;  %v970_v53 = vmax.f32 %v842_v43, 0.0  ;;  %v903_v54 = vmax.f32 %v775_v44, 0.0  ;;  %v905_v55 = vmax.f32 %v777_v49, 0.0  ;;  %v782_v57 = vld [vmem:[%s3829_s23 + $0x78] sm:$0xff]  ;;  %v844_v58 = vld [vmem:[%s3829_s23 + $0x268] sm:$0xff] }
 0x10d   : > { %2300 = vmatprep.subr.bf16.mxu0 %v2299_v45  ;;  %v2239_v59 = vpack.c.bf16 %v906_v47, %v904_v41  ;;  %v967_v60 = vmax.f32 %v839_v50, 0.0  ;;  %v969_v61 = vmax.f32 %v841_v51, 0.0  ;;  %v908_v62 = vmax.f32 %v780_v56, 0.0  ;;  %v846_v63 = vld [vmem:[%s3829_s23 + $0x278] sm:$0xff]  ;;  %v779_v0 = vld [vmem:[%s3829_s23 + $0x60] sm:$0xff]  ;;  %v781_v1 = vld [vmem:[%s3829_s23 + $0x70] sm:$0xff] }
 0x10e   : > { %2238 = vmatpush1.bf16.msra.mxu1 %v2237_v46  ;;  %v2303_v2 = vpack.c.bf16 %v970_v53, %v968_v48  ;;  %v2241_v3 = vpack.c.bf16 %v905_v55, %v903_v54  ;;  %v910_v4 = vmax.f32 %v782_v57, 0.0  ;;  %v972_v5 = vmax.f32 %v844_v58, 0.0  ;;  %v843_v6 = vld [vmem:[%s3829_s23 + $0x260] sm:$0xff]  ;;  %v845_v7 = vld [vmem:[%s3829_s23 + $0x270] sm:$0xff]  ;;  %v784_v8 = vld [vmem:[%s3829_s23 + $0x88] sm:$0xff]  ;;  %s2226_s29 = sshll.u32 (%p2915_p6), %s2755_s11, 4 }
 0x10f   : > { %2302 = vmatpush1.bf16.msra.mxu0 %v2301_v52  ;;  %2240 = vmatprep.subr.bf16.mxu1 %v2239_v59  ;;  %v2305_v9 = vpack.c.bf16 %v969_v61, %v967_v60  ;;  %v974_v10 = vmax.f32 %v846_v63, 0.0  ;;  %v907_v11 = vmax.f32 %v779_v0, 0.0  ;;  %v909_v12 = vmax.f32 %v781_v1, 0.0  ;;  %v786_v13 = vld [vmem:[%s3829_s23 + $0x98] sm:$0xff]  ;;  %v848_v14 = vld [vmem:[%s3829_s23 + $0x288] sm:$0xff]  ;;  %v783_v20 = vld [vmem:[%s3829_s23 + $0x80] sm:$0xff]  ;;  %s4188_s27 = scalar_lea.vmem (%p2915_p6), %s4826_s2, %s2226_s29  }
 0x110   : > { %v850_v15 = vld [vmem:[%s3829_s23 + $0x298] sm:$0xff]  ;;  %2304 = vmatprep.subr.bf16.mxu0 %v2303_v2  ;;  %v2243_v16 = vpack.c.bf16 %v910_v4, %v908_v62  ;;  %v971_v17 = vmax.f32 %v843_v6, 0.0  ;;  %v973_v18 = vmax.f32 %v845_v7, 0.0  ;;  %v912_v19 = vmax.f32 %v784_v8, 0.0  ;;  %v785_v21 = vld [vmem:[%s3829_s23 + $0x90] sm:$0xff]  ;;  %v847_v22 = vld [vmem:[%s3829_s23 + $0x280] sm:$0xff] }
 0x111   : > { %v2307_v23 = vpack.c.bf16 %v974_v10, %v972_v5  ;;  %v2245_v24 = vpack.c.bf16 %v909_v12, %v907_v11  ;;  %v914_v25 = vmax.f32 %v786_v13, 0.0  ;;  %v976_v26 = vmax.f32 %v848_v14, 0.0  ;;  %v849_v27 = vld [vmem:[%s3829_s23 + $0x290] sm:$0xff]  ;;  %v788_v28 = vld [vmem:[%s3829_s23 + $0xa8] sm:$0xff]  ;;  %v790_v29 = vld [vmem:[%s3829_s23 + $0xb8] sm:$0xff]  ;;  %s1449_s17 = ssub.s32 (%p2915_p6), 7, %s2197_s9 }
 0x112   : > { %2242 = vmatpush1.bf16.msra.mxu1 %v2241_v3  ;;  %v2309_v30 = vpack.c.bf16 %v973_v18, %v971_v17  ;;  %v978_v31 = vmax.f32 %v850_v15, 0.0  ;;  %v911_v32 = vmax.f32 %v783_v20, 0.0  ;;  %v913_v33 = vmax.f32 %v785_v21, 0.0  ;;  %v852_v34 = vld [vmem:[%s3829_s23 + $0x2a8] sm:$0xff]  ;;  %v854_v35 = vld [vmem:[%s3829_s23 + $0x2b8] sm:$0xff]  ;;  %v787_v36 = vld [vmem:[%s3829_s23 + $0xa0] sm:$0xff] }
 0x113   : > { %2306 = vmatpush1.bf16.msra.mxu0 %v2305_v9  ;;  %2244 = vmatprep.subr.bf16.mxu1 %v2243_v16  ;;  %v2247_v37 = vpack.c.bf16 %v914_v25, %v912_v19  ;;  %v975_v38 = vmax.f32 %v847_v22, 0.0  ;;  %v977_v39 = vmax.f32 %v849_v27, 0.0  ;;  %v916_v40 = vmax.f32 %v788_v28, 0.0  ;;  %v789_v41 = vld [vmem:[%s3829_s23 + $0xb0] sm:$0xff]  ;;  %v851_v42 = vld [vmem:[%s3829_s23 + $0x2a0] sm:$0xff]  ;;  %v792_v47 = vld [vmem:[%s3829_s23 + $0xc8] sm:$0xff] }
 0x114   : > { %v853_v43 = vld [vmem:[%s3829_s23 + $0x2b0] sm:$0xff]  ;;  %2308 = vmatprep.subr.bf16.mxu0 %v2307_v23  ;;  %v2311_v44 = vpack.c.bf16 %v978_v31, %v976_v26  ;;  %v918_v45 = vmax.f32 %v790_v29, 0.0  ;;  %v980_v46 = vmax.f32 %v852_v34, 0.0  ;;  %v794_v48 = vld [vmem:[%s3829_s23 + $0xd8] sm:$0xff]  ;;  %v2249_v49 = vpack.c.bf16 %v913_v33, %v911_v32  ;;  %v856_v51 = vld [vmem:[%s3829_s23 + $0x2c8] sm:$0xff]  ;;  %p1450_p8 = scmp.lt.s32.totalorder (%p2915_p6), %s1449_s17, 2 }
 0x115   : > { %v982_v50 = vmax.f32 %v854_v35, 0.0  ;;  %v858_v52 = vld [vmem:[%s3829_s23 + $0x2d8] sm:$0xff]  ;;  %v915_v53 = vmax.f32 %v787_v36, 0.0  ;;  %v917_v54 = vmax.f32 %v789_v41, 0.0  ;;  %v979_v55 = vmax.f32 %v851_v42, 0.0  ;;  %v791_v57 = vld [vmem:[%s3829_s23 + $0xc0] sm:$0xff] }
 0x116   : > { %2246 = vmatpush1.bf16.msra.mxu1 %v2245_v24  ;;  %v981_v56 = vmax.f32 %v853_v43, 0.0  ;;  %v793_v58 = vld [vmem:[%s3829_s23 + $0xd0] sm:$0xff]  ;;  %v2313_v59 = vpack.c.bf16 %v977_v39, %v975_v38  ;;  %v2251_v60 = vpack.c.bf16 %v918_v45, %v916_v40  ;;  %v920_v61 = vmax.f32 %v792_v47, 0.0  ;;  %v855_v63 = vld [vmem:[%s3829_s23 + $0x2c0] sm:$0xff]  ;;  %v796_v4 = vld [vmem:[%s3829_s23 + $0xe8] sm:$0xff] }
 0x117   : > { %2310 = vmatpush1.bf16.msra.mxu0 %v2309_v30  ;;  %2248 = vmatprep.subr.bf16.mxu1 %v2247_v37  ;;  %v922_v62 = vmax.f32 %v794_v48, 0.0  ;;  %v2315_v0 = vpack.c.bf16 %v982_v50, %v980_v46  ;;  %v984_v1 = vmax.f32 %v856_v51, 0.0  ;;  %v986_v2 = vmax.f32 %v858_v52, 0.0  ;;  %v857_v3 = vld [vmem:[%s3829_s23 + $0x2d0] sm:$0xff]  ;;  %v798_v5 = vld [vmem:[%s3829_s23 + $0xf8] sm:$0xff]  ;;  %v860_v8 = vld [vmem:[%s3829_s23 + $0x2e8] sm:$0xff] }
 0x118   : > { %2312 = vmatprep.subr.bf16.mxu0 %v2311_v44  ;;  %v919_v6 = vmax.f32 %v791_v57, 0.0  ;;  %v921_v7 = vmax.f32 %v793_v58, 0.0  ;;  %v862_v9 = vld [vmem:[%s3829_s23 + $0x2f8] sm:$0xff]  ;;  %v2253_v10 = vpack.c.bf16 %v917_v54, %v915_v53  ;;  %v2317_v11 = vpack.c.bf16 %v981_v56, %v979_v55  ;;  %v795_v13 = vld [vmem:[%s3829_s23 + $0xe0] sm:$0xff]  ;;  %v797_v14 = vld [vmem:[%s3829_s23 + $0xf0] sm:$0xff] }
 0x119   : > { %v983_v12 = vmax.f32 %v855_v63, 0.0  ;;  %v859_v15 = vld [vmem:[%s3829_s23 + $0x2e0] sm:$0xff]  ;;  %v2255_v16 = vpack.c.bf16 %v922_v62, %v920_v61  ;;  %v985_v17 = vmax.f32 %v857_v3, 0.0  ;;  %v924_v18 = vmax.f32 %v796_v4, 0.0  ;;  %v861_v20 = vld [vmem:[%s3829_s23 + $0x2f0] sm:$0xff]  ;;  %v800_v21 = vld [vmem:[%s3829_s23 + $0x108] sm:$0xff] }
 0x11a   : > { %2250 = vmatpush1.bf16.msra.mxu1 %v2249_v49  ;;  %v926_v19 = vmax.f32 %v798_v5, 0.0  ;;  %v802_v22 = vld [vmem:[%s3829_s23 + $0x118] sm:$0xff]  ;;  %v2319_v23 = vpack.c.bf16 %v986_v2, %v984_v1  ;;  %v988_v24 = vmax.f32 %v860_v8, 0.0  ;;  %v990_v25 = vmax.f32 %v862_v9, 0.0  ;;  %v864_v29 = vld [vmem:[%s3829_s23 + $0x308] sm:$0xff]  ;;  %v799_v35 = vld [vmem:[%s3829_s23 + $0x100] sm:$0xff] }
 0x11b   : > { %2314 = vmatpush1.bf16.msra.mxu0 %v2313_v59  ;;  %2252 = vmatprep.subr.bf16.mxu1 %v2251_v60  ;;  %v2257_v26 = vpack.c.bf16 %v921_v7, %v919_v6  ;;  %v923_v27 = vmax.f32 %v795_v13, 0.0  ;;  %v925_v28 = vmax.f32 %v797_v14, 0.0  ;;  %v866_v30 = vld [vmem:[%s3829_s23 + $0x318] sm:$0xff]  ;;  %v987_v31 = vmax.f32 %v859_v15, 0.0  ;;  %v801_v36 = vld [vmem:[%s3829_s23 + $0x110] sm:$0xff]  ;;  %v863_v39 = vld [vmem:[%s3829_s23 + $0x300] sm:$0xff] }
 0x11c   : > { %2316 = vmatprep.subr.bf16.mxu0 %v2315_v0  ;;  %v989_v32 = vmax.f32 %v861_v20, 0.0  ;;  %v928_v33 = vmax.f32 %v800_v21, 0.0  ;;  %v930_v34 = vmax.f32 %v802_v22, 0.0  ;;  %v2321_v37 = vpack.c.bf16 %v985_v17, %v983_v12  ;;  %v865_v43 = vld [vmem:[%s3829_s23 + $0x310] sm:$0xff]  ;;  %v804_v44 = vld [vmem:[%s3829_s23 + $0x128] sm:$0xff]  ;;  %v806_v45 = vld [vmem:[%s3829_s23 + $0x138] sm:$0xff] }
 0x11d   : > { %v2259_v38 = vpack.c.bf16 %v926_v19, %v924_v18  ;;  %v2323_v40 = vpack.c.bf16 %v990_v25, %v988_v24  ;;  %v992_v41 = vmax.f32 %v864_v29, 0.0  ;;  %v994_v42 = vmax.f32 %v866_v30, 0.0  ;;  %v868_v48 = vld [vmem:[%s3829_s23 + $0x328] sm:$0xff]  ;;  %v870_v49 = vld [vmem:[%s3829_s23 + $0x338] sm:$0xff]  ;;  %v803_v50 = vld [vmem:[%s3829_s23 + $0x120] sm:$0xff] }
 0x11e   : > { %2254 = vmatpush1.bf16.msra.mxu1 %v2253_v10  ;;  %v927_v46 = vmax.f32 %v799_v35, 0.0  ;;  %v929_v47 = vmax.f32 %v801_v36, 0.0  ;;  %v2261_v51 = vpack.c.bf16 %v925_v28, %v923_v27  ;;  %v2325_v52 = vpack.c.bf16 %v989_v32, %v987_v31  ;;  %v805_v54 = vld [vmem:[%s3829_s23 + $0x130] sm:$0xff]  ;;  %v867_v55 = vld [vmem:[%s3829_s23 + $0x320] sm:$0xff]  ;;  %v808_v61 = vld [vmem:[%s3829_s23 + $0x148] sm:$0xff] }
 0x11f   : > { %2318 = vmatpush1.bf16.msra.mxu0 %v2317_v11  ;;  %2256 = vmatprep.subr.bf16.mxu1 %v2255_v16  ;;  %v2263_v53 = vpack.c.bf16 %v930_v34, %v928_v33  ;;  %v869_v56 = vld [vmem:[%s3829_s23 + $0x330] sm:$0xff]  ;;  %v991_v57 = vmax.f32 %v863_v39, 0.0  ;;  %v993_v58 = vmax.f32 %v865_v43, 0.0  ;;  %v932_v59 = vmax.f32 %v804_v44, 0.0  ;;  %v810_v62 = vld [vmem:[%s3829_s23 + $0x158] sm:$0xff]  ;;  %v872_v5 = vld [vmem:[%s3829_s23 + $0x348] sm:$0xff] }
 0x120   : > { %2320 = vmatprep.subr.bf16.mxu0 %v2319_v23  ;;  %v934_v60 = vmax.f32 %v806_v45, 0.0  ;;  %v2327_v63 = vpack.c.bf16 %v994_v42, %v992_v41  ;;  %v996_v0 = vmax.f32 %v868_v48, 0.0  ;;  %v998_v1 = vmax.f32 %v870_v49, 0.0  ;;  %v874_v6 = vld [vmem:[%s3829_s23 + $0x358] sm:$0xff]  ;;  %v807_v11 = vld [vmem:[%s3829_s23 + $0x140] sm:$0xff]  ;;  %v809_v12 = vld [vmem:[%s3829_s23 + $0x150] sm:$0xff] }
 0x121   : > { %v2265_v2 = vpack.c.bf16 %v929_v47, %v927_v46  ;;  %v931_v3 = vmax.f32 %v803_v50, 0.0  ;;  %v933_v4 = vmax.f32 %v805_v54, 0.0  ;;  %v995_v7 = vmax.f32 %v867_v55, 0.0  ;;  %v871_v15 = vld [vmem:[%s3829_s23 + $0x340] sm:$0xff]  ;;  %v873_v19 = vld [vmem:[%s3829_s23 + $0x350] sm:$0xff]  ;;  %v812_v20 = vld [vmem:[%s3829_s23 + $0x168] sm:$0xff] }
 0x122   : > { %2258 = vmatpush1.bf16.msra.mxu1 %v2257_v26  ;;  %v997_v8 = vmax.f32 %v869_v56, 0.0  ;;  %v936_v9 = vmax.f32 %v808_v61, 0.0  ;;  %v938_v10 = vmax.f32 %v810_v62, 0.0  ;;  %v2329_v13 = vpack.c.bf16 %v993_v58, %v991_v57  ;;  %v814_v21 = vld [vmem:[%s3829_s23 + $0x178] sm:$0xff]  ;;  %v876_v24 = vld [vmem:[%s3829_s23 + $0x368] sm:$0xff]  ;;  %v811_v26 = vld [vmem:[%s3829_s23 + $0x160] sm:$0xff] }
 0x123   : > { %2322 = vmatpush1.bf16.msra.mxu0 %v2321_v37  ;;  %2260 = vmatprep.subr.bf16.mxu1 %v2259_v38  ;;  %v2267_v14 = vpack.c.bf16 %v934_v60, %v932_v59  ;;  %v2331_v16 = vpack.c.bf16 %v998_v1, %v996_v0  ;;  %v1000_v17 = vmax.f32 %v872_v5, 0.0  ;;  %v1002_v18 = vmax.f32 %v874_v6, 0.0  ;;  %v878_v25 = vld [vmem:[%s3829_s23 + $0x378] sm:$0xff]  ;;  %v813_v30 = vld [vmem:[%s3829_s23 + $0x170] sm:$0xff]  ;;  %v875_v31 = vld [vmem:[%s3829_s23 + $0x360] sm:$0xff] }
 0x124   : > { %2324 = vmatprep.subr.bf16.mxu0 %v2323_v40  ;;  %v935_v22 = vmax.f32 %v807_v11, 0.0  ;;  %v937_v23 = vmax.f32 %v809_v12, 0.0  ;;  %v2269_v27 = vpack.c.bf16 %v933_v4, %v931_v3  ;;  %v2333_v28 = vpack.c.bf16 %v997_v8, %v995_v7  ;;  %v877_v32 = vld [vmem:[%s3829_s23 + $0x370] sm:$0xff]  ;;  %v816_v37 = vld [vmem:[%s3829_s23 + $0x188] sm:$0xff]  ;;  %v818_v38 = vld [vmem:[%s3829_s23 + $0x198] sm:$0xff] }
 0x125   : > { %v2271_v29 = vpack.c.bf16 %v938_v10, %v936_v9  ;;  %v999_v33 = vmax.f32 %v871_v15, 0.0  ;;  %v1001_v34 = vmax.f32 %v873_v19, 0.0  ;;  %v940_v35 = vmax.f32 %v812_v20, 0.0  ;;  %v880_v45 = vld [vmem:[%s3829_s23 + $0x388] sm:$0xff]  ;;  %v882_v46 = vld [vmem:[%s3829_s23 + $0x398] sm:$0xff]  ;;  %v879_v55 = vld [vmem:[%s3829_s23 + $0x380] sm:$0xff] }
 0x126   : > { %2262 = vmatpush1.bf16.msra.mxu1 %v2261_v51  ;;  %v942_v36 = vmax.f32 %v814_v21, 0.0  ;;  %v2335_v39 = vpack.c.bf16 %v1002_v18, %v1000_v17  ;;  %v1004_v40 = vmax.f32 %v876_v24, 0.0  ;;  %v1006_v41 = vmax.f32 %v878_v25, 0.0  ;;  %v815_v51 = vld [vmem:[%s3829_s23 + $0x180] sm:$0xff]  ;;  %v881_v59 = vld [vmem:[%s3829_s23 + $0x390] sm:$0xff]  ;;  %v820_v60 = vld [vmem:[%s3829_s23 + $0x1a8] sm:$0xff] }
 0x127   : > { %2326 = vmatpush1.bf16.msra.mxu0 %v2325_v52  ;;  %2264 = vmatprep.subr.bf16.mxu1 %v2263_v53  ;;  %v2273_v42 = vpack.c.bf16 %v937_v23, %v935_v22  ;;  %v939_v43 = vmax.f32 %v811_v26, 0.0  ;;  %v941_v44 = vmax.f32 %v813_v30, 0.0  ;;  %v1003_v47 = vmax.f32 %v875_v31, 0.0  ;;  %v817_v52 = vld [vmem:[%s3829_s23 + $0x190] sm:$0xff]  ;;  %v822_v61 = vld [vmem:[%s3829_s23 + $0x1b8] sm:$0xff]  ;;  %v884_v0 = vld [vmem:[%s3829_s23 + $0x3a8] sm:$0xff] }
 0x128   : > { %2328 = vmatprep.subr.bf16.mxu0 %v2327_v63  ;;  %v1005_v48 = vmax.f32 %v877_v32, 0.0  ;;  %v944_v49 = vmax.f32 %v816_v37, 0.0  ;;  %v946_v50 = vmax.f32 %v818_v38, 0.0  ;;  %v2337_v53 = vpack.c.bf16 %v1001_v34, %v999_v33  ;;  %v886_v1 = vld [vmem:[%s3829_s23 + $0x3b8] sm:$0xff]  ;;  %v821_v6 = vld [vmem:[%s3829_s23 + $0x1b0] sm:$0xff]  ;;  %v883_v7 = vld [vmem:[%s3829_s23 + $0x3a0] sm:$0xff] }
 0x129   : > { %v2275_v54 = vpack.c.bf16 %v942_v36, %v940_v35  ;;  %v2339_v56 = vpack.c.bf16 %v1006_v41, %v1004_v40  ;;  %v1008_v57 = vmax.f32 %v880_v45, 0.0  ;;  %v1010_v58 = vmax.f32 %v882_v46, 0.0  ;;  %v885_v8 = vld [vmem:[%s3829_s23 + $0x3b0] sm:$0xff]  ;;  %v888_v21 = vld [vmem:[%s3829_s23 + $0x3c8] sm:$0xff]  ;;  %v890_v22 = vld [vmem:[%s3829_s23 + $0x3d8] sm:$0xff] }
 0x12a   : > { %2266 = vmatpush1.bf16.msra.mxu1 %v2265_v2  ;;  %v943_v62 = vmax.f32 %v815_v51, 0.0  ;;  %v945_v63 = vmax.f32 %v817_v52, 0.0  ;;  %v819_v2 = vld [vmem:[%s3829_s23 + $0x1a0] sm:$0xff]  ;;  %v2277_v3 = vpack.c.bf16 %v941_v44, %v939_v43  ;;  %v2341_v4 = vpack.c.bf16 %v1005_v48, %v1003_v47  ;;  %v825_v30 = vld [vmem:[%s3829_s23 + $0x1d0] sm:$0xff]  ;;  %v828_v36 = vld [vmem:[%s3829_s23 + $0x1e8] sm:$0xff] }
 0x12b   : > { %2330 = vmatpush1.bf16.msra.mxu0 %v2329_v13  ;;  %2268 = vmatprep.subr.bf16.mxu1 %v2267_v14  ;;  %v2279_v5 = vpack.c.bf16 %v946_v50, %v944_v49  ;;  %v1007_v9 = vmax.f32 %v879_v55, 0.0  ;;  %v1009_v10 = vmax.f32 %v881_v59, 0.0  ;;  %v948_v11 = vmax.f32 %v820_v60, 0.0  ;;  %v824_v13 = vld [vmem:[%s3829_s23 + $0x1c8] sm:$0xff]  ;;  %v826_v14 = vld [vmem:[%s3829_s23 + $0x1d8] sm:$0xff]  ;;  %v887_v31 = vld [vmem:[%s3829_s23 + $0x3c0] sm:$0xff] }
 0x12c   : > { %2332 = vmatprep.subr.bf16.mxu0 %v2331_v16  ;;  %v950_v12 = vmax.f32 %v822_v61, 0.0  ;;  %v2343_v15 = vpack.c.bf16 %v1010_v58, %v1008_v57  ;;  %v1012_v16 = vmax.f32 %v884_v0, 0.0  ;;  %v1014_v17 = vmax.f32 %v886_v1, 0.0  ;;  %v889_v35 = vld [vmem:[%s3829_s23 + $0x3d0] sm:$0xff]  ;;  %v830_v37 = vld [vmem:[%s3829_s23 + $0x1f8] sm:$0xff]  ;;  %v827_v49 = vld [vmem:[%s3829_s23 + $0x1e0] sm:$0xff] }
 0x12d   : > { %v2281_v18 = vpack.c.bf16 %v945_v63, %v943_v62  ;;  %v947_v19 = vmax.f32 %v819_v2, 0.0  ;;  %v949_v20 = vmax.f32 %v821_v6, 0.0  ;;  %v1011_v23 = vmax.f32 %v883_v7, 0.0  ;;  %v894_v40 = vld [vmem:[%s3829_s23 + $0x3f8] sm:$0xff]  ;;  %v829_v50 = vld [vmem:[%s3829_s23 + $0x1f0] sm:$0xff]  ;;  %v1023_v2 = vld [vmem:[%s4825_s1] sm:$0xff] }
 0x12e   : > { %2270 = vmatpush1.bf16.msra.mxu1 %v2269_v27  ;;  %v1013_v24 = vmax.f32 %v885_v8, 0.0  ;;  %v952_v25 = vmax.f32 %v824_v13, 0.0  ;;  %v954_v26 = vmax.f32 %v826_v14, 0.0  ;;  %v2345_v27 = vpack.c.bf16 %v1009_v10, %v1007_v9  ;;  %v893_v55 = vld [vmem:[%s3829_s23 + $0x3f0] sm:$0xff]  ;;  %v1027_v6 = vld [vmem:[%s4825_s1 + $0x20] sm:$0xff]  ;;  %v1032_v8 = vld [vmem:[%s4825_s1 + $0x48] sm:$0xff] }
 0x12f   : > { %2334 = vmatpush1.bf16.msra.mxu0 %v2333_v28  ;;  %2272 = vmatprep.subr.bf16.mxu1 %v2271_v29  ;;  %v2283_v28 = vpack.c.bf16 %v950_v12, %v948_v11  ;;  %v823_v29 = vld [vmem:[%s3829_s23 + $0x1c0] sm:$0xff]  ;;  %v2347_v32 = vpack.c.bf16 %v1014_v17, %v1012_v16  ;;  %v1016_v33 = vmax.f32 %v888_v21, 0.0  ;;  %v1018_v34 = vmax.f32 %v890_v22, 0.0  ;;  %v1029_v7 = vld [vmem:[%s4825_s1 + $0x30] sm:$0xff]  ;;  %v1034_v9 = vld [vmem:[%s4825_s1 + $0x58] sm:$0xff] }
 0x130   : > { %2336 = vmatprep.subr.bf16.mxu0 %v2335_v39  ;;  %v2285_v38 = vpack.c.bf16 %v949_v20, %v947_v19  ;;  %v892_v39 = vld [vmem:[%s3829_s23 + $0x3e8] sm:$0xff]  ;;  %v2349_v41 = vpack.c.bf16 %v1013_v24, %v1011_v23  ;;  %v951_v43 = vmax.f32 %v823_v29, 0.0  ;;  %v953_v44 = vmax.f32 %v825_v30, 0.0  ;;  %v1031_v10 = vld [vmem:[%s4825_s1 + $0x40] sm:$0xff]  ;;  %v1033_v11 = vld [vmem:[%s4825_s1 + $0x50] sm:$0xff] }
 0x131   : > { %v1015_v45 = vmax.f32 %v887_v31, 0.0  ;;  %v1017_v46 = vmax.f32 %v889_v35, 0.0  ;;  %v956_v47 = vmax.f32 %v828_v36, 0.0  ;;  %v958_v48 = vmax.f32 %v830_v37, 0.0  ;;  %v1036_v12 = vld [vmem:[%s4825_s1 + $0x68] sm:$0xff]  ;;  %v1038_v13 = vld [vmem:[%s4825_s1 + $0x78] sm:$0xff] }
 0x132   : > { %2274 = vmatpush1.bf16.msra.mxu1 %v2273_v42  ;;  %v2287_v42 = vpack.c.bf16 %v954_v26, %v952_v25  ;;  %v2351_v51 = vpack.c.bf16 %v1018_v34, %v1016_v33  ;;  %v1020_v52 = vmax.f32 %v892_v39, 0.0  ;;  %v955_v57 = vmax.f32 %v827_v49, 0.0  ;;  %v1035_v14 = vld [vmem:[%s4825_s1 + $0x60] sm:$0xff]  ;;  %v1040_v16 = vld [vmem:[%s4825_s1 + $0x88] sm:$0xff]  ;;  %v1042_v17 = vld [vmem:[%s4825_s1 + $0x98] sm:$0xff] }
 0x133   : > { %2338 = vmatpush1.bf16.msra.mxu0 %v2337_v53  ;;  %2276 = vmatprep.subr.bf16.mxu1 %v2275_v54  ;;  %v1022_v53 = vmax.f32 %v894_v40, 0.0  ;;  %v891_v54 = vld [vmem:[%s3829_s23 + $0x3e0] sm:$0xff]  ;;  %v957_v58 = vmax.f32 %v829_v50, 0.0  ;;  %v2353_v59 = vpack.c.bf16 %v1017_v46, %v1015_v45  ;;  %v2291_v60 = vpack.c.bf16 %v958_v48, %v956_v47  ;;  %v1041_v19 = vld [vmem:[%s4825_s1 + $0x90] sm:$0xff]  ;;  %v1044_v20 = vld [vmem:[%s4825_s1 + $0xa8] sm:$0xff] }
 0x134   : > { %2340 = vmatprep.subr.bf16.mxu0 %v2339_v56  ;;  %v2289_v56 = vpack.c.bf16 %v953_v44, %v951_v43  ;;  %v1019_v61 = vmax.f32 %v891_v54, 0.0  ;;  %v1021_v62 = vmax.f32 %v893_v55, 0.0  ;;  %v1046_v21 = vld [vmem:[%s4825_s1 + $0xb8] sm:$0xff]  ;;  %v1043_v22 = vld [vmem:[%s4825_s1 + $0xa0] sm:$0xff]  ;;  %v1045_v23 = vld [vmem:[%s4825_s1 + $0xb0] sm:$0xff] }
 0x135   : > { %v2355_v63 = vpack.c.bf16 %v1022_v53, %v1020_v52  ;;  %v2293_v0 = vpack.c.bf16 %v957_v58, %v955_v57  ;;  %v1048_v24 = vld [vmem:[%s4825_s1 + $0xc8] sm:$0xff]  ;;  %v1050_v25 = vld [vmem:[%s4825_s1 + $0xd8] sm:$0xff]  ;;  %v1047_v26 = vld [vmem:[%s4825_s1 + $0xc0] sm:$0xff] }
 0x136   : > { %2278 = vmatpush1.bf16.msra.mxu1 %v2277_v3  ;;  %v2357_v1 = vpack.c.bf16 %v1021_v62, %v1019_v61  ;;  %v1025_v3 = vld [vmem:[%s4825_s1 + $0x10] sm:$0xff]  ;;  %v1054_v29 = vld [vmem:[%s4825_s1 + $0xf8] sm:$0xff]  ;;  %v1051_v30 = vld [vmem:[%s4825_s1 + $0xe0] sm:$0xff] }
 0x137   : > { %2342 = vmatpush1.bf16.msra.mxu0 %v2341_v4  ;;  %2280 = vmatprep.subr.bf16.mxu1 %v2279_v5  ;;  %v1028_v4 = vld [vmem:[%s4825_s1 + $0x28] sm:$0xff]  ;;  %v1030_v5 = vld [vmem:[%s4825_s1 + $0x38] sm:$0xff]  ;;  %v1053_v31 = vld [vmem:[%s4825_s1 + $0xf0] sm:$0xff] }
 0x138   : > { %2344 = vmatprep.subr.bf16.mxu0 %v2343_v15  ;;  %v1037_v15 = vld [vmem:[%s4825_s1 + $0x70] sm:$0xff]  ;;  %v1058_v33 = vld [vmem:[%s4825_s1 + $0x118] sm:$0xff]  ;;  %v1055_v34 = vld [vmem:[%s4825_s1 + $0x100] sm:$0xff] }
 0x139   : > { %v1057_v35 = vld [vmem:[%s4825_s1 + $0x110] sm:$0xff]  ;;  %v1060_v36 = vld [vmem:[%s4825_s1 + $0x128] sm:$0xff]  ;;  %v1062_v37 = vld [vmem:[%s4825_s1 + $0x138] sm:$0xff] }
 0x13a   : > { %2282 = vmatpush1.bf16.msra.mxu1 %v2281_v18  ;;  %v1039_v18 = vld [vmem:[%s4825_s1 + $0x80] sm:$0xff]  ;;  %v1061_v39 = vld [vmem:[%s4825_s1 + $0x130] sm:$0xff]  ;;  %v1064_v40 = vld [vmem:[%s4825_s1 + $0x148] sm:$0xff] }
 0x13b   : > { %2346 = vmatpush1.bf16.msra.mxu0 %v2345_v27  ;;  %2284 = vmatprep.subr.bf16.mxu1 %v2283_v28  ;;  %v1049_v27 = vld [vmem:[%s4825_s1 + $0xd0] sm:$0xff]  ;;  %v1052_v28 = vld [vmem:[%s4825_s1 + $0xe8] sm:$0xff]  ;;  %v1070_v45 = vld [vmem:[%s4825_s1 + $0x178] sm:$0xff] }
 0x13c   : > { %2348 = vmatprep.subr.bf16.mxu0 %v2347_v32  ;;  %v1056_v32 = vld [vmem:[%s4825_s1 + $0x108] sm:$0xff]  ;;  %v1065_v43 = vld [vmem:[%s4825_s1 + $0x150] sm:$0xff]  ;;  %v1067_v46 = vld [vmem:[%s4825_s1 + $0x160] sm:$0xff] }
 0x13d   : > { %v1068_v44 = vld [vmem:[%s4825_s1 + $0x168] sm:$0xff]  ;;  %v1069_v47 = vld [vmem:[%s4825_s1 + $0x170] sm:$0xff]  ;;  %v1074_v49 = vld [vmem:[%s4825_s1 + $0x198] sm:$0xff] }
 0x13e   : > { %2286 = vmatpush1.bf16.msra.mxu1 %v2285_v38  ;;  %v1059_v38 = vld [vmem:[%s4825_s1 + $0x120] sm:$0xff]  ;;  %v1072_v48 = vld [vmem:[%s4825_s1 + $0x188] sm:$0xff]  ;;  %v1078_v53 = vld [vmem:[%s4825_s1 + $0x1b8] sm:$0xff] }
 0x13f   : > { %2350 = vmatpush1.bf16.msra.mxu0 %v2349_v41  ;;  %2288 = vmatprep.subr.bf16.mxu1 %v2287_v42  ;;  %v1066_v41 = vld [vmem:[%s4825_s1 + $0x158] sm:$0xff]  ;;  %v1063_v42 = vld [vmem:[%s4825_s1 + $0x140] sm:$0xff]  ;;  %v1076_v52 = vld [vmem:[%s4825_s1 + $0x1a8] sm:$0xff] }
 0x140   : > { %2352 = vmatprep.subr.bf16.mxu0 %v2351_v51  ;;  %v1071_v50 = vld [vmem:[%s4825_s1 + $0x180] sm:$0xff]  ;;  %v1073_v51 = vld [vmem:[%s4825_s1 + $0x190] sm:$0xff]  ;;  %v1082_v57 = vld [vmem:[%s4825_s1 + $0x1d8] sm:$0xff] }
 0x141   : > { %v1075_v54 = vld [vmem:[%s4825_s1 + $0x1a0] sm:$0xff]  ;;  %v1077_v55 = vld [vmem:[%s4825_s1 + $0x1b0] sm:$0xff]  ;;  %v1086_v61 = vld [vmem:[%s4825_s1 + $0x1f8] sm:$0xff] }
 0x142   : > { %2290 = vmatpush1.bf16.msra.mxu1 %v2289_v56  ;;  %v1080_v56 = vld [vmem:[%s4825_s1 + $0x1c8] sm:$0xff]  ;;  %v1079_v58 = vld [vmem:[%s4825_s1 + $0x1c0] sm:$0xff] }
 0x143   : > { %2354 = vmatpush1.bf16.msra.mxu0 %v2353_v59  ;;  %2292 = vmatprep.subr.bf16.mxu1 %v2291_v60  ;;  %v1081_v59 = vld [vmem:[%s4825_s1 + $0x1d0] sm:$0xff]  ;;  %v1084_v60 = vld [vmem:[%s4825_s1 + $0x1e8] sm:$0xff]  ;;  %v1083_v62 = vld [vmem:[%s4825_s1 + $0x1e0] sm:$0xff] }
 0x144   : > { %2356 = vmatprep.subr.bf16.mxu0 %v2355_v63  ;;  %v1085_v63 = vld [vmem:[%s4825_s1 + $0x1f0] sm:$0xff] }
 0x146   : > { %2294 = vmatpush1.bf16.msra.mxu1 %v2293_v0 }
 0x147   : > { %2358 = vmatpush1.bf16.msra.mxu0 %v2357_v1 }
 0x149   : > { %1152 = vmatmul.mubr.f32.vlgmr.msra.gmra.mrb[0].mxu1 %v1023_v2 }
 0x14a   : > { %1313 = vmatmul.mubr.f32.vlgmr.msra.gmra.mrb[0].mxu0 %v1025_v3  ;;  %1157 = vmatprep.mubr.f32.mxu1 %v1028_v4 }
 0x14b   : > { %1318 = vmatprep.mubr.f32.mxu0 %v1030_v5 }
 0x14d   : > { %1158 = vmatmul.mubr.f32.gmra.mrb[2].mxu1 %v1027_v6 }
 0x14e   : > { %1319 = vmatmul.mubr.f32.gmra.mrb[2].mxu0 %v1029_v7  ;;  %1163 = vmatprep.mubr.f32.mxu1 %v1032_v8 }
 0x14f   : > { %1324 = vmatprep.mubr.f32.mxu0 %v1034_v9 }
 0x151   : > { %1164 = vmatmul.mubr.f32.gmra.mrb[4].mxu1 %v1031_v10 }
 0x152   : > { %1325 = vmatmul.mubr.f32.gmra.mrb[4].mxu0 %v1033_v11  ;;  %1169 = vmatprep.mubr.f32.mxu1 %v1036_v12 }
 0x153   : > { %1330 = vmatprep.mubr.f32.mxu0 %v1038_v13 }
 0x155   : > { %1170 = vmatmul.mubr.f32.gmra.mrb[6].mxu1 %v1035_v14 }
 0x156   : > { %1331 = vmatmul.mubr.f32.gmra.mrb[6].mxu0 %v1037_v15  ;;  %1175 = vmatprep.mubr.f32.mxu1 %v1040_v16 }
 0x157   : > { %1336 = vmatprep.mubr.f32.mxu0 %v1042_v17 }
 0x159   : > { %1176 = vmatmul.mubr.f32.gmra.mrb[8].mxu1 %v1039_v18 }
 0x15a   : > { %1337 = vmatmul.mubr.f32.gmra.mrb[8].mxu0 %v1041_v19  ;;  %1181 = vmatprep.mubr.f32.mxu1 %v1044_v20 }
 0x15b   : > { %1342 = vmatprep.mubr.f32.mxu0 %v1046_v21 }
 0x15d   : > { %1182 = vmatmul.mubr.f32.gmra.mrb[10].mxu1 %v1043_v22 }
 0x15e   : > { %1343 = vmatmul.mubr.f32.gmra.mrb[10].mxu0 %v1045_v23  ;;  %1187 = vmatprep.mubr.f32.mxu1 %v1048_v24 }
 0x15f   : > { %1348 = vmatprep.mubr.f32.mxu0 %v1050_v25 }
 0x161   : > { %1188 = vmatmul.mubr.f32.gmra.mrb[12].mxu1 %v1047_v26 }
 0x162   : > { %1349 = vmatmul.mubr.f32.gmra.mrb[12].mxu0 %v1049_v27  ;;  %1193 = vmatprep.mubr.f32.mxu1 %v1052_v28 }
 0x163   : > { %1354 = vmatprep.mubr.f32.mxu0 %v1054_v29 }
 0x165   : > { %1194 = vmatmul.mubr.f32.gmra.mrb[14].mxu1 %v1051_v30 }
 0x166   : > { %1355 = vmatmul.mubr.f32.gmra.mrb[14].mxu0 %v1053_v31  ;;  %1199 = vmatprep.mubr.f32.mxu1 %v1056_v32 }
 0x167   : > { %1360 = vmatprep.mubr.f32.mxu0 %v1058_v33 }
 0x169   : > { %1200 = vmatmul.mubr.f32.gmra.mrb[16].mxu1 %v1055_v34 }
 0x16a   : > { %1361 = vmatmul.mubr.f32.gmra.mrb[16].mxu0 %v1057_v35  ;;  %1205 = vmatprep.mubr.f32.mxu1 %v1060_v36 }
 0x16b   : > { %1366 = vmatprep.mubr.f32.mxu0 %v1062_v37 }
 0x16d   : > { %1206 = vmatmul.mubr.f32.gmra.mrb[18].mxu1 %v1059_v38 }
 0x16e   : > { %1367 = vmatmul.mubr.f32.gmra.mrb[18].mxu0 %v1061_v39  ;;  %1211 = vmatprep.mubr.f32.mxu1 %v1064_v40 }
 0x16f   : > { %1372 = vmatprep.mubr.f32.mxu0 %v1066_v41 }
 0x171   : > { %1212 = vmatmul.mubr.f32.gmra.mrb[20].mxu1 %v1063_v42 }
 0x172   : > { %1373 = vmatmul.mubr.f32.gmra.mrb[20].mxu0 %v1065_v43  ;;  %1217 = vmatprep.mubr.f32.mxu1 %v1068_v44 }
 0x173   : > { %1378 = vmatprep.mubr.f32.mxu0 %v1070_v45 }
 0x175   : > { %1218 = vmatmul.mubr.f32.gmra.mrb[22].mxu1 %v1067_v46 }
 0x176   : > { %1379 = vmatmul.mubr.f32.gmra.mrb[22].mxu0 %v1069_v47  ;;  %1223 = vmatprep.mubr.f32.mxu1 %v1072_v48 }
 0x177   : > { %1384 = vmatprep.mubr.f32.mxu0 %v1074_v49 }
 0x179   : > { %1224 = vmatmul.mubr.f32.gmra.mrb[24].mxu1 %v1071_v50 }
 0x17a   : > { %1385 = vmatmul.mubr.f32.gmra.mrb[24].mxu0 %v1073_v51  ;;  %1229 = vmatprep.mubr.f32.mxu1 %v1076_v52 }
 0x17b   : > { %1390 = vmatprep.mubr.f32.mxu0 %v1078_v53 }
 0x17d   : > { %1230 = vmatmul.mubr.f32.gmra.mrb[26].mxu1 %v1075_v54 }
 0x17e   : > { %1391 = vmatmul.mubr.f32.gmra.mrb[26].mxu0 %v1077_v55  ;;  %1235 = vmatprep.mubr.f32.mxu1 %v1080_v56 }
 0x17f   : > { %1396 = vmatprep.mubr.f32.mxu0 %v1082_v57 }
 0x181   : > { %1236 = vmatmul.mubr.f32.gmra.mrb[28].mxu1 %v1079_v58 }
 0x182   : > { %1397 = vmatmul.mubr.f32.gmra.mrb[28].mxu0 %v1081_v59  ;;  %1241 = vmatprep.mubr.f32.mxu1 %v1084_v60 }
 0x183   : > { %1402 = vmatprep.mubr.f32.mxu0 %v1086_v61 }
 0x185   : > { %1242 = vmatmul.mubr.f32.gmra.mrb[30].mxu1 %v1083_v62 }
 0x186   : > { %1403 = vmatmul.mubr.f32.gmra.mrb[30].mxu0 %v1085_v63 }
 0x21c   : > { %v1153_v0 = vpop.f32.mrb[0].mxu1 }
 0x21d   : > { %v1314_v1 = vpop.f32.mrb[0].mxu0  ;;  %v1155_v2 = vpop.f32.mrb[1].mxu1 }
 0x21e   : > { %v1315_v3 = vadd.f32 %v1314_v1, %v1153_v0  ;;  %v1316_v4 = vpop.f32.mrb[1].mxu0 }
 0x21f   : > { %v1317_v5 = vadd.f32 %v1316_v4, %v1155_v2 }
 0x220   : > { %1409 = vst [vmem:[%s4147_s3] sm:$0xff] %v1315_v3  ;;  %v1159_v6 = vpop.f32.mrb[2].mxu1 }
 0x221   : > { %1410 = vst [vmem:[%s4147_s3 + $0x8] sm:$0xff] %v1317_v5  ;;  %v1320_v7 = vpop.f32.mrb[2].mxu0  ;;  %v1161_v8 = vpop.f32.mrb[3].mxu1 }
 0x222   : > { %v1321_v9 = vadd.f32 %v1320_v7, %v1159_v6  ;;  %v1322_v10 = vpop.f32.mrb[3].mxu0 }
 0x223   : > { %v1323_v11 = vadd.f32 %v1322_v10, %v1161_v8 }
 0x224   : > { %1411 = vst [vmem:[%s4147_s3 + $0x10] sm:$0xff] %v1321_v9  ;;  %v1165_v12 = vpop.f32.mrb[4].mxu1 }
 0x225   : > { %1412 = vst [vmem:[%s4147_s3 + $0x18] sm:$0xff] %v1323_v11  ;;  %v1326_v13 = vpop.f32.mrb[4].mxu0  ;;  %v1167_v14 = vpop.f32.mrb[5].mxu1 }
 0x226   : > { %v1327_v15 = vadd.f32 %v1326_v13, %v1165_v12  ;;  %v1328_v16 = vpop.f32.mrb[5].mxu0 }
 0x227   : > { %v1329_v17 = vadd.f32 %v1328_v16, %v1167_v14 }
 0x228   : > { %1413 = vst [vmem:[%s4147_s3 + $0x20] sm:$0xff] %v1327_v15  ;;  %v1171_v18 = vpop.f32.mrb[6].mxu1 }
 0x229   : > { %1414 = vst [vmem:[%s4147_s3 + $0x28] sm:$0xff] %v1329_v17  ;;  %v1332_v19 = vpop.f32.mrb[6].mxu0  ;;  %v1173_v20 = vpop.f32.mrb[7].mxu1 }
 0x22a   : > { %v1333_v21 = vadd.f32 %v1332_v19, %v1171_v18  ;;  %v1334_v22 = vpop.f32.mrb[7].mxu0 }
 0x22b   : > { %v1335_v23 = vadd.f32 %v1334_v22, %v1173_v20 }
 0x22c   : > { %1415 = vst [vmem:[%s4147_s3 + $0x30] sm:$0xff] %v1333_v21  ;;  %v1177_v24 = vpop.f32.mrb[8].mxu1 }
 0x22d   : > { %1416 = vst [vmem:[%s4147_s3 + $0x38] sm:$0xff] %v1335_v23  ;;  %v1338_v25 = vpop.f32.mrb[8].mxu0  ;;  %v1179_v26 = vpop.f32.mrb[9].mxu1 }
 0x22e   : > { %v1339_v27 = vadd.f32 %v1338_v25, %v1177_v24  ;;  %v1340_v28 = vpop.f32.mrb[9].mxu0 }
 0x22f   : > { %v1341_v29 = vadd.f32 %v1340_v28, %v1179_v26 }
 0x230   : > { %1417 = vst [vmem:[%s4147_s3 + $0x40] sm:$0xff] %v1339_v27  ;;  %v1183_v30 = vpop.f32.mrb[10].mxu1 }
 0x231   : > { %1418 = vst [vmem:[%s4147_s3 + $0x48] sm:$0xff] %v1341_v29  ;;  %v1344_v31 = vpop.f32.mrb[10].mxu0  ;;  %v1185_v32 = vpop.f32.mrb[11].mxu1 }
 0x232   : > { %v1345_v33 = vadd.f32 %v1344_v31, %v1183_v30  ;;  %v1346_v34 = vpop.f32.mrb[11].mxu0 }
 0x233   : > { %v1347_v35 = vadd.f32 %v1346_v34, %v1185_v32 }
 0x234   : > { %1419 = vst [vmem:[%s4147_s3 + $0x50] sm:$0xff] %v1345_v33  ;;  %v1189_v36 = vpop.f32.mrb[12].mxu1 }
 0x235   : > { %1420 = vst [vmem:[%s4147_s3 + $0x58] sm:$0xff] %v1347_v35  ;;  %v1350_v37 = vpop.f32.mrb[12].mxu0  ;;  %v1191_v38 = vpop.f32.mrb[13].mxu1 }
 0x236   : > { %v1351_v39 = vadd.f32 %v1350_v37, %v1189_v36  ;;  %v1352_v40 = vpop.f32.mrb[13].mxu0 }
 0x237   : > { %v1353_v41 = vadd.f32 %v1352_v40, %v1191_v38 }
 0x238   : > { %1421 = vst [vmem:[%s4147_s3 + $0x60] sm:$0xff] %v1351_v39  ;;  %v1195_v42 = vpop.f32.mrb[14].mxu1 }
 0x239   : > { %1422 = vst [vmem:[%s4147_s3 + $0x68] sm:$0xff] %v1353_v41  ;;  %v1356_v43 = vpop.f32.mrb[14].mxu0  ;;  %v1197_v44 = vpop.f32.mrb[15].mxu1 }
 0x23a   : > { %v1357_v45 = vadd.f32 %v1356_v43, %v1195_v42  ;;  %v1358_v46 = vpop.f32.mrb[15].mxu0 }
 0x23b   : > { %v1359_v47 = vadd.f32 %v1358_v46, %v1197_v44 }
 0x23c   : > { %1423 = vst [vmem:[%s4147_s3 + $0x70] sm:$0xff] %v1357_v45  ;;  %v1201_v48 = vpop.f32.mrb[16].mxu1 }
 0x23d   : > { %1424 = vst [vmem:[%s4147_s3 + $0x78] sm:$0xff] %v1359_v47  ;;  %v1362_v49 = vpop.f32.mrb[16].mxu0  ;;  %v1203_v50 = vpop.f32.mrb[17].mxu1 }
 0x23e   : > { %v1363_v51 = vadd.f32 %v1362_v49, %v1201_v48  ;;  %v1364_v52 = vpop.f32.mrb[17].mxu0 }
 0x23f   : > { %v1365_v53 = vadd.f32 %v1364_v52, %v1203_v50 }
 0x240   : > { %1425 = vst [vmem:[%s4147_s3 + $0x80] sm:$0xff] %v1363_v51  ;;  %v1207_v54 = vpop.f32.mrb[18].mxu1 }
 0x241   : > { %1426 = vst [vmem:[%s4147_s3 + $0x88] sm:$0xff] %v1365_v53  ;;  %v1368_v55 = vpop.f32.mrb[18].mxu0  ;;  %v1209_v56 = vpop.f32.mrb[19].mxu1 }
 0x242   : > { %v1369_v57 = vadd.f32 %v1368_v55, %v1207_v54  ;;  %v1370_v58 = vpop.f32.mrb[19].mxu0 }
 0x243   : > { %v1371_v59 = vadd.f32 %v1370_v58, %v1209_v56 }
 0x244   : > { %1427 = vst [vmem:[%s4147_s3 + $0x90] sm:$0xff] %v1369_v57  ;;  %v1213_v60 = vpop.f32.mrb[20].mxu1 }
 0x245   : > { %1428 = vst [vmem:[%s4147_s3 + $0x98] sm:$0xff] %v1371_v59  ;;  %v1374_v61 = vpop.f32.mrb[20].mxu0  ;;  %v1215_v62 = vpop.f32.mrb[21].mxu1 }
 0x246   : > { %v1375_v63 = vadd.f32 %v1374_v61, %v1213_v60  ;;  %v1376_v0 = vpop.f32.mrb[21].mxu0 }
 0x247   : > { %v1377_v1 = vadd.f32 %v1376_v0, %v1215_v62 }
 0x248   : > { %1429 = vst [vmem:[%s4147_s3 + $0xa0] sm:$0xff] %v1375_v63  ;;  %v1219_v2 = vpop.f32.mrb[22].mxu1 }
 0x249   : > { %1430 = vst [vmem:[%s4147_s3 + $0xa8] sm:$0xff] %v1377_v1  ;;  %v1380_v3 = vpop.f32.mrb[22].mxu0  ;;  %v1221_v4 = vpop.f32.mrb[23].mxu1 }
 0x24a   : > { %v1381_v5 = vadd.f32 %v1380_v3, %v1219_v2  ;;  %v1382_v6 = vpop.f32.mrb[23].mxu0 }
 0x24b   : > { %v1383_v7 = vadd.f32 %v1382_v6, %v1221_v4 }
 0x24c   : > { %1431 = vst [vmem:[%s4147_s3 + $0xb0] sm:$0xff] %v1381_v5  ;;  %v1225_v8 = vpop.f32.mrb[24].mxu1 }
 0x24d   : > { %1432 = vst [vmem:[%s4147_s3 + $0xb8] sm:$0xff] %v1383_v7  ;;  %v1386_v9 = vpop.f32.mrb[24].mxu0  ;;  %v1227_v10 = vpop.f32.mrb[25].mxu1 }
 0x24e   : > { %v1387_v11 = vadd.f32 %v1386_v9, %v1225_v8  ;;  %v1388_v12 = vpop.f32.mrb[25].mxu0 }
 0x24f   : > { %v1389_v13 = vadd.f32 %v1388_v12, %v1227_v10 }
 0x250   : > { %1433 = vst [vmem:[%s4147_s3 + $0xc0] sm:$0xff] %v1387_v11  ;;  %v1231_v14 = vpop.f32.mrb[26].mxu1 }
 0x251   : > { %1434 = vst [vmem:[%s4147_s3 + $0xc8] sm:$0xff] %v1389_v13  ;;  %v1392_v15 = vpop.f32.mrb[26].mxu0  ;;  %v1233_v16 = vpop.f32.mrb[27].mxu1 }
 0x252   : > { %v1393_v17 = vadd.f32 %v1392_v15, %v1231_v14  ;;  %v1394_v18 = vpop.f32.mrb[27].mxu0 }
 0x253   : > { %v1395_v19 = vadd.f32 %v1394_v18, %v1233_v16 }
 0x254   : > { %1435 = vst [vmem:[%s4147_s3 + $0xd0] sm:$0xff] %v1393_v17  ;;  %v1237_v20 = vpop.f32.mrb[28].mxu1 }
 0x255   : > { %1436 = vst [vmem:[%s4147_s3 + $0xd8] sm:$0xff] %v1395_v19  ;;  %v1398_v21 = vpop.f32.mrb[28].mxu0  ;;  %v1239_v22 = vpop.f32.mrb[29].mxu1 }
 0x256   : > { %v1399_v23 = vadd.f32 %v1398_v21, %v1237_v20  ;;  %v1400_v24 = vpop.f32.mrb[29].mxu0 }
 0x257   : > { %v1401_v25 = vadd.f32 %v1400_v24, %v1239_v22  ;;  %1447 = sbr.rel (!%p2915_p6) target bundleno = 795 (0x31b), region = 84 }
 0x258   : > { %1437 = vst [vmem:[%s4147_s3 + $0xe0] sm:$0xff] %v1399_v23  ;;  %v1243_v26 = vpop.f32.mrb[30].mxu1 }
 0x259   : > { %1438 = vst [vmem:[%s4147_s3 + $0xe8] sm:$0xff] %v1401_v25  ;;  %v1404_v27 = vpop.f32.mrb[30].mxu0  ;;  %v1245_v28 = vpop.f32.mrb[31].mxu1 }
 0x25a   : > { %v1405_v29 = vadd.f32 %v1404_v27, %v1243_v26  ;;  %v1406_v30 = vpop.f32.mrb[31].mxu0 }
 0x25b   : > { %v1407_v31 = vadd.f32 %v1406_v30, %v1245_v28 }
 0x25c   : > { %1439 = vst [vmem:[%s4147_s3 + $0xf0] sm:$0xff] %v1405_v29 }
 0x25d   : > { %1440 = vst [vmem:[%s4147_s3 + $0xf8] sm:$0xff] %v1407_v31 }
 0x25e   : > { %s4869_s17 = smov (!%p1450_p8, %s1449_s17), 2 }
 0x25f   : > { %s2198_s22 = sshll.u32 %s4869_s17, 11  ;;  %s4190_s30 = sshll.u32 %s4869_s17, 3 }
 0x260   : > { %p2202_p9 = scmp.eq.s32.totalorder %s2198_s22, 0 }
 0x261   : > { %p1462_p10 = scmp.lt.u32.totalorder (!%p2202_p9), %s4190_s30, 8 }
 0x262   : > { %1461 = sbr.rel (%p2202_p9) target bundleno = 795 (0x31b), region = 88 }
 0x269   : > { %1465 = sbr.rel (%p1462_p10) target bundleno = 776 (0x308), region = 92  ;;  %s4194_s18 = sand.u32 (!%p1462_p10), 7, %s4190_s30  }
 0x26a   : > { %p1511_p6 = scmp.eq.s32.totalorder (!%p1462_p10), %s4194_s18, 0  ;;  %p2203_p11 = scmp.ne.s32.totalorder (!%p1462_p10), %s4194_s18, 0 }
 0x270   : > { %1514 = sbr.rel (%p2203_p11) target bundleno = 691 (0x2b3), region = 107  ;;  %s1515_s11 = sshrl.u32 (!%p2203_p11), %s4190_s30, 3 }
 0x271   : > { %s4201_s23 = sshrl.u32 (!%p2203_p11), %s1515_s11, 2 }
 0x272   : > { %p2204_p12 = scmp.le.s32.totalorder (!%p2203_p11), %s4201_s23, 0 }
 0x277   : > { %2094 = sbr.rel (%p2204_p12) target bundleno = 671 (0x29f), region = 225  ;;  %s4838_s24 = smov (!%p2204_p12), %s4188_s27 }
 0x278   : > { %s4839_s25 = smov (!%p2204_p12), %s4147_s3  ;;  %s4210_s26 = smov (!%p2204_p12), 0  }
 0x279   : > { %s4212_s28 = smov (!%p2204_p12), 0  }
 0x27e LB: >> { %v1528_v32 = vld [vmem:[%s2803_s25] sm:$0xff]  ;;  %v1530_v33 = vld [vmem:[%s2803_s25 + $0x8] sm:$0xff]  ;;  %v1532_v34 = vld [vmem:[%s2803_s25 + $0x10] sm:$0xff]  ;;  %s1656_s4 = sadd.s32 1, %s2807_s26  ;;  %s1522_s28 = sadd.s32 1, %s2811_s28   ;;  %s2811_s28 = sphi %s4212_s28, %s1522_s28   ;;  %s2807_s26 = sphi %s4210_s26, %s4843_s26   ;;  %s2803_s25 = sphi %s4839_s25, %s4842_s25   ;;  %s2799_s24 = sphi %s4838_s24, %s4841_s24  }
 0x27f   : >> { %1529 = vst [vmem:[%s2799_s24] sm:$0xff] %v1528_v32  ;;  %1531 = vst [vmem:[%s2799_s24 + $0x8] sm:$0xff] %v1530_v33  ;;  %v1534_v35 = vld [vmem:[%s2803_s25 + $0x18] sm:$0xff]  ;;  %v1540_v36 = vld [vmem:[%s2803_s25 + $0x20] sm:$0xff]  ;;  %p4238_p13 = scmp.ge.s32.totalorder %s1656_s4, %s4201_s23  ;;  %p1521_p0 = scmp.ge.s32.totalorder %s1522_s28, %s4201_s23 }
 0x280   : >> { %1533 = vst [vmem:[%s2799_s24 + $0x10] sm:$0xff] %v1532_v34  ;;  %1537 = vst [vmem:[%s2799_s24 + $0x38] sm:$0xff] %v1532_v34  ;;  %v1542_v37 = vld [vmem:[%s2803_s25 + $0x28] sm:$0xff]  ;;  %v1548_v38 = vld [vmem:[%s2803_s25 + $0x30] sm:$0xff] }
 0x281   : >> { %1535 = vst [vmem:[%s2799_s24 + $0x18] sm:$0xff] %v1534_v35  ;;  %1539 = vst [vmem:[%s2799_s24 + $0x40] sm:$0xff] %v1534_v35  ;;  %v1550_v39 = vld [vmem:[%s2803_s25 + $0x38] sm:$0xff]  ;;  %v1556_v40 = vld [vmem:[%s2803_s25 + $0x40] sm:$0xff]  ;;  %s4871_s4 = smov (%p4238_p13, %s1656_s4), 0 }
 0x282   : >> { %1541 = vst [vmem:[%s2799_s24 + $0x48] sm:$0xff] %v1540_v36  ;;  %1543 = vst [vmem:[%s2799_s24 + $0x50] sm:$0xff] %v1542_v37  ;;  %v1558_v41 = vld [vmem:[%s2803_s25 + $0x48] sm:$0xff]  ;;  %v1564_v42 = vld [vmem:[%s2803_s25 + $0x50] sm:$0xff]  ;;  %s2205_s6 = sshll.u32 %s4871_s4, 5  ;;  %s4843_s26 = smov %s4871_s4 }
 0x283   : >> { %1545 = vst [vmem:[%s2799_s24 + $0x70] sm:$0xff] %v1540_v36  ;;  %1547 = vst [vmem:[%s2799_s24 + $0x78] sm:$0xff] %v1542_v37  ;;  %v1566_v43 = vld [vmem:[%s2803_s25 + $0x58] sm:$0xff]  ;;  %v1572_v44 = vld [vmem:[%s2803_s25 + $0x60] sm:$0xff]  ;;  %s4293_s7 = scalar_lea.vmem %s4147_s3, %s2205_s6 [#allocation3]   ;;  %s4296_s8 = scalar_lea.vmem %s4188_s27, %s2205_s6  }
 0x284   : >> { %1549 = vst [vmem:[%s2799_s24 + $0x80] sm:$0xff] %v1548_v38  ;;  %1551 = vst [vmem:[%s2799_s24 + $0x88] sm:$0xff] %v1550_v39  ;;  %v1574_v45 = vld [vmem:[%s2803_s25 + $0x68] sm:$0xff]  ;;  %v1580_v46 = vld [vmem:[%s2803_s25 + $0x70] sm:$0xff] }
 0x285   : >> { %1553 = vst [vmem:[%s2799_s24 + $0xa8] sm:$0xff] %v1548_v38  ;;  %1555 = vst [vmem:[%s2799_s24 + $0xb0] sm:$0xff] %v1550_v39  ;;  %v1582_v47 = vld [vmem:[%s2803_s25 + $0x78] sm:$0xff]  ;;  %v1588_v48 = vld [vmem:[%s2803_s25 + $0x80] sm:$0xff] }
 0x286   : >> { %1557 = vst [vmem:[%s2799_s24 + $0xb8] sm:$0xff] %v1556_v40  ;;  %1561 = vst [vmem:[%s2799_s24 + $0xe0] sm:$0xff] %v1556_v40  ;;  %v1590_v49 = vld [vmem:[%s2803_s25 + $0x88] sm:$0xff]  ;;  %v1596_v50 = vld [vmem:[%s2803_s25 + $0x90] sm:$0xff] }
 0x287   : >> { %1559 = vst [vmem:[%s2799_s24 + $0xc0] sm:$0xff] %v1558_v41  ;;  %1563 = vst [vmem:[%s2799_s24 + $0xe8] sm:$0xff] %v1558_v41  ;;  %v1598_v51 = vld [vmem:[%s2803_s25 + $0x98] sm:$0xff]  ;;  %v1604_v52 = vld [vmem:[%s2803_s25 + $0xa0] sm:$0xff] }
 0x288   : >> { %1565 = vst [vmem:[%s2799_s24 + $0xf0] sm:$0xff] %v1564_v42  ;;  %1567 = vst [vmem:[%s2799_s24 + $0xf8] sm:$0xff] %v1566_v43  ;;  %v1606_v53 = vld [vmem:[%s2803_s25 + $0xa8] sm:$0xff]  ;;  %v1612_v54 = vld [vmem:[%s2803_s25 + $0xb0] sm:$0xff] }
 0x289   : >> { %1569 = vst [vmem:[%s2799_s24 + $0x118] sm:$0xff] %v1564_v42  ;;  %1571 = vst [vmem:[%s2799_s24 + $0x120] sm:$0xff] %v1566_v43  ;;  %v1614_v55 = vld [vmem:[%s2803_s25 + $0xb8] sm:$0xff]  ;;  %v1620_v56 = vld [vmem:[%s2803_s25 + $0xc0] sm:$0xff] }
 0x28a   : >> { %1573 = vst [vmem:[%s2799_s24 + $0x128] sm:$0xff] %v1572_v44  ;;  %1575 = vst [vmem:[%s2799_s24 + $0x130] sm:$0xff] %v1574_v45  ;;  %v1622_v57 = vld [vmem:[%s2803_s25 + $0xc8] sm:$0xff]  ;;  %v1628_v58 = vld [vmem:[%s2803_s25 + $0xd0] sm:$0xff] }
 0x28b   : >> { %1577 = vst [vmem:[%s2799_s24 + $0x150] sm:$0xff] %v1572_v44  ;;  %1579 = vst [vmem:[%s2799_s24 + $0x158] sm:$0xff] %v1574_v45  ;;  %v1630_v59 = vld [vmem:[%s2803_s25 + $0xd8] sm:$0xff]  ;;  %v1636_v60 = vld [vmem:[%s2803_s25 + $0xe0] sm:$0xff] }
 0x28c   : >> { %1581 = vst [vmem:[%s2799_s24 + $0x160] sm:$0xff] %v1580_v46  ;;  %1585 = vst [vmem:[%s2799_s24 + $0x188] sm:$0xff] %v1580_v46  ;;  %v1638_v61 = vld [vmem:[%s2803_s25 + $0xe8] sm:$0xff]  ;;  %v1644_v62 = vld [vmem:[%s2803_s25 + $0xf0] sm:$0xff] }
 0x28d   : >> { %1583 = vst [vmem:[%s2799_s24 + $0x168] sm:$0xff] %v1582_v47  ;;  %1587 = vst [vmem:[%s2799_s24 + $0x190] sm:$0xff] %v1582_v47  ;;  %v1646_v63 = vld [vmem:[%s2803_s25 + $0xf8] sm:$0xff]  ;;  %v1652_v0 = vld [vmem:[%s2803_s25 + $0x100] sm:$0xff] }
 0x28e   : >> { %1589 = vst [vmem:[%s2799_s24 + $0x198] sm:$0xff] %v1588_v48  ;;  %1591 = vst [vmem:[%s2799_s24 + $0x1a0] sm:$0xff] %v1590_v49  ;;  %v1654_v1 = vld [vmem:[%s2803_s25 + $0x108] sm:$0xff]  ;;  %s4842_s25 = smov %s4293_s7 }
 0x28f   : >> { %1593 = vst [vmem:[%s2799_s24 + $0x1c0] sm:$0xff] %v1588_v48  ;;  %1595 = vst [vmem:[%s2799_s24 + $0x1c8] sm:$0xff] %v1590_v49 }
 0x290   : >> { %1597 = vst [vmem:[%s2799_s24 + $0x1d0] sm:$0xff] %v1596_v50  ;;  %1599 = vst [vmem:[%s2799_s24 + $0x1d8] sm:$0xff] %v1598_v51 }
 0x291   : >> { %1601 = vst [vmem:[%s2799_s24 + $0x1f8] sm:$0xff] %v1596_v50  ;;  %1603 = vst [vmem:[%s2799_s24 + $0x200] sm:$0xff] %v1598_v51 }
 0x292   : >> { %1605 = vst [vmem:[%s2799_s24 + $0x208] sm:$0xff] %v1604_v52  ;;  %1609 = vst [vmem:[%s2799_s24 + $0x230] sm:$0xff] %v1604_v52 }
 0x293   : >> { %1607 = vst [vmem:[%s2799_s24 + $0x210] sm:$0xff] %v1606_v53  ;;  %1611 = vst [vmem:[%s2799_s24 + $0x238] sm:$0xff] %v1606_v53 }
 0x294   : >> { %1613 = vst [vmem:[%s2799_s24 + $0x240] sm:$0xff] %v1612_v54  ;;  %1615 = vst [vmem:[%s2799_s24 + $0x248] sm:$0xff] %v1614_v55 }
 0x295   : >> { %1617 = vst [vmem:[%s2799_s24 + $0x268] sm:$0xff] %v1612_v54  ;;  %1619 = vst [vmem:[%s2799_s24 + $0x270] sm:$0xff] %v1614_v55 }
 0x296   : >> { %1621 = vst [vmem:[%s2799_s24 + $0x278] sm:$0xff] %v1620_v56  ;;  %1623 = vst [vmem:[%s2799_s24 + $0x280] sm:$0xff] %v1622_v57 }
 0x297   : >> { %1625 = vst [vmem:[%s2799_s24 + $0x2a0] sm:$0xff] %v1620_v56  ;;  %1627 = vst [vmem:[%s2799_s24 + $0x2a8] sm:$0xff] %v1622_v57 }
 0x298   : >> { %1629 = vst [vmem:[%s2799_s24 + $0x2b0] sm:$0xff] %v1628_v58  ;;  %1633 = vst [vmem:[%s2799_s24 + $0x2d8] sm:$0xff] %v1628_v58  ;;  %1524 = sbr.rel (!%p1521_p0) target bundleno = 638 (0x27e), region = 231 }
 0x299   : >> { %1631 = vst [vmem:[%s2799_s24 + $0x2b8] sm:$0xff] %v1630_v59  ;;  %1635 = vst [vmem:[%s2799_s24 + $0x2e0] sm:$0xff] %v1630_v59 }
 0x29a   : >> { %1637 = vst [vmem:[%s2799_s24 + $0x2e8] sm:$0xff] %v1636_v60  ;;  %1639 = vst [vmem:[%s2799_s24 + $0x2f0] sm:$0xff] %v1638_v61 }
 0x29b   : >> { %1641 = vst [vmem:[%s2799_s24 + $0x310] sm:$0xff] %v1636_v60  ;;  %1643 = vst [vmem:[%s2799_s24 + $0x318] sm:$0xff] %v1638_v61 }
 0x29c   : >> { %1645 = vst [vmem:[%s2799_s24 + $0x320] sm:$0xff] %v1644_v62  ;;  %1647 = vst [vmem:[%s2799_s24 + $0x328] sm:$0xff] %v1646_v63 }
 0x29d   : >> { %1649 = vst [vmem:[%s2799_s24 + $0x348] sm:$0xff] %v1644_v62  ;;  %1651 = vst [vmem:[%s2799_s24 + $0x350] sm:$0xff] %v1646_v63 }
 0x29e   : >> { %1653 = vst [vmem:[%s2799_s24 + $0x358] sm:$0xff] %v1652_v0  ;;  %1655 = vst [vmem:[%s2799_s24 + $0x360] sm:$0xff] %v1654_v1  ;;  %s4841_s24 = smov %s4296_s8 }
 0x29f PF: > { %s4356_s15 = sand.u32 3, %s1515_s11   ;;  %s2227_s16 = sshll.u32 %s4201_s23, 9 }
 0x2a0   : > { %s1667_s9 = sshra.s32 %s2227_s16, 4  ;;  %p2210_p1 = scmp.le.s32.totalorder %s4356_s15, 0 }
 0x2a1   : > { %s4360_s29 = scalar_lea.vmem %s4147_s3, %s1667_s9 [#allocation3]   ;;  %s4363_s17 = scalar_lea.vmem %s4188_s27, %s1667_s9  }
 0x2a2   : > { %2108 = sbr.rel (%p2210_p1) target bundleno = 691 (0x2b3), region = 236  ;;  %s4844_s20 = smov (!%p2210_p1), %s4363_s17 }
 0x2a3   : > { %s4845_s21 = smov (!%p2210_p1), %s4360_s29  ;;  %s4372_s22 = smov (!%p2210_p1), 0  }
 0x2a4   : > { %s4374_s24 = smov (!%p2210_p1), 0  }
 0x2a9 LB: >> { %v1683_v2 = vld [vmem:[%s2819_s21] sm:$0xff]  ;;  %v1685_v3 = vld [vmem:[%s2819_s21 + $0x10] sm:$0xff]  ;;  %s1715_s11 = sadd.s32 1, %s2823_s22  ;;  %s1677_s24 = sadd.s32 1, %s2827_s24   ;;  %s2827_s24 = sphi %s4374_s24, %s1677_s24   ;;  %s2823_s22 = sphi %s4372_s22, %s4846_s22   ;;  %s2819_s21 = sphi %s4845_s21, %s1720_s21   ;;  %s2815_s20 = sphi %s4844_s20, %s1721_s20  }
 0x2aa   : >> { %v1687_v4 = vld [vmem:[%s2819_s21 + $0x20] sm:$0xff]  ;;  %1684 = vst [vmem:[%s2815_s20] sm:$0xff] %v1683_v2  ;;  %1686 = vst [vmem:[%s2815_s20 + $0x38] sm:$0xff] %v1685_v3  ;;  %v1689_v5 = vld [vmem:[%s2819_s21 + $0x30] sm:$0xff]  ;;  %p1716_p2 = scmp.ge.s32.totalorder %s1715_s11, %s4356_s15  ;;  %p1676_p3 = scmp.ge.s32.totalorder %s1677_s24, %s4356_s15 }
 0x2ab   : >> { %1688 = vst [vmem:[%s2815_s20 + $0x70] sm:$0xff] %v1687_v4  ;;  %v1691_v6 = vld [vmem:[%s2819_s21 + $0x40] sm:$0xff]  ;;  %v1693_v7 = vld [vmem:[%s2819_s21 + $0x50] sm:$0xff]  ;;  %1690 = vst [vmem:[%s2815_s20 + $0xa8] sm:$0xff] %v1689_v5 }
 0x2ac   : >> { %1692 = vst [vmem:[%s2815_s20 + $0xe0] sm:$0xff] %v1691_v6  ;;  %1694 = vst [vmem:[%s2815_s20 + $0x118] sm:$0xff] %v1693_v7  ;;  %v1695_v8 = vld [vmem:[%s2819_s21 + $0x60] sm:$0xff]  ;;  %v1697_v9 = vld [vmem:[%s2819_s21 + $0x70] sm:$0xff]  ;;  %s4873_s11 = smov (%p1716_p2, %s1715_s11), 0  ;;  %1679 = sbr.rel (!%p1676_p3) target bundleno = 681 (0x2a9), region = 242 }
 0x2ad   : >> { %v1699_v10 = vld [vmem:[%s2819_s21 + $0x80] sm:$0xff]  ;;  %1696 = vst [vmem:[%s2815_s20 + $0x150] sm:$0xff] %v1695_v8  ;;  %1698 = vst [vmem:[%s2815_s20 + $0x188] sm:$0xff] %v1697_v9  ;;  %v1701_v11 = vld [vmem:[%s2819_s21 + $0x90] sm:$0xff]  ;;  %s2211_s23 = sshll.u32 %s4873_s11, 3  ;;  %s4846_s22 = smov %s4873_s11 }
 0x2ae   : >> { %1700 = vst [vmem:[%s2815_s20 + $0x1c0] sm:$0xff] %v1699_v10  ;;  %v1703_v12 = vld [vmem:[%s2819_s21 + $0xa0] sm:$0xff]  ;;  %v1705_v13 = vld [vmem:[%s2819_s21 + $0xb0] sm:$0xff]  ;;  %1702 = vst [vmem:[%s2815_s20 + $0x1f8] sm:$0xff] %v1701_v11 }
 0x2af   : >> { %1704 = vst [vmem:[%s2815_s20 + $0x230] sm:$0xff] %v1703_v12  ;;  %1706 = vst [vmem:[%s2815_s20 + $0x268] sm:$0xff] %v1705_v13  ;;  %v1707_v14 = vld [vmem:[%s2819_s21 + $0xc0] sm:$0xff]  ;;  %v1709_v15 = vld [vmem:[%s2819_s21 + $0xd0] sm:$0xff] }
 0x2b0   : >> { %v1711_v16 = vld [vmem:[%s2819_s21 + $0xe0] sm:$0xff]  ;;  %1708 = vst [vmem:[%s2815_s20 + $0x2a0] sm:$0xff] %v1707_v14  ;;  %1710 = vst [vmem:[%s2815_s20 + $0x2d8] sm:$0xff] %v1709_v15  ;;  %v1713_v17 = vld [vmem:[%s2819_s21 + $0xf0] sm:$0xff]  ;;  %s1720_s21 = scalar_lea.vmem %s4360_s29, %s2211_s23 [#allocation3]  }
 0x2b1   : >> { %1712 = vst [vmem:[%s2815_s20 + $0x310] sm:$0xff] %v1711_v16  ;;  %1714 = vst [vmem:[%s2815_s20 + $0x348] sm:$0xff] %v1713_v17  ;;  %s1721_s20 = scalar_lea.vmem %s4363_s17, %s2211_s23  }
 0x2b3 PF: > { %1724 = sbr.rel (%p1511_p6) target bundleno = 776 (0x308), region = 125  ;;  %s1726_s25 = ssub.s32 (!%p1511_p6), %s4190_s30, %s4194_s18 }
 0x2b4   : > { %s1730_s26 = sshrl.u32 (!%p1511_p6), %s4190_s30, 3  ;;  %s4437_s28 = scalar_lea.vmem (!%p1511_p6), %s4147_s3, %s1726_s25 [#allocation3] }
 0x2b5   : > { %s4440_s4 = scalar_lea.vmem (!%p1511_p6), %s4188_s27, %s1726_s25  ;;  %s4444_s5 = sshrl.u32 (!%p1511_p6), %s1730_s26, 2 }
 0x2b6   : > { %p2213_p4 = scmp.le.s32.totalorder (!%p1511_p6), %s4444_s5, 0 }
 0x2ba   : > { %2122 = sbr.rel (%p2213_p4) target bundleno = 738 (0x2e2), region = 247  ;;  %s4847_s6 = smov (!%p2213_p4), %s4188_s27 }
 0x2bb   : > { %s4848_s7 = smov (!%p2213_p4), %s4147_s3  ;;  %s4453_s8 = smov (!%p2213_p4), 0  }
 0x2bc   : > { %s4455_s15 = smov (!%p2213_p4), 0  }
 0x2c1 LB: >> { %v1743_v18 = vld [vmem:[%s2835_s7] sm:$0xff]  ;;  %v1745_v19 = vld [vmem:[%s2835_s7 + $0x8] sm:$0xff]  ;;  %v1747_v20 = vld [vmem:[%s2835_s7 + $0x10] sm:$0xff]  ;;  %s1871_s16 = sadd.s32 1, %s2839_s8  ;;  %s1737_s15 = sadd.s32 1, %s2843_s15   ;;  %s2843_s15 = sphi %s4455_s15, %s1737_s15   ;;  %s2839_s8 = sphi %s4453_s8, %s4852_s8   ;;  %s2835_s7 = sphi %s4848_s7, %s4851_s7   ;;  %s2831_s6 = sphi %s4847_s6, %s4850_s6  }
 0x2c2   : >> { %1744 = vst [vmem:[%s2831_s6] sm:$0xff] %v1743_v18  ;;  %1746 = vst [vmem:[%s2831_s6 + $0x8] sm:$0xff] %v1745_v19  ;;  %v1749_v21 = vld [vmem:[%s2835_s7 + $0x18] sm:$0xff]  ;;  %v1755_v22 = vld [vmem:[%s2835_s7 + $0x20] sm:$0xff]  ;;  %p4481_p5 = scmp.ge.s32.totalorder %s1871_s16, %s4444_s5  ;;  %p1736_p7 = scmp.ge.s32.totalorder %s1737_s15, %s4444_s5 }
 0x2c3   : >> { %1748 = vst [vmem:[%s2831_s6 + $0x10] sm:$0xff] %v1747_v20  ;;  %1752 = vst [vmem:[%s2831_s6 + $0x38] sm:$0xff] %v1747_v20  ;;  %v1757_v23 = vld [vmem:[%s2835_s7 + $0x28] sm:$0xff]  ;;  %v1763_v24 = vld [vmem:[%s2835_s7 + $0x30] sm:$0xff] }
 0x2c4   : >> { %1750 = vst [vmem:[%s2831_s6 + $0x18] sm:$0xff] %v1749_v21  ;;  %1754 = vst [vmem:[%s2831_s6 + $0x40] sm:$0xff] %v1749_v21  ;;  %v1765_v25 = vld [vmem:[%s2835_s7 + $0x38] sm:$0xff]  ;;  %v1771_v26 = vld [vmem:[%s2835_s7 + $0x40] sm:$0xff]  ;;  %s4875_s16 = smov (%p4481_p5, %s1871_s16), 0 }
 0x2c5   : >> { %1756 = vst [vmem:[%s2831_s6 + $0x48] sm:$0xff] %v1755_v22  ;;  %1758 = vst [vmem:[%s2831_s6 + $0x50] sm:$0xff] %v1757_v23  ;;  %v1773_v27 = vld [vmem:[%s2835_s7 + $0x48] sm:$0xff]  ;;  %v1779_v28 = vld [vmem:[%s2835_s7 + $0x50] sm:$0xff]  ;;  %s2214_s29 = sshll.u32 %s4875_s16, 5  ;;  %s4852_s8 = smov %s4875_s16 }
 0x2c6   : >> { %1760 = vst [vmem:[%s2831_s6 + $0x70] sm:$0xff] %v1755_v22  ;;  %1762 = vst [vmem:[%s2831_s6 + $0x78] sm:$0xff] %v1757_v23  ;;  %v1781_v29 = vld [vmem:[%s2835_s7 + $0x58] sm:$0xff]  ;;  %v1787_v30 = vld [vmem:[%s2835_s7 + $0x60] sm:$0xff]  ;;  %s4536_s17 = scalar_lea.vmem %s4147_s3, %s2214_s29 [#allocation3]   ;;  %s4539_s20 = scalar_lea.vmem %s4188_s27, %s2214_s29  }
 0x2c7   : >> { %1764 = vst [vmem:[%s2831_s6 + $0x80] sm:$0xff] %v1763_v24  ;;  %1766 = vst [vmem:[%s2831_s6 + $0x88] sm:$0xff] %v1765_v25  ;;  %v1789_v31 = vld [vmem:[%s2835_s7 + $0x68] sm:$0xff]  ;;  %v1795_v32 = vld [vmem:[%s2835_s7 + $0x70] sm:$0xff] }
 0x2c8   : >> { %1768 = vst [vmem:[%s2831_s6 + $0xa8] sm:$0xff] %v1763_v24  ;;  %1770 = vst [vmem:[%s2831_s6 + $0xb0] sm:$0xff] %v1765_v25  ;;  %v1797_v33 = vld [vmem:[%s2835_s7 + $0x78] sm:$0xff]  ;;  %v1803_v34 = vld [vmem:[%s2835_s7 + $0x80] sm:$0xff] }
 0x2c9   : >> { %1772 = vst [vmem:[%s2831_s6 + $0xb8] sm:$0xff] %v1771_v26  ;;  %1776 = vst [vmem:[%s2831_s6 + $0xe0] sm:$0xff] %v1771_v26  ;;  %v1805_v35 = vld [vmem:[%s2835_s7 + $0x88] sm:$0xff]  ;;  %v1811_v36 = vld [vmem:[%s2835_s7 + $0x90] sm:$0xff] }
 0x2ca   : >> { %1774 = vst [vmem:[%s2831_s6 + $0xc0] sm:$0xff] %v1773_v27  ;;  %1778 = vst [vmem:[%s2831_s6 + $0xe8] sm:$0xff] %v1773_v27  ;;  %v1813_v37 = vld [vmem:[%s2835_s7 + $0x98] sm:$0xff]  ;;  %v1819_v38 = vld [vmem:[%s2835_s7 + $0xa0] sm:$0xff] }
 0x2cb   : >> { %1780 = vst [vmem:[%s2831_s6 + $0xf0] sm:$0xff] %v1779_v28  ;;  %1782 = vst [vmem:[%s2831_s6 + $0xf8] sm:$0xff] %v1781_v29  ;;  %v1821_v39 = vld [vmem:[%s2835_s7 + $0xa8] sm:$0xff]  ;;  %v1827_v40 = vld [vmem:[%s2835_s7 + $0xb0] sm:$0xff] }
 0x2cc   : >> { %1784 = vst [vmem:[%s2831_s6 + $0x118] sm:$0xff] %v1779_v28  ;;  %1786 = vst [vmem:[%s2831_s6 + $0x120] sm:$0xff] %v1781_v29  ;;  %v1829_v41 = vld [vmem:[%s2835_s7 + $0xb8] sm:$0xff]  ;;  %v1835_v42 = vld [vmem:[%s2835_s7 + $0xc0] sm:$0xff] }
 0x2cd   : >> { %1788 = vst [vmem:[%s2831_s6 + $0x128] sm:$0xff] %v1787_v30  ;;  %1790 = vst [vmem:[%s2831_s6 + $0x130] sm:$0xff] %v1789_v31  ;;  %v1837_v43 = vld [vmem:[%s2835_s7 + $0xc8] sm:$0xff]  ;;  %v1843_v44 = vld [vmem:[%s2835_s7 + $0xd0] sm:$0xff] }
 0x2ce   : >> { %1792 = vst [vmem:[%s2831_s6 + $0x150] sm:$0xff] %v1787_v30  ;;  %1794 = vst [vmem:[%s2831_s6 + $0x158] sm:$0xff] %v1789_v31  ;;  %v1845_v45 = vld [vmem:[%s2835_s7 + $0xd8] sm:$0xff]  ;;  %v1851_v46 = vld [vmem:[%s2835_s7 + $0xe0] sm:$0xff] }
 0x2cf   : >> { %1796 = vst [vmem:[%s2831_s6 + $0x160] sm:$0xff] %v1795_v32  ;;  %1800 = vst [vmem:[%s2831_s6 + $0x188] sm:$0xff] %v1795_v32  ;;  %v1853_v47 = vld [vmem:[%s2835_s7 + $0xe8] sm:$0xff]  ;;  %v1859_v48 = vld [vmem:[%s2835_s7 + $0xf0] sm:$0xff] }
 0x2d0   : >> { %1798 = vst [vmem:[%s2831_s6 + $0x168] sm:$0xff] %v1797_v33  ;;  %1802 = vst [vmem:[%s2831_s6 + $0x190] sm:$0xff] %v1797_v33  ;;  %v1861_v49 = vld [vmem:[%s2835_s7 + $0xf8] sm:$0xff]  ;;  %v1867_v50 = vld [vmem:[%s2835_s7 + $0x100] sm:$0xff] }
 0x2d1   : >> { %1804 = vst [vmem:[%s2831_s6 + $0x198] sm:$0xff] %v1803_v34  ;;  %1806 = vst [vmem:[%s2831_s6 + $0x1a0] sm:$0xff] %v1805_v35  ;;  %v1869_v51 = vld [vmem:[%s2835_s7 + $0x108] sm:$0xff]  ;;  %s4851_s7 = smov %s4536_s17 }
 0x2d2   : >> { %1808 = vst [vmem:[%s2831_s6 + $0x1c0] sm:$0xff] %v1803_v34  ;;  %1810 = vst [vmem:[%s2831_s6 + $0x1c8] sm:$0xff] %v1805_v35 }
 0x2d3   : >> { %1812 = vst [vmem:[%s2831_s6 + $0x1d0] sm:$0xff] %v1811_v36  ;;  %1814 = vst [vmem:[%s2831_s6 + $0x1d8] sm:$0xff] %v1813_v37 }
 0x2d4   : >> { %1816 = vst [vmem:[%s2831_s6 + $0x1f8] sm:$0xff] %v1811_v36  ;;  %1818 = vst [vmem:[%s2831_s6 + $0x200] sm:$0xff] %v1813_v37 }
 0x2d5   : >> { %1820 = vst [vmem:[%s2831_s6 + $0x208] sm:$0xff] %v1819_v38  ;;  %1824 = vst [vmem:[%s2831_s6 + $0x230] sm:$0xff] %v1819_v38 }
 0x2d6   : >> { %1822 = vst [vmem:[%s2831_s6 + $0x210] sm:$0xff] %v1821_v39  ;;  %1826 = vst [vmem:[%s2831_s6 + $0x238] sm:$0xff] %v1821_v39 }
 0x2d7   : >> { %1828 = vst [vmem:[%s2831_s6 + $0x240] sm:$0xff] %v1827_v40  ;;  %1830 = vst [vmem:[%s2831_s6 + $0x248] sm:$0xff] %v1829_v41 }
 0x2d8   : >> { %1832 = vst [vmem:[%s2831_s6 + $0x268] sm:$0xff] %v1827_v40  ;;  %1834 = vst [vmem:[%s2831_s6 + $0x270] sm:$0xff] %v1829_v41 }
 0x2d9   : >> { %1836 = vst [vmem:[%s2831_s6 + $0x278] sm:$0xff] %v1835_v42  ;;  %1838 = vst [vmem:[%s2831_s6 + $0x280] sm:$0xff] %v1837_v43 }
 0x2da   : >> { %1840 = vst [vmem:[%s2831_s6 + $0x2a0] sm:$0xff] %v1835_v42  ;;  %1842 = vst [vmem:[%s2831_s6 + $0x2a8] sm:$0xff] %v1837_v43 }
 0x2db   : >> { %1844 = vst [vmem:[%s2831_s6 + $0x2b0] sm:$0xff] %v1843_v44  ;;  %1848 = vst [vmem:[%s2831_s6 + $0x2d8] sm:$0xff] %v1843_v44  ;;  %1739 = sbr.rel (!%p1736_p7) target bundleno = 705 (0x2c1), region = 253 }
 0x2dc   : >> { %1846 = vst [vmem:[%s2831_s6 + $0x2b8] sm:$0xff] %v1845_v45  ;;  %1850 = vst [vmem:[%s2831_s6 + $0x2e0] sm:$0xff] %v1845_v45 }
 0x2dd   : >> { %1852 = vst [vmem:[%s2831_s6 + $0x2e8] sm:$0xff] %v1851_v46  ;;  %1854 = vst [vmem:[%s2831_s6 + $0x2f0] sm:$0xff] %v1853_v47 }
 0x2de   : >> { %1856 = vst [vmem:[%s2831_s6 + $0x310] sm:$0xff] %v1851_v46  ;;  %1858 = vst [vmem:[%s2831_s6 + $0x318] sm:$0xff] %v1853_v47 }
 0x2df   : >> { %1860 = vst [vmem:[%s2831_s6 + $0x320] sm:$0xff] %v1859_v48  ;;  %1862 = vst [vmem:[%s2831_s6 + $0x328] sm:$0xff] %v1861_v49 }
 0x2e0   : >> { %1864 = vst [vmem:[%s2831_s6 + $0x348] sm:$0xff] %v1859_v48  ;;  %1866 = vst [vmem:[%s2831_s6 + $0x350] sm:$0xff] %v1861_v49 }
 0x2e1   : >> { %1868 = vst [vmem:[%s2831_s6 + $0x358] sm:$0xff] %v1867_v50  ;;  %1870 = vst [vmem:[%s2831_s6 + $0x360] sm:$0xff] %v1869_v51  ;;  %s4850_s6 = smov %s4539_s20 }
 0x2e2 PF: > { %s4599_s21 = sand.u32 3, %s1730_s26   ;;  %s2229_s22 = sshll.u32 %s4444_s5, 9 }
 0x2e3   : > { %s1882_s24 = sshra.s32 %s2229_s22, 4  ;;  %p2219_p8 = scmp.le.s32.totalorder %s4599_s21, 0 }
 0x2e4   : > { %s4603_s11 = scalar_lea.vmem %s4147_s3, %s1882_s24 [#allocation3]   ;;  %s4606_s23 = scalar_lea.vmem %s4188_s27, %s1882_s24  }
 0x2e5   : > { %2136 = sbr.rel (%p2219_p8) target bundleno = 758 (0x2f6), region = 258  ;;  %s4853_s25 = smov (!%p2219_p8), %s4606_s23 }
 0x2e6   : > { %s4854_s6 = smov (!%p2219_p8), %s4603_s11  ;;  %s4615_s7 = smov (!%p2219_p8), 0  }
 0x2e7   : > { %s4617_s8 = smov (!%p2219_p8), 0  }
 0x2ec LB: >> { %v1898_v52 = vld [vmem:[%s2851_s6] sm:$0xff]  ;;  %v1900_v53 = vld [vmem:[%s2851_s6 + $0x10] sm:$0xff]  ;;  %s1930_s26 = sadd.s32 1, %s2855_s7  ;;  %s1892_s8 = sadd.s32 1, %s2859_s8   ;;  %s2859_s8 = sphi %s4617_s8, %s1892_s8   ;;  %s2855_s7 = sphi %s4615_s7, %s4855_s7   ;;  %s2851_s6 = sphi %s4854_s6, %s1935_s6   ;;  %s2847_s25 = sphi %s4853_s25, %s1936_s25  }
 0x2ed   : >> { %v1902_v54 = vld [vmem:[%s2851_s6 + $0x20] sm:$0xff]  ;;  %1899 = vst [vmem:[%s2847_s25] sm:$0xff] %v1898_v52  ;;  %1901 = vst [vmem:[%s2847_s25 + $0x38] sm:$0xff] %v1900_v53  ;;  %v1904_v55 = vld [vmem:[%s2851_s6 + $0x30] sm:$0xff]  ;;  %p1931_p9 = scmp.ge.s32.totalorder %s1930_s26, %s4599_s21  ;;  %p1891_p10 = scmp.ge.s32.totalorder %s1892_s8, %s4599_s21 }
 0x2ee   : >> { %1903 = vst [vmem:[%s2847_s25 + $0x70] sm:$0xff] %v1902_v54  ;;  %v1906_v56 = vld [vmem:[%s2851_s6 + $0x40] sm:$0xff]  ;;  %v1908_v57 = vld [vmem:[%s2851_s6 + $0x50] sm:$0xff]  ;;  %1905 = vst [vmem:[%s2847_s25 + $0xa8] sm:$0xff] %v1904_v55 }
 0x2ef   : >> { %1907 = vst [vmem:[%s2847_s25 + $0xe0] sm:$0xff] %v1906_v56  ;;  %1909 = vst [vmem:[%s2847_s25 + $0x118] sm:$0xff] %v1908_v57  ;;  %v1910_v58 = vld [vmem:[%s2851_s6 + $0x60] sm:$0xff]  ;;  %v1912_v59 = vld [vmem:[%s2851_s6 + $0x70] sm:$0xff]  ;;  %s4877_s26 = smov (%p1931_p9, %s1930_s26), 0  ;;  %1894 = sbr.rel (!%p1891_p10) target bundleno = 748 (0x2ec), region = 264 }
 0x2f0   : >> { %v1914_v60 = vld [vmem:[%s2851_s6 + $0x80] sm:$0xff]  ;;  %1911 = vst [vmem:[%s2847_s25 + $0x150] sm:$0xff] %v1910_v58  ;;  %1913 = vst [vmem:[%s2847_s25 + $0x188] sm:$0xff] %v1912_v59  ;;  %v1916_v61 = vld [vmem:[%s2851_s6 + $0x90] sm:$0xff]  ;;  %s2220_s5 = sshll.u32 %s4877_s26, 3  ;;  %s4855_s7 = smov %s4877_s26 }
 0x2f1   : >> { %1915 = vst [vmem:[%s2847_s25 + $0x1c0] sm:$0xff] %v1914_v60  ;;  %v1918_v62 = vld [vmem:[%s2851_s6 + $0xa0] sm:$0xff]  ;;  %v1920_v63 = vld [vmem:[%s2851_s6 + $0xb0] sm:$0xff]  ;;  %1917 = vst [vmem:[%s2847_s25 + $0x1f8] sm:$0xff] %v1916_v61 }
 0x2f2   : >> { %1919 = vst [vmem:[%s2847_s25 + $0x230] sm:$0xff] %v1918_v62  ;;  %1921 = vst [vmem:[%s2847_s25 + $0x268] sm:$0xff] %v1920_v63  ;;  %v1922_v0 = vld [vmem:[%s2851_s6 + $0xc0] sm:$0xff]  ;;  %v1924_v1 = vld [vmem:[%s2851_s6 + $0xd0] sm:$0xff] }
 0x2f3   : >> { %v1926_v2 = vld [vmem:[%s2851_s6 + $0xe0] sm:$0xff]  ;;  %1923 = vst [vmem:[%s2847_s25 + $0x2a0] sm:$0xff] %v1922_v0  ;;  %1925 = vst [vmem:[%s2847_s25 + $0x2d8] sm:$0xff] %v1924_v1  ;;  %v1928_v3 = vld [vmem:[%s2851_s6 + $0xf0] sm:$0xff]  ;;  %s1935_s6 = scalar_lea.vmem %s4603_s11, %s2220_s5 [#allocation3]  }
 0x2f4   : >> { %1927 = vst [vmem:[%s2847_s25 + $0x310] sm:$0xff] %v1926_v2  ;;  %1929 = vst [vmem:[%s2847_s25 + $0x348] sm:$0xff] %v1928_v3  ;;  %s1936_s25 = scalar_lea.vmem %s4606_s23, %s2220_s5  }
 0x2f6 PF: > { %s2863_s15 = smov 0  }
 0x2f7   : > { %s4675_s16 = sshllo.u32 %s2863_s15, %s4194_s18 }
 0x2f8   : > { %v1946_v4 = vld [vmem:[%s4437_s28] sm:%s4675_s16]  ;;  %v1948_v5 = vld [vmem:[%s4437_s28 + $0x10] sm:%s4675_s16] }
 0x2f9   : > { %1947 = vst [vmem:[%s4440_s4] sm:%s4675_s16] %v1946_v4  ;;  %1949 = vst [vmem:[%s4440_s4 + $0x38] sm:%s4675_s16] %v1948_v5 }
 0x2fa   : > { %v1950_v6 = vld [vmem:[%s4437_s28 + $0x20] sm:%s4675_s16]  ;;  %v1952_v7 = vld [vmem:[%s4437_s28 + $0x30] sm:%s4675_s16] }
 0x2fb   : > { %1951 = vst [vmem:[%s4440_s4 + $0x70] sm:%s4675_s16] %v1950_v6  ;;  %1953 = vst [vmem:[%s4440_s4 + $0xa8] sm:%s4675_s16] %v1952_v7 }
 0x2fc   : > { %v1954_v8 = vld [vmem:[%s4437_s28 + $0x40] sm:%s4675_s16]  ;;  %v1956_v9 = vld [vmem:[%s4437_s28 + $0x50] sm:%s4675_s16] }
 0x2fd   : > { %1955 = vst [vmem:[%s4440_s4 + $0xe0] sm:%s4675_s16] %v1954_v8  ;;  %1957 = vst [vmem:[%s4440_s4 + $0x118] sm:%s4675_s16] %v1956_v9 }
 0x2fe   : > { %v1958_v10 = vld [vmem:[%s4437_s28 + $0x60] sm:%s4675_s16]  ;;  %v1960_v11 = vld [vmem:[%s4437_s28 + $0x70] sm:%s4675_s16] }
 0x2ff   : > { %1959 = vst [vmem:[%s4440_s4 + $0x150] sm:%s4675_s16] %v1958_v10  ;;  %1961 = vst [vmem:[%s4440_s4 + $0x188] sm:%s4675_s16] %v1960_v11 }
 0x300   : > { %v1962_v12 = vld [vmem:[%s4437_s28 + $0x80] sm:%s4675_s16]  ;;  %v1964_v13 = vld [vmem:[%s4437_s28 + $0x90] sm:%s4675_s16] }
 0x301   : > { %1963 = vst [vmem:[%s4440_s4 + $0x1c0] sm:%s4675_s16] %v1962_v12  ;;  %1965 = vst [vmem:[%s4440_s4 + $0x1f8] sm:%s4675_s16] %v1964_v13 }
 0x302   : > { %v1966_v14 = vld [vmem:[%s4437_s28 + $0xa0] sm:%s4675_s16]  ;;  %v1968_v15 = vld [vmem:[%s4437_s28 + $0xb0] sm:%s4675_s16] }
 0x303   : > { %1967 = vst [vmem:[%s4440_s4 + $0x230] sm:%s4675_s16] %v1966_v14  ;;  %1969 = vst [vmem:[%s4440_s4 + $0x268] sm:%s4675_s16] %v1968_v15 }
 0x304   : > { %v1970_v16 = vld [vmem:[%s4437_s28 + $0xc0] sm:%s4675_s16]  ;;  %v1972_v17 = vld [vmem:[%s4437_s28 + $0xd0] sm:%s4675_s16] }
 0x305   : > { %1971 = vst [vmem:[%s4440_s4 + $0x2a0] sm:%s4675_s16] %v1970_v16  ;;  %1973 = vst [vmem:[%s4440_s4 + $0x2d8] sm:%s4675_s16] %v1972_v17 }
 0x306   : > { %v1974_v18 = vld [vmem:[%s4437_s28 + $0xe0] sm:%s4675_s16]  ;;  %v1976_v19 = vld [vmem:[%s4437_s28 + $0xf0] sm:%s4675_s16] }
 0x307   : > { %1975 = vst [vmem:[%s4440_s4 + $0x310] sm:%s4675_s16] %v1974_v18  ;;  %1977 = vst [vmem:[%s4440_s4 + $0x348] sm:%s4675_s16] %v1976_v19 }
 0x308 PF: > { %p2222_p6 = scmp.ge.u32.totalorder %s4190_s30, 8 }
 0x309   : > { %s2864_s18 = smov (!%p2222_p6), 0  }
 0x30a   : > { %1468 = sbr.rel (%p2222_p6) target bundleno = 795 (0x31b), region = 96  ;;  %s4743_s28 = sshllo.u32 (!%p2222_p6), %s2864_s18, %s4190_s30 }
 0x30b   : > { %v1478_v20 = vld [vmem:[%s4147_s3] sm:%s4743_s28] (!%p2222_p6)  ;;  %v1480_v21 = vld [vmem:[%s4147_s3 + $0x10] sm:%s4743_s28] (!%p2222_p6) }
 0x30c   : > { %1479 = vst [vmem:[%s4188_s27] sm:%s4743_s28] (!%p2222_p6), %v1478_v20  ;;  %1481 = vst [vmem:[%s4188_s27 + $0x38] sm:%s4743_s28] (!%p2222_p6), %v1480_v21 }
 0x30d   : > { %v1482_v22 = vld [vmem:[%s4147_s3 + $0x20] sm:%s4743_s28] (!%p2222_p6)  ;;  %v1484_v23 = vld [vmem:[%s4147_s3 + $0x30] sm:%s4743_s28] (!%p2222_p6) }
 0x30e   : > { %1483 = vst [vmem:[%s4188_s27 + $0x70] sm:%s4743_s28] (!%p2222_p6), %v1482_v22  ;;  %1485 = vst [vmem:[%s4188_s27 + $0xa8] sm:%s4743_s28] (!%p2222_p6), %v1484_v23 }
 0x30f   : > { %v1486_v24 = vld [vmem:[%s4147_s3 + $0x40] sm:%s4743_s28] (!%p2222_p6)  ;;  %v1488_v25 = vld [vmem:[%s4147_s3 + $0x50] sm:%s4743_s28] (!%p2222_p6) }
 0x310   : > { %1487 = vst [vmem:[%s4188_s27 + $0xe0] sm:%s4743_s28] (!%p2222_p6), %v1486_v24  ;;  %1489 = vst [vmem:[%s4188_s27 + $0x118] sm:%s4743_s28] (!%p2222_p6), %v1488_v25 }
 0x311   : > { %v1490_v26 = vld [vmem:[%s4147_s3 + $0x60] sm:%s4743_s28]  ;;  %v1492_v27 = vld [vmem:[%s4147_s3 + $0x70] sm:%s4743_s28] }
 0x312   : > { %1491 = vst [vmem:[%s4188_s27 + $0x150] sm:%s4743_s28] %v1490_v26  ;;  %1493 = vst [vmem:[%s4188_s27 + $0x188] sm:%s4743_s28] %v1492_v27 }
 0x313   : > { %v1494_v28 = vld [vmem:[%s4147_s3 + $0x80] sm:%s4743_s28]  ;;  %v1496_v29 = vld [vmem:[%s4147_s3 + $0x90] sm:%s4743_s28] }
 0x314   : > { %1495 = vst [vmem:[%s4188_s27 + $0x1c0] sm:%s4743_s28] %v1494_v28  ;;  %1497 = vst [vmem:[%s4188_s27 + $0x1f8] sm:%s4743_s28] %v1496_v29 }
 0x315   : > { %v1498_v30 = vld [vmem:[%s4147_s3 + $0xa0] sm:%s4743_s28]  ;;  %v1500_v31 = vld [vmem:[%s4147_s3 + $0xb0] sm:%s4743_s28] }
 0x316   : > { %1499 = vst [vmem:[%s4188_s27 + $0x230] sm:%s4743_s28] %v1498_v30  ;;  %1501 = vst [vmem:[%s4188_s27 + $0x268] sm:%s4743_s28] %v1500_v31 }
 0x317   : > { %v1502_v32 = vld [vmem:[%s4147_s3 + $0xc0] sm:%s4743_s28]  ;;  %v1504_v33 = vld [vmem:[%s4147_s3 + $0xd0] sm:%s4743_s28] }
 0x318   : > { %1503 = vst [vmem:[%s4188_s27 + $0x2a0] sm:%s4743_s28] %v1502_v32  ;;  %1505 = vst [vmem:[%s4188_s27 + $0x2d8] sm:%s4743_s28] %v1504_v33 }
 0x319   : > { %v1506_v34 = vld [vmem:[%s4147_s3 + $0xe0] sm:%s4743_s28]  ;;  %v1508_v35 = vld [vmem:[%s4147_s3 + $0xf0] sm:%s4743_s28] }
 0x31a   : > { %1507 = vst [vmem:[%s4188_s27 + $0x310] sm:%s4743_s28] %v1506_v34  ;;  %1509 = vst [vmem:[%s4188_s27 + $0x348] sm:%s4743_s28] %v1508_v35 }
 0x31b PF: > { %s12_s13 = sadd.s32 1, %s2763_s13   ;;  %s4856_s9 = smov %s2751_s10 }
 0x31c   : > { %p9_p11 = scmp.ge.s32.totalorder %s12_s13, 6   ;;  %s4857_s10 = smov %s2920_s19 }
 0x31d   : > { %s4858_s11 = smov %s2759_s12  ;;  %s4859_s12 = smov %s4861_s14 }
 0x31e   :  { %11 = sbr.rel (!%p9_p11) target bundleno = 3 (0x3), region = 275 }

</bundles_post_ra>
